<compile_context>
chip_gen: v7x
topology: tpu7x:2x2x1
jax: 0.10.0
libtpu: 0.0.40
codegen_flags: <defaults>
</compile_context>

<pallas_src>
import jax
import jax.numpy as jnp
from jax import lax
from jax.experimental import pallas as pl
from jax.experimental.pallas import tpu as pltpu


COMPUTE_DTYPE = jnp.bfloat16           # MXU operand dtype (accumulation stays f32)


def _round_up(x, m):
    return (x + m - 1) // m * m


def _detect_vmem_limit():
    """Generation-aware scoped-VMEM budget: ~3/4 of physical per-core VMEM."""
    phys = None
    try:
        info = pltpu.get_tpu_info()
        for attr in ("vmem_capacity_bytes", "vmem_bytes", "vmem_size_bytes"):
            v = getattr(info, attr, None)
            if isinstance(v, int) and v > 0:
                phys = v
                break
    except Exception:
        phys = None
    if phys is None:
        phys = 64 * 1024 * 1024        # conservative (v7x-sized) fallback
    return (phys // 4) * 3


VMEM_LIMIT = _detect_vmem_limit()


def _const_spec(block_shape):
    """BlockSpec with a constant (0,...) index map, single-buffered when supported."""
    nd = len(block_shape)
    idx_map = lambda *_: (0,) * nd
    try:
        return pl.BlockSpec(block_shape, idx_map, pipeline_mode=pl.Buffered(1))
    except Exception:
        return pl.BlockSpec(block_shape, idx_map)


def _proj_tm(m, din, g, in_itemsize, out_itemsize, vmem_limit):
    """Input-projection row tile from the VMEM budget (double-buffered in + out)."""
    per_row = 2 * (din * in_itemsize + g * out_itemsize)
    tm = (vmem_limit // 2) // max(per_row, 1)
    tm = min(1024, max(8, tm // 8 * 8))
    return min(tm, _round_up(m, 8))


def _head_tn(n_rows, d_model, itemsize, vmem_limit):
    """Item-block width for the head from the VMEM budget (2 buffers of the table block)."""
    budget = vmem_limit // 4
    tn = budget // max(d_model * itemsize, 1)
    tn = min(8192, max(128, tn // 128 * 128))
    return min(tn, _round_up(n_rows, 128))


# ----------------------------- Pallas kernels ------------------------------ #

def input_proj_kernel(x_ref, w_ref, b_ref, o_ref):
    """One row-block of the hoisted layer-0 input projection: (TM,Din)@(Din,3Hp)+b."""
    acc = (jnp.dot(x_ref[...], w_ref[...], preferred_element_type=jnp.float32)
           + b_ref[...])
    o_ref[...] = acc.astype(o_ref.dtype)          # bf16 writeback halves gi0 HBM traffic


def make_fused_gru_kernel(num_layers, hp, chunk):
    """Fused multi-layer GRU recurrence, grid over time CHUNKS.
       Refs per grid step: gi0 (C,B,3Hp) bf16 precomputed layer-0 projection, tgt (B,1),
       layer-0 {whh,bhn}, deeper layers {wih,bih,whh,bhn}, out (B,Hp), h scratch."""

    def kernel(*refs):
        gi0_ref, tgt_ref, whh0_ref, bhn0_ref = refs[:4]
        deep = [refs[4 + 4 * l: 8 + 4 * l] for l in range(num_layers - 1)]
        out_ref = refs[4 + 4 * (num_layers - 1)]
        h_scr = refs[5 + 4 * (num_layers - 1)]

        c = pl.program_id(0)
        cdt = whh0_ref.dtype                      # bf16 matmul operands

        @pl.when(c == 0)
        def _init():
            h_scr[...] = jnp.zeros_like(h_scr)
            out_ref[...] = jnp.zeros_like(out_ref)

        # Load constant blocks once per chunk.
        whh0 = whh0_ref[...]
        bhn0 = bhn0_ref[...]
        deep_w = [(w[...], bi[...], wh[...], bn[...]) for (w, bi, wh, bn) in deep]
        tgt = tgt_ref[...]                        # (B, 1) int32

        def cell(gi, gh, bhn, h_prev):
            # PyTorch GRU, gate order [r, z, n]; gi is bf16, adds promote to f32.
            r = jax.nn.sigmoid(gi[:, 0:hp] + gh[:, 0:hp])
            z = jax.nn.sigmoid(gi[:, hp:2 * hp] + gh[:, hp:2 * hp])
            n = jnp.tanh(gi[:, 2 * hp:] + r * (gh[:, 2 * hp:] + bhn))
            return (1.0 - z) * n + z * h_prev

        def step_body(s, carry):
            hs, out = carry
            t = c * chunk + s
            gi_all = gi0_ref[s]                   # (B, 3Hp) bf16

            # Layer 0: input projection was hoisted; only the recurrent matmul remains.
            h_prev = hs[0]
            gh = jnp.dot(h_prev.astype(cdt), whh0, preferred_element_type=jnp.float32)
            h_new = cell(gi_all, gh, bhn0, h_prev)
            new_hs = [h_new]
            x_l = h_new

            # Deeper layers fused at the same time step (activations stay in vregs/VMEM).
            for l, (wih, bih, whh, bhn) in enumerate(deep_w, start=1):
                h_prev = hs[l]
                gi = jnp.dot(x_l.astype(cdt), wih,
                             preferred_element_type=jnp.float32) + bih
                gh = jnp.dot(h_prev.astype(cdt), whh,
                             preferred_element_type=jnp.float32)
                h_new = cell(gi, gh, bhn, h_prev)
                new_hs.append(h_new)
                x_l = h_new

            # Keep only the hidden state at each row's last non-pad step.
            keep = tgt == t                       # (B, 1)
            new_out = jnp.where(keep, x_l, out)
            return tuple(new_hs), new_out

        init_hs = tuple(h_scr[l] for l in range(num_layers))
        hs, out = lax.fori_loop(0, chunk, step_body, (init_hs, out_ref[...]),
                                unroll=True)
        for l in range(num_layers):
            h_scr[l] = hs[l]
        out_ref[...] = out

    return kernel


def make_head_kernel(n_valid, tn, num_blocks):
    """fc + blocked scores against the lane-dense transposed item table + online
       logsumexp -> per-row CE terms. Column 0 (padding item) and padded tail masked."""

    def kernel(h_ref, wfc_ref, bfc_ref, lab_ref, et_ref, loss_ref,
               emb_scr, m_scr, l_scr, t_scr):
        j = pl.program_id(0)

        @pl.when(j == 0)
        def _init():
            emb = (jnp.dot(h_ref[...].astype(wfc_ref.dtype), wfc_ref[...],
                           preferred_element_type=jnp.float32) + bfc_ref[...])
            emb_scr[...] = emb.astype(emb_scr.dtype)
            m_scr[...] = jnp.full_like(m_scr, -jnp.inf)
            l_scr[...] = jnp.zeros_like(l_scr)
            t_scr[...] = jnp.zeros_like(t_scr)

        # Scores for this item block: (B, d_model) @ (d_model, TN) — lane-dense RHS.
        scores = jnp.dot(emb_scr[...], et_ref[...], preferred_element_type=jnp.float32)
        col = j * tn + lax.broadcasted_iota(jnp.int32, scores.shape, 1)
        valid = (col >= 1) & (col < n_valid)       # drop pad item + padded tail columns
        scores = jnp.where(valid, scores, -jnp.inf)

        m_prev = m_scr[...]
        m_new = jnp.maximum(m_prev, jnp.max(scores, axis=-1, keepdims=True))
        alpha = jnp.exp(m_prev - m_new)
        l_scr[...] = alpha * l_scr[...] + jnp.sum(jnp.exp(scores - m_new),
                                                  axis=-1, keepdims=True)
        m_scr[...] = m_new
        hit = col == lab_ref[...]                  # labels are 1-based item ids
        t_scr[...] = t_scr[...] + jnp.sum(jnp.where(hit, scores, 0.0),
                                          axis=-1, keepdims=True)

        @pl.when(j == num_blocks - 1)
        def _finalize():
            loss_ref[...] = m_scr[...] + jnp.log(l_scr[...]) - t_scr[...]

    return kernel


# ------------------------------- wrappers ---------------------------------- #

def run_input_projection(x_tbd, w_ih, b_row, out_dtype=COMPUTE_DTYPE):
    """(T, B, Din) -> (T, B, 3*Hp) bf16 as one big row-blocked matmul on the MXU."""
    T, B, din = x_tbd.shape
    g = w_ih.shape[1]
    m = T * B
    tm = _proj_tm(m, din, g, jnp.dtype(w_ih.dtype).itemsize,
                  jnp.dtype(out_dtype).itemsize, VMEM_LIMIT)
    mp = _round_up(m, tm)
    x_flat = x_tbd.reshape(m, din).astype(w_ih.dtype)
    if mp != m:
        x_flat = jnp.pad(x_flat, ((0, mp - m), (0, 0)))
    gi = pl.pallas_call(
        input_proj_kernel,
        out_shape=jax.ShapeDtypeStruct((mp, g), out_dtype),
        grid=(mp // tm,),
        in_specs=[pl.BlockSpec((tm, din), lambda i: (i, 0)),
                  _const_spec((din, g)),
                  _const_spec((1, g))],
        out_specs=pl.BlockSpec((tm, g), lambda i: (i, 0)),
        compiler_params=pltpu.CompilerParams(
            dimension_semantics=("parallel",),
            vmem_limit_bytes=VMEM_LIMIT),
    )(x_flat, w_ih, b_row)
    return gi[:m].reshape(T, B, g)


def run_fused_gru(gi0, target_idx, layers, chunk=8):
    T, B, g = gi0.shape
    hp = g // 3
    num_layers = len(layers)

    chunk = min(chunk, T)
    t_pad = _round_up(T, chunk)
    if t_pad != T:
        gi0 = jnp.pad(gi0, ((0, t_pad - T), (0, 0), (0, 0)))   # padded steps never capture
    num_chunks = t_pad // chunk

    arrays = [gi0, target_idx.reshape(B, 1).astype(jnp.int32),
              layers[0]["whh"], layers[0]["bhn"]]
    in_specs = [pl.BlockSpec((chunk, B, g), lambda c: (c, 0, 0)),
                _const_spec((B, 1)),
                _const_spec((hp, g)),
                _const_spec((1, hp))]
    for layer in layers[1:]:
        arrays += [layer["wih"], layer["bih"], layer["whh"], layer["bhn"]]
        in_specs += [_const_spec((hp, g)),
                     _const_spec((1, g)),
                     _const_spec((hp, g)),
                     _const_spec((1, hp))]

    return pl.pallas_call(
        make_fused_gru_kernel(num_layers, hp, chunk),
        out_shape=jax.ShapeDtypeStruct((B, hp), jnp.float32),
        grid=(num_chunks,),
        in_specs=in_specs,
        out_specs=pl.BlockSpec((B, hp), lambda c: (0, 0)),
        scratch_shapes=[pltpu.VMEM((num_layers, B, hp), jnp.float32)],
        compiler_params=pltpu.CompilerParams(
            dimension_semantics=("arbitrary",),
            vmem_limit_bytes=VMEM_LIMIT),
    )(*arrays)


def run_head(target_h, w_fc, b_fc, item_emb_t, next_items, n_valid):
    B, hp = target_h.shape
    d_model, n_pad = item_emb_t.shape
    tn = _head_tn(n_valid, d_model, jnp.dtype(item_emb_t.dtype).itemsize, VMEM_LIMIT)
    if n_pad % tn != 0:                 # robustness fallback; table is normally pre-padded
        extra = _round_up(n_pad, tn) - n_pad
        item_emb_t = jnp.pad(item_emb_t, ((0, 0), (0, extra)))
        n_pad += extra
    num_blocks = n_pad // tn

    per_row = pl.pallas_call(
        make_head_kernel(n_valid, tn, num_blocks),
        out_shape=jax.ShapeDtypeStruct((B, 1), jnp.float32),
        grid=(num_blocks,),
        in_specs=[_const_spec((B, hp)),
                  _const_spec((hp, d_model)),
                  _const_spec((1, d_model)),
                  _const_spec((B, 1)),
                  pl.BlockSpec((d_model, tn), lambda j: (0, j))],
        out_specs=pl.BlockSpec((B, 1), lambda j: (0, 0)),
        scratch_shapes=[pltpu.VMEM((B, d_model), item_emb_t.dtype),
                        pltpu.VMEM((B, 1), jnp.float32),
                        pltpu.VMEM((B, 1), jnp.float32),
                        pltpu.VMEM((B, 1), jnp.float32)],
        compiler_params=pltpu.CompilerParams(
            dimension_semantics=("arbitrary",),
            vmem_limit_bytes=VMEM_LIMIT),
    )(target_h, w_fc, b_fc.reshape(1, -1),
      next_items.reshape(B, 1).astype(jnp.int32), item_emb_t)
    return jnp.mean(per_row)            # per-row lse - target_logit; mean taken outside


def gru4rec_forward(params, his_seqs, next_items, pad_idx=0):
    """Equivalent of Gru4Rec.forward with loss_type='ce' (eval mode)."""
    item_emb = params["item_emb"]                       # (n_items+1, D)
    n_valid = item_emb.shape[0]

    # Embedding lookup (gather) — glue.
    x = jnp.take(item_emb, his_seqs, axis=0)            # (B, T, D)
    # TODO(synk): emb_dropout / inter-layer GRU dropout omitted (eval-mode identity).
    x = jnp.transpose(x, (1, 0, 2))                     # (T, B, D) time-major

    # Layer-0 input projection hoisted out of the serial recurrence (bf16 output).
    layer0 = params["gru"][0]
    gi0 = run_input_projection(x, layer0["wih"], layer0["bih"])     # (T, B, 3Hp) bf16

    # Last non-pad position per row (clamped so all-pad rows stay in range).
    lengths = jnp.sum((his_seqs != pad_idx).astype(jnp.int32), axis=-1)
    target_idx = jnp.maximum(lengths - 1, 0)

    # Fused multi-layer GRU; returns the hidden state at each row's target step.
    target_h = run_fused_gru(gi0, target_idx, params["gru"])        # (B, Hp)

    # fc + scores over all items + cross entropy (labels are 1-based item ids).
    return run_head(target_h, params["w_fc_t"], params["b_fc"],
                    params["item_emb_t"], next_items, n_valid)


# --------------------------- parameter construction ------------------------ #

def _pad_gate_cols(w, h, hp, dtype):
    """(rows, 3*h) -> (rows, 3*hp): each [r|z|n] gate slab zero-padded to hp lanes."""
    out = jnp.zeros((w.shape[0], 3 * hp), dtype)
    for gidx in range(3):
        out = out.at[:, gidx * hp: gidx * hp + h].set(
            w[:, gidx * h:(gidx + 1) * h].astype(dtype))
    return out


def _pad_rows(w, rows_p):
    return jnp.pad(w, ((0, rows_p - w.shape[0]), (0, 0)))


def make_params(key, n_items, d_model, inner_dim, num_layers,
                compute_dtype=COMPUTE_DTYPE):
    h = inner_dim
    hp = _round_up(h, 128)
    keys = jax.random.split(key, 2 + num_layers)

    # Embedding: normal init, padding row zeroed (matches init_weights).
    emb = jax.random.normal(keys[0], (n_items + 1, d_model), jnp.float32)
    emb = emb.at[0].set(0.0)

    gru_layers = []
    for l in range(num_layers):
        din = d_model if l == 0 else h
        kih, khh = jax.random.split(keys[1 + l], 2)
        # (orthogonal init in torch; scaled normal here — forward semantics unaffected)
        w_ih = jax.random.normal(kih, (din, 3 * h), jnp.float32) / jnp.sqrt(din)
        w_hh = jax.random.normal(khh, (h, 3 * h), jnp.float32) / jnp.sqrt(h)
        b_ih = jnp.zeros((3 * h,), jnp.float32)
        b_hh = jnp.zeros((3 * h,), jnp.float32)

        # Fold the hidden-bias r/z parts into the input bias; keep only b_hn
        # separate (it must stay inside r * (W_hn h + b_hn)).
        b_in = b_ih + jnp.concatenate([b_hh[:2 * h], jnp.zeros((h,), jnp.float32)])
        b_hn = jnp.zeros((1, hp), jnp.float32).at[0, :h].set(b_hh[2 * h:])

        wih = _pad_gate_cols(w_ih, h, hp, compute_dtype)
        if l > 0:
            wih = _pad_rows(wih, hp)                  # deep-layer input is (B, hp)
        gru_layers.append(dict(
            wih=wih,                                  # (din|hp, 3hp) bf16
            bih=_pad_gate_cols(b_in[None, :], h, hp, jnp.float32),   # (1, 3hp)
            whh=_pad_rows(_pad_gate_cols(w_hh, h, hp, compute_dtype), hp),  # (hp, 3hp)
            bhn=b_hn,                                 # (1, hp)
        ))

    w_fc = jax.random.normal(keys[-1], (h, d_model), jnp.float32) / jnp.sqrt(h)

    # Transposed, item-padded table for the head (lane-dense (d_model, tn) blocks,
    # padded to a multiple of the head block so no ragged-edge reads occur).
    n_rows = n_items + 1
    tn = _head_tn(n_rows, d_model, jnp.dtype(compute_dtype).itemsize, VMEM_LIMIT)
    n_pad = _round_up(n_rows, tn)
    emb_t = jnp.zeros((d_model, n_pad), compute_dtype)
    emb_t = emb_t.at[:, :n_rows].set(emb.T.astype(compute_dtype))

    return dict(
        item_emb=emb.astype(compute_dtype),           # (n_items+1, D) for the gather
        item_emb_t=emb_t,                             # (D, n_pad) for the head stream
        gru=gru_layers,
        w_fc_t=_pad_rows(w_fc.astype(compute_dtype), hp),   # (hp, d_model)
        b_fc=jnp.zeros((d_model,), jnp.float32),
    )


# ----------------------------------- main ----------------------------------- #

if __name__ == "__main__":
    n_items, d_model, inner_dim, num_layers = 256, 32, 32, 2
    B, T = 8, 8

    key = jax.random.PRNGKey(0)
    k_par, k_len, k_itm, k_nxt = jax.random.split(key, 4)

    params = make_params(k_par, n_items, d_model, inner_dim, num_layers)

    # Right-padded interaction histories (pad_idx = 0).
    lengths = jax.random.randint(k_len, (B,), 1, T + 1)
    items = jax.random.randint(k_itm, (B, T), 1, n_items + 1)
    pos = jnp.arange(T)[None, :]
    his_seqs = jnp.where(pos < lengths[:, None], items, 0).astype(jnp.int32)
    next_items = jax.random.randint(k_nxt, (B,), 1, n_items + 1).astype(jnp.int32)

    fwd = jax.jit(gru4rec_forward)
    loss = fwd(params, his_seqs, next_items)
    loss = jax.block_until_ready(loss)
    assert jnp.isfinite(loss), "loss is not finite"
    print("KERNEL_OK")
</pallas_src>

<mosaic_0001>
module attributes {stable_mosaic.version = 11 : i64} {
  func.func @input_proj_kernel(%arg0: i32, %arg1: memref<64x32xbf16, #tpu.memory_space<vmem>>, %arg2: memref<32x384xbf16, #tpu.memory_space<vmem>>, %arg3: memref<1x384xf32, #tpu.memory_space<vmem>>, %arg4: memref<64x384xbf16, #tpu.memory_space<vmem>>) attributes {dimension_semantics = [#tpu.dimension_semantics<parallel>], iteration_bounds = array<i64: 1>, scalar_prefetch = 0 : i64, scratch_operands = 0 : i64, tpu.core_type = #tpu.core_type<tc>, window_params = [{transform_indices = @transform_0, window_bounds = array<i64: 64, 32>}, {pipeline_mode = #tpu.pipeline_mode<synchronous>, transform_indices = @transform_1, window_bounds = array<i64: 32, 384>}, {pipeline_mode = #tpu.pipeline_mode<synchronous>, transform_indices = @transform_2, window_bounds = array<i64: 1, 384>}, {transform_indices = @transform_3, window_bounds = array<i64: 64, 384>}]} {
    %c0 = arith.constant 0 : index
    %c0_0 = arith.constant 0 : index
    %0 = vector.load %arg1[%c0, %c0_0] : memref<64x32xbf16, #tpu.memory_space<vmem>>, vector<64x32xbf16>
    %c0_1 = arith.constant 0 : index
    %c0_2 = arith.constant 0 : index
    %1 = vector.load %arg2[%c0_1, %c0_2] : memref<32x384xbf16, #tpu.memory_space<vmem>>, vector<32x384xbf16>
    %cst = arith.constant dense<0.000000e+00> : vector<64x384xf32>
    %2 = tpu.matmul %0, %1, %cst {dimension_numbers = #tpu.dot_dimension_numbers<[1], [0], [0], [1], [0, 0, 1, 1], [], []>} : vector<64x32xbf16>, vector<32x384xbf16>, vector<64x384xf32> -> vector<64x384xf32>
    %c0_3 = arith.constant 0 : index
    %c0_4 = arith.constant 0 : index
    %3 = vector.load %arg3[%c0_3, %c0_4] : memref<1x384xf32, #tpu.memory_space<vmem>>, vector<1x384xf32>
    %4 = vector.broadcast %3 : vector<1x384xf32> to vector<64x384xf32>
    %5 = arith.addf %2, %4 : vector<64x384xf32>
    %6 = arith.truncf %5 : vector<64x384xf32> to vector<64x384xbf16>
    %c0_5 = arith.constant 0 : index
    %c0_6 = arith.constant 0 : index
    %7 = vector.load %arg4[%c0_5, %c0_6] : memref<64x384xbf16, #tpu.memory_space<vmem>>, vector<64x384xbf16>
    tpu.vector_store %arg4[%c0_5, %c0_6], %6 {strides = array<i32>} : memref<64x384xbf16, #tpu.memory_space<vmem>>, vector<64x384xbf16>,
    return
  }
  func.func @transform_0(%arg0: i32) -> (i32, i32) {
    %c0_i32 = arith.constant 0 : i32
    %c0_i32_0 = arith.constant 0 : i32
    return %arg0, %c0_i32 : i32, i32
  }
  func.func @transform_1(%arg0: i32) -> (i32, i32) {
    %c0_i32 = arith.constant 0 : i32
    %c0_i32_0 = arith.constant 0 : i32
    %c0_i32_1 = arith.constant 0 : i32
    return %c0_i32, %c0_i32_0 : i32, i32
  }
  func.func @transform_2(%arg0: i32) -> (i32, i32) {
    %c0_i32 = arith.constant 0 : i32
    %c0_i32_0 = arith.constant 0 : i32
    %c0_i32_1 = arith.constant 0 : i32
    return %c0_i32, %c0_i32_0 : i32, i32
  }
  func.func @transform_3(%arg0: i32) -> (i32, i32) {
    %c0_i32 = arith.constant 0 : i32
    %c0_i32_0 = arith.constant 0 : i32
    return %arg0, %c0_i32 : i32, i32
  }
}

module attributes {stable_mosaic.version = 11 : i64} {
  func.func @kernel(%arg0: i32, %arg1: memref<8x128xf32, #tpu.memory_space<vmem>>, %arg2: memref<128x32xbf16, #tpu.memory_space<vmem>>, %arg3: memref<1x32xf32, #tpu.memory_space<vmem>>, %arg4: memref<8x1xi32, #tpu.memory_space<vmem>>, %arg5: memref<32x384xbf16, #tpu.memory_space<vmem>>, %arg6: memref<8x1xf32, #tpu.memory_space<vmem>>, %arg7: memref<8x32xbf16, #tpu.memory_space<vmem>>, %arg8: memref<8x1xf32, #tpu.memory_space<vmem>>, %arg9: memref<8x1xf32, #tpu.memory_space<vmem>>, %arg10: memref<8x1xf32, #tpu.memory_space<vmem>>) attributes {dimension_semantics = [#tpu.dimension_semantics<arbitrary>], iteration_bounds = array<i64: 1>, scalar_prefetch = 0 : i64, scratch_operands = 4 : i64, tpu.core_type = #tpu.core_type<tc>, window_params = [{pipeline_mode = #tpu.pipeline_mode<synchronous>, transform_indices = @transform_0, window_bounds = array<i64: 8, 128>}, {pipeline_mode = #tpu.pipeline_mode<synchronous>, transform_indices = @transform_1, window_bounds = array<i64: 128, 32>}, {pipeline_mode = #tpu.pipeline_mode<synchronous>, transform_indices = @transform_2, window_bounds = array<i64: 1, 32>}, {pipeline_mode = #tpu.pipeline_mode<synchronous>, transform_indices = @transform_3, window_bounds = array<i64: 8, 1>}, {transform_indices = @transform_4, window_bounds = array<i64: 32, 384>}, {pipeline_mode = #tpu.pipeline_mode<synchronous>, transform_indices = @transform_5, window_bounds = array<i64: 8, 1>}]} {
    %c0_i32 = arith.constant 0 : i32
    %0 = arith.cmpi eq, %arg0, %c0_i32 : i32
    %1 = arith.extui %0 : i1 to i32
    %c0_i32_0 = arith.constant 0 : i32
    %2 = arith.cmpi ne, %1, %c0_i32_0 : i32
    scf.if %2 {
      %c0_25 = arith.constant 0 : index
      %c0_26 = arith.constant 0 : index
      %46 = vector.load %arg1[%c0_25, %c0_26] : memref<8x128xf32, #tpu.memory_space<vmem>>, vector<8x128xf32>
      %47 = arith.truncf %46 : vector<8x128xf32> to vector<8x128xbf16>
      %c0_27 = arith.constant 0 : index
      %c0_28 = arith.constant 0 : index
      %48 = vector.load %arg2[%c0_27, %c0_28] : memref<128x32xbf16, #tpu.memory_space<vmem>>, vector<128x32xbf16>
      %cst_29 = arith.constant dense<0.000000e+00> : vector<8x32xf32>
      %49 = tpu.matmul %47, %48, %cst_29 {dimension_numbers = #tpu.dot_dimension_numbers<[1], [0], [0], [1], [0, 0, 1, 1], [], []>} : vector<8x128xbf16>, vector<128x32xbf16>, vector<8x32xf32> -> vector<8x32xf32>
      %c0_30 = arith.constant 0 : index
      %c0_31 = arith.constant 0 : index
      %50 = vector.load %arg3[%c0_30, %c0_31] : memref<1x32xf32, #tpu.memory_space<vmem>>, vector<1x32xf32>
      %51 = vector.broadcast %50 : vector<1x32xf32> to vector<8x32xf32>
      %52 = arith.addf %49, %51 : vector<8x32xf32>
      %53 = arith.truncf %52 : vector<8x32xf32> to vector<8x32xbf16>
      %c0_32 = arith.constant 0 : index
      %c0_33 = arith.constant 0 : index
      %54 = vector.load %arg7[%c0_32, %c0_33] : memref<8x32xbf16, #tpu.memory_space<vmem>>, vector<8x32xbf16>
      tpu.vector_store %arg7[%c0_32, %c0_33], %53 {strides = array<i32>} : memref<8x32xbf16, #tpu.memory_space<vmem>>, vector<8x32xbf16>,
      %cst_34 = arith.constant 0xFF800000 : f32
      %55 = vector.broadcast %cst_34 : f32 to vector<8x1xf32>
      %c0_35 = arith.constant 0 : index
      %c0_36 = arith.constant 0 : index
      %56 = vector.load %arg8[%c0_35, %c0_36] : memref<8x1xf32, #tpu.memory_space<vmem>>, vector<8x1xf32>
      tpu.vector_store %arg8[%c0_35, %c0_36], %55 {strides = array<i32>} : memref<8x1xf32, #tpu.memory_space<vmem>>, vector<8x1xf32>,
      %cst_37 = arith.constant 0.000000e+00 : f32
      %57 = vector.broadcast %cst_37 : f32 to vector<8x1xf32>
      %c0_38 = arith.constant 0 : index
      %c0_39 = arith.constant 0 : index
      %58 = vector.load %arg9[%c0_38, %c0_39] : memref<8x1xf32, #tpu.memory_space<vmem>>, vector<8x1xf32>
      tpu.vector_store %arg9[%c0_38, %c0_39], %57 {strides = array<i32>} : memref<8x1xf32, #tpu.memory_space<vmem>>, vector<8x1xf32>,
      %cst_40 = arith.constant 0.000000e+00 : f32
      %59 = vector.broadcast %cst_40 : f32 to vector<8x1xf32>
      %c0_41 = arith.constant 0 : index
      %c0_42 = arith.constant 0 : index
      %60 = vector.load %arg10[%c0_41, %c0_42] : memref<8x1xf32, #tpu.memory_space<vmem>>, vector<8x1xf32>
      tpu.vector_store %arg10[%c0_41, %c0_42], %59 {strides = array<i32>} : memref<8x1xf32, #tpu.memory_space<vmem>>, vector<8x1xf32>,
    } else {
    }
    %c0 = arith.constant 0 : index
    %c0_1 = arith.constant 0 : index
    %3 = vector.load %arg7[%c0, %c0_1] : memref<8x32xbf16, #tpu.memory_space<vmem>>, vector<8x32xbf16>
    %c0_2 = arith.constant 0 : index
    %c0_3 = arith.constant 0 : index
    %4 = vector.load %arg5[%c0_2, %c0_3] : memref<32x384xbf16, #tpu.memory_space<vmem>>, vector<32x384xbf16>
    %cst = arith.constant dense<0.000000e+00> : vector<8x384xf32>
    %5 = tpu.matmul %3, %4, %cst {dimension_numbers = #tpu.dot_dimension_numbers<[1], [0], [0], [1], [0, 0, 1, 1], [], []>} : vector<8x32xbf16>, vector<32x384xbf16>, vector<8x384xf32> -> vector<8x384xf32>
    %c384_i32 = arith.constant 384 : i32
    %6 = arith.muli %arg0, %c384_i32 : i32
    %7 = tpu.iota {dimensions = array<i32: 1>} : vector<8x384xi32>
    %8 = vector.broadcast %6 : i32 to vector<8x384xi32>
    %9 = arith.addi %8, %7 : vector<8x384xi32>
    %c1_i32 = arith.constant 1 : i32
    %10 = vector.broadcast %c1_i32 : i32 to vector<8x384xi32>
    %11 = arith.cmpi sge, %9, %10 : vector<8x384xi32>
    %c257_i32 = arith.constant 257 : i32
    %12 = vector.broadcast %c257_i32 : i32 to vector<8x384xi32>
    %13 = arith.cmpi slt, %9, %12 : vector<8x384xi32>
    %14 = arith.andi %11, %13 : vector<8x384xi1>
    %cst_4 = arith.constant 0xFF800000 : f32
    %15 = vector.broadcast %cst_4 : f32 to vector<8x384xf32>
    %16 = arith.select %14, %5, %15 : vector<8x384xi1>, vector<8x384xf32>
    %c0_5 = arith.constant 0 : index
    %c0_6 = arith.constant 0 : index
    %17 = vector.load %arg8[%c0_5, %c0_6] : memref<8x1xf32, #tpu.memory_space<vmem>>, vector<8x1xf32>
    %cst_7 = arith.constant dense<0xFF800000> : vector<8xf32>
    %18 = vector.multi_reduction <maximumf>, %16, %cst_7 [1] : vector<8x384xf32> to vector<8xf32>
    %19 = vector.shape_cast %18 : vector<8xf32> to vector<8x1xf32>
    %20 = arith.maximumf %17, %19 : vector<8x1xf32>
    %21 = arith.subf %17, %20 : vector<8x1xf32>
    %22 = math.exp %21 : vector<8x1xf32>
    %c0_8 = arith.constant 0 : index
    %c0_9 = arith.constant 0 : index
    %23 = vector.load %arg9[%c0_8, %c0_9] : memref<8x1xf32, #tpu.memory_space<vmem>>, vector<8x1xf32>
    %24 = arith.mulf %22, %23 : vector<8x1xf32>
    %25 = vector.broadcast %20 : vector<8x1xf32> to vector<8x384xf32>
    %26 = arith.subf %16, %25 : vector<8x384xf32>
    %27 = math.exp %26 : vector<8x384xf32>
    %cst_10 = arith.constant dense<0.000000e+00> : vector<8xf32>
    %28 = vector.multi_reduction <add>, %27, %cst_10 [1] : vector<8x384xf32> to vector<8xf32>
    %29 = vector.shape_cast %28 : vector<8xf32> to vector<8x1xf32>
    %30 = arith.addf %24, %29 : vector<8x1xf32>
    %c0_11 = arith.constant 0 : index
    %c0_12 = arith.constant 0 : index
    %31 = vector.load %arg9[%c0_11, %c0_12] : memref<8x1xf32, #tpu.memory_space<vmem>>, vector<8x1xf32>
    tpu.vector_store %arg9[%c0_11, %c0_12], %30 {strides = array<i32>} : memref<8x1xf32, #tpu.memory_space<vmem>>, vector<8x1xf32>,
    %c0_13 = arith.constant 0 : index
    %c0_14 = arith.constant 0 : index
    %32 = vector.load %arg8[%c0_13, %c0_14] : memref<8x1xf32, #tpu.memory_space<vmem>>, vector<8x1xf32>
    tpu.vector_store %arg8[%c0_13, %c0_14], %20 {strides = array<i32>} : memref<8x1xf32, #tpu.memory_space<vmem>>, vector<8x1xf32>,
    %c0_15 = arith.constant 0 : index
    %c0_16 = arith.constant 0 : index
    %33 = vector.load %arg4[%c0_15, %c0_16] : memref<8x1xi32, #tpu.memory_space<vmem>>, vector<8x1xi32>
    %34 = vector.broadcast %33 : vector<8x1xi32> to vector<8x384xi32>
    %35 = arith.cmpi eq, %9, %34 : vector<8x384xi32>
    %c0_17 = arith.constant 0 : index
    %c0_18 = arith.constant 0 : index
    %36 = vector.load %arg10[%c0_17, %c0_18] : memref<8x1xf32, #tpu.memory_space<vmem>>, vector<8x1xf32>
    %cst_19 = arith.constant 0.000000e+00 : f32
    %37 = vector.broadcast %cst_19 : f32 to vector<8x384xf32>
    %38 = arith.select %35, %16, %37 : vector<8x384xi1>, vector<8x384xf32>
    %cst_20 = arith.constant dense<0.000000e+00> : vector<8xf32>
    %39 = vector.multi_reduction <add>, %38, %cst_20 [1] : vector<8x384xf32> to vector<8xf32>
    %40 = vector.shape_cast %39 : vector<8xf32> to vector<8x1xf32>
    %41 = arith.addf %36, %40 : vector<8x1xf32>
    %c0_21 = arith.constant 0 : index
    %c0_22 = arith.constant 0 : index
    %42 = vector.load %arg10[%c0_21, %c0_22] : memref<8x1xf32, #tpu.memory_space<vmem>>, vector<8x1xf32>
    tpu.vector_store %arg10[%c0_21, %c0_22], %41 {strides = array<i32>} : memref<8x1xf32, #tpu.memory_space<vmem>>, vector<8x1xf32>,
    %c0_i32_23 = arith.constant 0 : i32
    %43 = arith.cmpi eq, %arg0, %c0_i32_23 : i32
    %44 = arith.extui %43 : i1 to i32
    %c0_i32_24 = arith.constant 0 : i32
    %45 = arith.cmpi ne, %44, %c0_i32_24 : i32
    scf.if %45 {
      %c0_25 = arith.constant 0 : index
      %c0_26 = arith.constant 0 : index
      %46 = vector.load %arg8[%c0_25, %c0_26] : memref<8x1xf32, #tpu.memory_space<vmem>>, vector<8x1xf32>
      %c0_27 = arith.constant 0 : index
      %c0_28 = arith.constant 0 : index
      %47 = vector.load %arg9[%c0_27, %c0_28] : memref<8x1xf32, #tpu.memory_space<vmem>>, vector<8x1xf32>
      %48 = math.log %47 : vector<8x1xf32>
      %49 = arith.addf %46, %48 : vector<8x1xf32>
      %c0_29 = arith.constant 0 : index
      %c0_30 = arith.constant 0 : index
      %50 = vector.load %arg10[%c0_29, %c0_30] : memref<8x1xf32, #tpu.memory_space<vmem>>, vector<8x1xf32>
      %51 = arith.subf %49, %50 : vector<8x1xf32>
      %c0_31 = arith.constant 0 : index
      %c0_32 = arith.constant 0 : index
      %52 = vector.load %arg6[%c0_31, %c0_32] : memref<8x1xf32, #tpu.memory_space<vmem>>, vector<8x1xf32>
      tpu.vector_store %arg6[%c0_31, %c0_32], %51 {strides = array<i32>} : memref<8x1xf32, #tpu.memory_space<vmem>>, vector<8x1xf32>,
    } else {
    }
    return
  }
  func.func @transform_0(%arg0: i32) -> (i32, i32) {
    %c0_i32 = arith.constant 0 : i32
    %c0_i32_0 = arith.constant 0 : i32
    %c0_i32_1 = arith.constant 0 : i32
    return %c0_i32, %c0_i32_0 : i32, i32
  }
  func.func @transform_1(%arg0: i32) -> (i32, i32) {
    %c0_i32 = arith.constant 0 : i32
    %c0_i32_0 = arith.constant 0 : i32
    %c0_i32_1 = arith.constant 0 : i32
    return %c0_i32, %c0_i32_0 : i32, i32
  }
  func.func @transform_2(%arg0: i32) -> (i32, i32) {
    %c0_i32 = arith.constant 0 : i32
    %c0_i32_0 = arith.constant 0 : i32
    %c0_i32_1 = arith.constant 0 : i32
    return %c0_i32, %c0_i32_0 : i32, i32
  }
  func.func @transform_3(%arg0: i32) -> (i32, i32) {
    %c0_i32 = arith.constant 0 : i32
    %c0_i32_0 = arith.constant 0 : i32
    %c0_i32_1 = arith.constant 0 : i32
    return %c0_i32, %c0_i32_0 : i32, i32
  }
  func.func @transform_4(%arg0: i32) -> (i32, i32) {
    %c0_i32 = arith.constant 0 : i32
    %c0_i32_0 = arith.constant 0 : i32
    return %c0_i32, %arg0 : i32, i32
  }
  func.func @transform_5(%arg0: i32) -> (i32, i32) {
    %c0_i32 = arith.constant 0 : i32
    %c0_i32_0 = arith.constant 0 : i32
    %c0_i32_1 = arith.constant 0 : i32
    return %c0_i32, %c0_i32_0 : i32, i32
  }
}

module attributes {stable_mosaic.version = 11 : i64} {
  func.func @kernel(%arg0: i32, %arg1: memref<8x8x384xbf16, #tpu.memory_space<vmem>>, %arg2: memref<8x1xi32, #tpu.memory_space<vmem>>, %arg3: memref<128x384xbf16, #tpu.memory_space<vmem>>, %arg4: memref<1x128xf32, #tpu.memory_space<vmem>>, %arg5: memref<128x384xbf16, #tpu.memory_space<vmem>>, %arg6: memref<1x384xf32, #tpu.memory_space<vmem>>, %arg7: memref<128x384xbf16, #tpu.memory_space<vmem>>, %arg8: memref<1x128xf32, #tpu.memory_space<vmem>>, %arg9: memref<8x128xf32, #tpu.memory_space<vmem>>, %arg10: memref<2x8x128xf32, #tpu.memory_space<vmem>>) attributes {dimension_semantics = [#tpu.dimension_semantics<arbitrary>], iteration_bounds = array<i64: 1>, scalar_prefetch = 0 : i64, scratch_operands = 1 : i64, tpu.core_type = #tpu.core_type<tc>, window_params = [{transform_indices = @transform_0, window_bounds = array<i64: 8, 8, 384>}, {pipeline_mode = #tpu.pipeline_mode<synchronous>, transform_indices = @transform_1, window_bounds = array<i64: 8, 1>}, {pipeline_mode = #tpu.pipeline_mode<synchronous>, transform_indices = @transform_2, window_bounds = array<i64: 128, 384>}, {pipeline_mode = #tpu.pipeline_mode<synchronous>, transform_indices = @transform_3, window_bounds = array<i64: 1, 128>}, {pipeline_mode = #tpu.pipeline_mode<synchronous>, transform_indices = @transform_4, window_bounds = array<i64: 128, 384>}, {pipeline_mode = #tpu.pipeline_mode<synchronous>, transform_indices = @transform_5, window_bounds = array<i64: 1, 384>}, {pipeline_mode = #tpu.pipeline_mode<synchronous>, transform_indices = @transform_6, window_bounds = array<i64: 128, 384>}, {pipeline_mode = #tpu.pipeline_mode<synchronous>, transform_indices = @transform_7, window_bounds = array<i64: 1, 128>}, {pipeline_mode = #tpu.pipeline_mode<synchronous>, transform_indices = @transform_8, window_bounds = array<i64: 8, 128>}]} {
    %c0_i32 = arith.constant 0 : i32
    %0 = arith.cmpi eq, %arg0, %c0_i32 : i32
    %1 = arith.extui %0 : i1 to i32
    %c0_i32_0 = arith.constant 0 : i32
    %2 = arith.cmpi ne, %1, %c0_i32_0 : i32
    scf.if %2 {
      %cst_125 = arith.constant 0.000000e+00 : f32
      %638 = vector.broadcast %cst_125 : f32 to vector<2x8x128xf32>
      %c0_126 = arith.constant 0 : index
      %c0_127 = arith.constant 0 : index
      %c0_128 = arith.constant 0 : index
      %639 = vector.load %arg10[%c0_126, %c0_127, %c0_128] : memref<2x8x128xf32, #tpu.memory_space<vmem>>, vector<2x8x128xf32>
      tpu.vector_store %arg10[%c0_126, %c0_127, %c0_128], %638 {strides = array<i32>} : memref<2x8x128xf32, #tpu.memory_space<vmem>>, vector<2x8x128xf32>,
      %cst_129 = arith.constant 0.000000e+00 : f32
      %640 = vector.broadcast %cst_129 : f32 to vector<8x128xf32>
      %c0_130 = arith.constant 0 : index
      %c0_131 = arith.constant 0 : index
      %641 = vector.load %arg9[%c0_130, %c0_131] : memref<8x128xf32, #tpu.memory_space<vmem>>, vector<8x128xf32>
      tpu.vector_store %arg9[%c0_130, %c0_131], %640 {strides = array<i32>} : memref<8x128xf32, #tpu.memory_space<vmem>>, vector<8x128xf32>,
    } else {
    }
    %c0 = arith.constant 0 : index
    %c0_1 = arith.constant 0 : index
    %3 = vector.load %arg3[%c0, %c0_1] : memref<128x384xbf16, #tpu.memory_space<vmem>>, vector<128x384xbf16>
    %c0_2 = arith.constant 0 : index
    %c0_3 = arith.constant 0 : index
    %4 = vector.load %arg4[%c0_2, %c0_3] : memref<1x128xf32, #tpu.memory_space<vmem>>, vector<1x128xf32>
    %c0_4 = arith.constant 0 : index
    %c0_5 = arith.constant 0 : index
    %5 = vector.load %arg5[%c0_4, %c0_5] : memref<128x384xbf16, #tpu.memory_space<vmem>>, vector<128x384xbf16>
    %c0_6 = arith.constant 0 : index
    %c0_7 = arith.constant 0 : index
    %6 = vector.load %arg6[%c0_6, %c0_7] : memref<1x384xf32, #tpu.memory_space<vmem>>, vector<1x384xf32>
    %c0_8 = arith.constant 0 : index
    %c0_9 = arith.constant 0 : index
    %7 = vector.load %arg7[%c0_8, %c0_9] : memref<128x384xbf16, #tpu.memory_space<vmem>>, vector<128x384xbf16>
    %c0_10 = arith.constant 0 : index
    %c0_11 = arith.constant 0 : index
    %8 = vector.load %arg8[%c0_10, %c0_11] : memref<1x128xf32, #tpu.memory_space<vmem>>, vector<1x128xf32>
    %c0_12 = arith.constant 0 : index
    %c0_13 = arith.constant 0 : index
    %9 = vector.load %arg2[%c0_12, %c0_13] : memref<8x1xi32, #tpu.memory_space<vmem>>, vector<8x1xi32>
    %c0_14 = arith.constant 0 : index
    %c0_15 = arith.constant 0 : index
    %c0_16 = arith.constant 0 : index
    %10 = vector.load %arg10[%c0_14, %c0_15, %c0_16] : memref<2x8x128xf32, #tpu.memory_space<vmem>>, vector<1x8x128xf32>
    %11 = vector.shape_cast %10 : vector<1x8x128xf32> to vector<8x128xf32>
    %c1 = arith.constant 1 : index
    %c0_17 = arith.constant 0 : index
    %c0_18 = arith.constant 0 : index
    %12 = vector.load %arg10[%c1, %c0_17, %c0_18] : memref<2x8x128xf32, #tpu.memory_space<vmem>>, vector<1x8x128xf32>
    %13 = vector.shape_cast %12 : vector<1x8x128xf32> to vector<8x128xf32>
    %c0_19 = arith.constant 0 : index
    %c0_20 = arith.constant 0 : index
    %14 = vector.load %arg9[%c0_19, %c0_20] : memref<8x128xf32, #tpu.memory_space<vmem>>, vector<8x128xf32>
    %c0_i32_21 = arith.constant 0 : i32
    %c8_i32 = arith.constant 8 : i32
    %15 = arith.muli %arg0, %c8_i32 : i32
    %16 = arith.addi %15, %c0_i32_21 : i32
    %17 = arith.index_cast %c0_i32_21 : i32 to index
    %c0_22 = arith.constant 0 : index
    %c0_23 = arith.constant 0 : index
    %18 = vector.load %arg1[%17, %c0_22, %c0_23] : memref<8x8x384xbf16, #tpu.memory_space<vmem>>, vector<1x8x384xbf16>
    %19 = vector.shape_cast %18 : vector<1x8x384xbf16> to vector<8x384xbf16>
    %20 = arith.truncf %11 : vector<8x128xf32> to vector<8x128xbf16>
    %cst = arith.constant dense<0.000000e+00> : vector<8x384xf32>
    %21 = tpu.matmul %20, %3, %cst {dimension_numbers = #tpu.dot_dimension_numbers<[1], [0], [0], [1], [0, 0, 1, 1], [], []>} : vector<8x128xbf16>, vector<128x384xbf16>, vector<8x384xf32> -> vector<8x384xf32>
    %22 = vector.extract_strided_slice %19 {offsets = [0, 0], sizes = [8, 128], strides = [1, 1]} : vector<8x384xbf16> to vector<8x128xbf16>
    %23 = vector.extract_strided_slice %21 {offsets = [0, 0], sizes = [8, 128], strides = [1, 1]} : vector<8x384xf32> to vector<8x128xf32>
    %24 = arith.extf %22 : vector<8x128xbf16> to vector<8x128xf32>
    %25 = arith.addf %24, %23 : vector<8x128xf32>
    %26 = arith.negf %25 : vector<8x128xf32>
    %27 = math.exp %26 : vector<8x128xf32>
    %cst_24 = arith.constant 1.000000e+00 : f32
    %28 = vector.broadcast %cst_24 : f32 to vector<8x128xf32>
    %29 = arith.addf %28, %27 : vector<8x128xf32>
    %30 = arith.divf %28, %29 : vector<8x128xf32>
    %31 = vector.extract_strided_slice %19 {offsets = [0, 128], sizes = [8, 128], strides = [1, 1]} : vector<8x384xbf16> to vector<8x128xbf16>
    %32 = vector.extract_strided_slice %21 {offsets = [0, 128], sizes = [8, 128], strides = [1, 1]} : vector<8x384xf32> to vector<8x128xf32>
    %33 = arith.extf %31 : vector<8x128xbf16> to vector<8x128xf32>
    %34 = arith.addf %33, %32 : vector<8x128xf32>
    %35 = arith.negf %34 : vector<8x128xf32>
    %36 = math.exp %35 : vector<8x128xf32>
    %cst_25 = arith.constant 1.000000e+00 : f32
    %37 = vector.broadcast %cst_25 : f32 to vector<8x128xf32>
    %38 = arith.addf %37, %36 : vector<8x128xf32>
    %39 = arith.divf %37, %38 : vector<8x128xf32>
    %40 = vector.extract_strided_slice %19 {offsets = [0, 256], sizes = [8, 128], strides = [1, 1]} : vector<8x384xbf16> to vector<8x128xbf16>
    %41 = vector.extract_strided_slice %21 {offsets = [0, 256], sizes = [8, 128], strides = [1, 1]} : vector<8x384xf32> to vector<8x128xf32>
    %42 = vector.broadcast %4 : vector<1x128xf32> to vector<8x128xf32>
    %43 = arith.addf %41, %42 : vector<8x128xf32>
    %44 = arith.mulf %30, %43 : vector<8x128xf32>
    %45 = arith.extf %40 : vector<8x128xbf16> to vector<8x128xf32>
    %46 = arith.addf %45, %44 : vector<8x128xf32>
    %47 = math.tanh %46 : vector<8x128xf32>
    %cst_26 = arith.constant 1.000000e+00 : f32
    %48 = vector.broadcast %cst_26 : f32 to vector<8x128xf32>
    %49 = arith.subf %48, %39 : vector<8x128xf32>
    %50 = arith.mulf %49, %47 : vector<8x128xf32>
    %51 = arith.mulf %39, %11 : vector<8x128xf32>
    %52 = arith.addf %50, %51 : vector<8x128xf32>
    %53 = arith.truncf %52 : vector<8x128xf32> to vector<8x128xbf16>
    %cst_27 = arith.constant dense<0.000000e+00> : vector<8x384xf32>
    %54 = tpu.matmul %53, %5, %cst_27 {dimension_numbers = #tpu.dot_dimension_numbers<[1], [0], [0], [1], [0, 0, 1, 1], [], []>} : vector<8x128xbf16>, vector<128x384xbf16>, vector<8x384xf32> -> vector<8x384xf32>
    %55 = vector.broadcast %6 : vector<1x384xf32> to vector<8x384xf32>
    %56 = arith.addf %54, %55 : vector<8x384xf32>
    %57 = arith.truncf %13 : vector<8x128xf32> to vector<8x128xbf16>
    %cst_28 = arith.constant dense<0.000000e+00> : vector<8x384xf32>
    %58 = tpu.matmul %57, %7, %cst_28 {dimension_numbers = #tpu.dot_dimension_numbers<[1], [0], [0], [1], [0, 0, 1, 1], [], []>} : vector<8x128xbf16>, vector<128x384xbf16>, vector<8x384xf32> -> vector<8x384xf32>
    %59 = vector.extract_strided_slice %56 {offsets = [0, 0], sizes = [8, 128], strides = [1, 1]} : vector<8x384xf32> to vector<8x128xf32>
    %60 = vector.extract_strided_slice %58 {offsets = [0, 0], sizes = [8, 128], strides = [1, 1]} : vector<8x384xf32> to vector<8x128xf32>
    %61 = arith.addf %59, %60 : vector<8x128xf32>
    %62 = arith.negf %61 : vector<8x128xf32>
    %63 = math.exp %62 : vector<8x128xf32>
    %cst_29 = arith.constant 1.000000e+00 : f32
    %64 = vector.broadcast %cst_29 : f32 to vector<8x128xf32>
    %65 = arith.addf %64, %63 : vector<8x128xf32>
    %66 = arith.divf %64, %65 : vector<8x128xf32>
    %67 = vector.extract_strided_slice %56 {offsets = [0, 128], sizes = [8, 128], strides = [1, 1]} : vector<8x384xf32> to vector<8x128xf32>
    %68 = vector.extract_strided_slice %58 {offsets = [0, 128], sizes = [8, 128], strides = [1, 1]} : vector<8x384xf32> to vector<8x128xf32>
    %69 = arith.addf %67, %68 : vector<8x128xf32>
    %70 = arith.negf %69 : vector<8x128xf32>
    %71 = math.exp %70 : vector<8x128xf32>
    %cst_30 = arith.constant 1.000000e+00 : f32
    %72 = vector.broadcast %cst_30 : f32 to vector<8x128xf32>
    %73 = arith.addf %72, %71 : vector<8x128xf32>
    %74 = arith.divf %72, %73 : vector<8x128xf32>
    %75 = vector.extract_strided_slice %56 {offsets = [0, 256], sizes = [8, 128], strides = [1, 1]} : vector<8x384xf32> to vector<8x128xf32>
    %76 = vector.extract_strided_slice %58 {offsets = [0, 256], sizes = [8, 128], strides = [1, 1]} : vector<8x384xf32> to vector<8x128xf32>
    %77 = vector.broadcast %8 : vector<1x128xf32> to vector<8x128xf32>
    %78 = arith.addf %76, %77 : vector<8x128xf32>
    %79 = arith.mulf %66, %78 : vector<8x128xf32>
    %80 = arith.addf %75, %79 : vector<8x128xf32>
    %81 = math.tanh %80 : vector<8x128xf32>
    %cst_31 = arith.constant 1.000000e+00 : f32
    %82 = vector.broadcast %cst_31 : f32 to vector<8x128xf32>
    %83 = arith.subf %82, %74 : vector<8x128xf32>
    %84 = arith.mulf %83, %81 : vector<8x128xf32>
    %85 = arith.mulf %74, %13 : vector<8x128xf32>
    %86 = arith.addf %84, %85 : vector<8x128xf32>
    %87 = vector.broadcast %16 : i32 to vector<8x1xi32>
    %88 = arith.cmpi eq, %9, %87 : vector<8x1xi32>
    %89 = vector.shape_cast %88 : vector<8x1xi1> to vector<8x1xi1>
    %90 = vector.broadcast %89 : vector<8x1xi1> to vector<8x128xi1>
    %91 = arith.select %90, %86, %14 : vector<8x128xi1>, vector<8x128xf32>
    %c1_i32 = arith.constant 1 : i32
    %c8_i32_32 = arith.constant 8 : i32
    %92 = arith.muli %arg0, %c8_i32_32 : i32
    %93 = arith.addi %92, %c1_i32 : i32
    %94 = arith.index_cast %c1_i32 : i32 to index
    %c0_33 = arith.constant 0 : index
    %c0_34 = arith.constant 0 : index
    %95 = vector.load %arg1[%94, %c0_33, %c0_34] : memref<8x8x384xbf16, #tpu.memory_space<vmem>>, vector<1x8x384xbf16>
    %96 = vector.shape_cast %95 : vector<1x8x384xbf16> to vector<8x384xbf16>
    %97 = arith.truncf %52 : vector<8x128xf32> to vector<8x128xbf16>
    %cst_35 = arith.constant dense<0.000000e+00> : vector<8x384xf32>
    %98 = tpu.matmul %97, %3, %cst_35 {dimension_numbers = #tpu.dot_dimension_numbers<[1], [0], [0], [1], [0, 0, 1, 1], [], []>} : vector<8x128xbf16>, vector<128x384xbf16>, vector<8x384xf32> -> vector<8x384xf32>
    %99 = vector.extract_strided_slice %96 {offsets = [0, 0], sizes = [8, 128], strides = [1, 1]} : vector<8x384xbf16> to vector<8x128xbf16>
    %100 = vector.extract_strided_slice %98 {offsets = [0, 0], sizes = [8, 128], strides = [1, 1]} : vector<8x384xf32> to vector<8x128xf32>
    %101 = arith.extf %99 : vector<8x128xbf16> to vector<8x128xf32>
    %102 = arith.addf %101, %100 : vector<8x128xf32>
    %103 = arith.negf %102 : vector<8x128xf32>
    %104 = math.exp %103 : vector<8x128xf32>
    %cst_36 = arith.constant 1.000000e+00 : f32
    %105 = vector.broadcast %cst_36 : f32 to vector<8x128xf32>
    %106 = arith.addf %105, %104 : vector<8x128xf32>
    %107 = arith.divf %105, %106 : vector<8x128xf32>
    %108 = vector.extract_strided_slice %96 {offsets = [0, 128], sizes = [8, 128], strides = [1, 1]} : vector<8x384xbf16> to vector<8x128xbf16>
    %109 = vector.extract_strided_slice %98 {offsets = [0, 128], sizes = [8, 128], strides = [1, 1]} : vector<8x384xf32> to vector<8x128xf32>
    %110 = arith.extf %108 : vector<8x128xbf16> to vector<8x128xf32>
    %111 = arith.addf %110, %109 : vector<8x128xf32>
    %112 = arith.negf %111 : vector<8x128xf32>
    %113 = math.exp %112 : vector<8x128xf32>
    %cst_37 = arith.constant 1.000000e+00 : f32
    %114 = vector.broadcast %cst_37 : f32 to vector<8x128xf32>
    %115 = arith.addf %114, %113 : vector<8x128xf32>
    %116 = arith.divf %114, %115 : vector<8x128xf32>
    %117 = vector.extract_strided_slice %96 {offsets = [0, 256], sizes = [8, 128], strides = [1, 1]} : vector<8x384xbf16> to vector<8x128xbf16>
    %118 = vector.extract_strided_slice %98 {offsets = [0, 256], sizes = [8, 128], strides = [1, 1]} : vector<8x384xf32> to vector<8x128xf32>
    %119 = vector.broadcast %4 : vector<1x128xf32> to vector<8x128xf32>
    %120 = arith.addf %118, %119 : vector<8x128xf32>
    %121 = arith.mulf %107, %120 : vector<8x128xf32>
    %122 = arith.extf %117 : vector<8x128xbf16> to vector<8x128xf32>
    %123 = arith.addf %122, %121 : vector<8x128xf32>
    %124 = math.tanh %123 : vector<8x128xf32>
    %cst_38 = arith.constant 1.000000e+00 : f32
    %125 = vector.broadcast %cst_38 : f32 to vector<8x128xf32>
    %126 = arith.subf %125, %116 : vector<8x128xf32>
    %127 = arith.mulf %126, %124 : vector<8x128xf32>
    %128 = arith.mulf %116, %52 : vector<8x128xf32>
    %129 = arith.addf %127, %128 : vector<8x128xf32>
    %130 = arith.truncf %129 : vector<8x128xf32> to vector<8x128xbf16>
    %cst_39 = arith.constant dense<0.000000e+00> : vector<8x384xf32>
    %131 = tpu.matmul %130, %5, %cst_39 {dimension_numbers = #tpu.dot_dimension_numbers<[1], [0], [0], [1], [0, 0, 1, 1], [], []>} : vector<8x128xbf16>, vector<128x384xbf16>, vector<8x384xf32> -> vector<8x384xf32>
    %132 = vector.broadcast %6 : vector<1x384xf32> to vector<8x384xf32>
    %133 = arith.addf %131, %132 : vector<8x384xf32>
    %134 = arith.truncf %86 : vector<8x128xf32> to vector<8x128xbf16>
    %cst_40 = arith.constant dense<0.000000e+00> : vector<8x384xf32>
    %135 = tpu.matmul %134, %7, %cst_40 {dimension_numbers = #tpu.dot_dimension_numbers<[1], [0], [0], [1], [0, 0, 1, 1], [], []>} : vector<8x128xbf16>, vector<128x384xbf16>, vector<8x384xf32> -> vector<8x384xf32>
    %136 = vector.extract_strided_slice %133 {offsets = [0, 0], sizes = [8, 128], strides = [1, 1]} : vector<8x384xf32> to vector<8x128xf32>
    %137 = vector.extract_strided_slice %135 {offsets = [0, 0], sizes = [8, 128], strides = [1, 1]} : vector<8x384xf32> to vector<8x128xf32>
    %138 = arith.addf %136, %137 : vector<8x128xf32>
    %139 = arith.negf %138 : vector<8x128xf32>
    %140 = math.exp %139 : vector<8x128xf32>
    %cst_41 = arith.constant 1.000000e+00 : f32
    %141 = vector.broadcast %cst_41 : f32 to vector<8x128xf32>
    %142 = arith.addf %141, %140 : vector<8x128xf32>
    %143 = arith.divf %141, %142 : vector<8x128xf32>
    %144 = vector.extract_strided_slice %133 {offsets = [0, 128], sizes = [8, 128], strides = [1, 1]} : vector<8x384xf32> to vector<8x128xf32>
    %145 = vector.extract_strided_slice %135 {offsets = [0, 128], sizes = [8, 128], strides = [1, 1]} : vector<8x384xf32> to vector<8x128xf32>
    %146 = arith.addf %144, %145 : vector<8x128xf32>
    %147 = arith.negf %146 : vector<8x128xf32>
    %148 = math.exp %147 : vector<8x128xf32>
    %cst_42 = arith.constant 1.000000e+00 : f32
    %149 = vector.broadcast %cst_42 : f32 to vector<8x128xf32>
    %150 = arith.addf %149, %148 : vector<8x128xf32>
    %151 = arith.divf %149, %150 : vector<8x128xf32>
    %152 = vector.extract_strided_slice %133 {offsets = [0, 256], sizes = [8, 128], strides = [1, 1]} : vector<8x384xf32> to vector<8x128xf32>
    %153 = vector.extract_strided_slice %135 {offsets = [0, 256], sizes = [8, 128], strides = [1, 1]} : vector<8x384xf32> to vector<8x128xf32>
    %154 = vector.broadcast %8 : vector<1x128xf32> to vector<8x128xf32>
    %155 = arith.addf %153, %154 : vector<8x128xf32>
    %156 = arith.mulf %143, %155 : vector<8x128xf32>
    %157 = arith.addf %152, %156 : vector<8x128xf32>
    %158 = math.tanh %157 : vector<8x128xf32>
    %cst_43 = arith.constant 1.000000e+00 : f32
    %159 = vector.broadcast %cst_43 : f32 to vector<8x128xf32>
    %160 = arith.subf %159, %151 : vector<8x128xf32>
    %161 = arith.mulf %160, %158 : vector<8x128xf32>
    %162 = arith.mulf %151, %86 : vector<8x128xf32>
    %163 = arith.addf %161, %162 : vector<8x128xf32>
    %164 = vector.broadcast %93 : i32 to vector<8x1xi32>
    %165 = arith.cmpi eq, %9, %164 : vector<8x1xi32>
    %166 = vector.shape_cast %165 : vector<8x1xi1> to vector<8x1xi1>
    %167 = vector.broadcast %166 : vector<8x1xi1> to vector<8x128xi1>
    %168 = arith.select %167, %163, %91 : vector<8x128xi1>, vector<8x128xf32>
    %c2_i32 = arith.constant 2 : i32
    %c8_i32_44 = arith.constant 8 : i32
    %169 = arith.muli %arg0, %c8_i32_44 : i32
    %170 = arith.addi %169, %c2_i32 : i32
    %171 = arith.index_cast %c2_i32 : i32 to index
    %c0_45 = arith.constant 0 : index
    %c0_46 = arith.constant 0 : index
    %172 = vector.load %arg1[%171, %c0_45, %c0_46] : memref<8x8x384xbf16, #tpu.memory_space<vmem>>, vector<1x8x384xbf16>
    %173 = vector.shape_cast %172 : vector<1x8x384xbf16> to vector<8x384xbf16>
    %174 = arith.truncf %129 : vector<8x128xf32> to vector<8x128xbf16>
    %cst_47 = arith.constant dense<0.000000e+00> : vector<8x384xf32>
    %175 = tpu.matmul %174, %3, %cst_47 {dimension_numbers = #tpu.dot_dimension_numbers<[1], [0], [0], [1], [0, 0, 1, 1], [], []>} : vector<8x128xbf16>, vector<128x384xbf16>, vector<8x384xf32> -> vector<8x384xf32>
    %176 = vector.extract_strided_slice %173 {offsets = [0, 0], sizes = [8, 128], strides = [1, 1]} : vector<8x384xbf16> to vector<8x128xbf16>
    %177 = vector.extract_strided_slice %175 {offsets = [0, 0], sizes = [8, 128], strides = [1, 1]} : vector<8x384xf32> to vector<8x128xf32>
    %178 = arith.extf %176 : vector<8x128xbf16> to vector<8x128xf32>
    %179 = arith.addf %178, %177 : vector<8x128xf32>
    %180 = arith.negf %179 : vector<8x128xf32>
    %181 = math.exp %180 : vector<8x128xf32>
    %cst_48 = arith.constant 1.000000e+00 : f32
    %182 = vector.broadcast %cst_48 : f32 to vector<8x128xf32>
    %183 = arith.addf %182, %181 : vector<8x128xf32>
    %184 = arith.divf %182, %183 : vector<8x128xf32>
    %185 = vector.extract_strided_slice %173 {offsets = [0, 128], sizes = [8, 128], strides = [1, 1]} : vector<8x384xbf16> to vector<8x128xbf16>
    %186 = vector.extract_strided_slice %175 {offsets = [0, 128], sizes = [8, 128], strides = [1, 1]} : vector<8x384xf32> to vector<8x128xf32>
    %187 = arith.extf %185 : vector<8x128xbf16> to vector<8x128xf32>
    %188 = arith.addf %187, %186 : vector<8x128xf32>
    %189 = arith.negf %188 : vector<8x128xf32>
    %190 = math.exp %189 : vector<8x128xf32>
    %cst_49 = arith.constant 1.000000e+00 : f32
    %191 = vector.broadcast %cst_49 : f32 to vector<8x128xf32>
    %192 = arith.addf %191, %190 : vector<8x128xf32>
    %193 = arith.divf %191, %192 : vector<8x128xf32>
    %194 = vector.extract_strided_slice %173 {offsets = [0, 256], sizes = [8, 128], strides = [1, 1]} : vector<8x384xbf16> to vector<8x128xbf16>
    %195 = vector.extract_strided_slice %175 {offsets = [0, 256], sizes = [8, 128], strides = [1, 1]} : vector<8x384xf32> to vector<8x128xf32>
    %196 = vector.broadcast %4 : vector<1x128xf32> to vector<8x128xf32>
    %197 = arith.addf %195, %196 : vector<8x128xf32>
    %198 = arith.mulf %184, %197 : vector<8x128xf32>
    %199 = arith.extf %194 : vector<8x128xbf16> to vector<8x128xf32>
    %200 = arith.addf %199, %198 : vector<8x128xf32>
    %201 = math.tanh %200 : vector<8x128xf32>
    %cst_50 = arith.constant 1.000000e+00 : f32
    %202 = vector.broadcast %cst_50 : f32 to vector<8x128xf32>
    %203 = arith.subf %202, %193 : vector<8x128xf32>
    %204 = arith.mulf %203, %201 : vector<8x128xf32>
    %205 = arith.mulf %193, %129 : vector<8x128xf32>
    %206 = arith.addf %204, %205 : vector<8x128xf32>
    %207 = arith.truncf %206 : vector<8x128xf32> to vector<8x128xbf16>
    %cst_51 = arith.constant dense<0.000000e+00> : vector<8x384xf32>
    %208 = tpu.matmul %207, %5, %cst_51 {dimension_numbers = #tpu.dot_dimension_numbers<[1], [0], [0], [1], [0, 0, 1, 1], [], []>} : vector<8x128xbf16>, vector<128x384xbf16>, vector<8x384xf32> -> vector<8x384xf32>
    %209 = vector.broadcast %6 : vector<1x384xf32> to vector<8x384xf32>
    %210 = arith.addf %208, %209 : vector<8x384xf32>
    %211 = arith.truncf %163 : vector<8x128xf32> to vector<8x128xbf16>
    %cst_52 = arith.constant dense<0.000000e+00> : vector<8x384xf32>
    %212 = tpu.matmul %211, %7, %cst_52 {dimension_numbers = #tpu.dot_dimension_numbers<[1], [0], [0], [1], [0, 0, 1, 1], [], []>} : vector<8x128xbf16>, vector<128x384xbf16>, vector<8x384xf32> -> vector<8x384xf32>
    %213 = vector.extract_strided_slice %210 {offsets = [0, 0], sizes = [8, 128], strides = [1, 1]} : vector<8x384xf32> to vector<8x128xf32>
    %214 = vector.extract_strided_slice %212 {offsets = [0, 0], sizes = [8, 128], strides = [1, 1]} : vector<8x384xf32> to vector<8x128xf32>
    %215 = arith.addf %213, %214 : vector<8x128xf32>
    %216 = arith.negf %215 : vector<8x128xf32>
    %217 = math.exp %216 : vector<8x128xf32>
    %cst_53 = arith.constant 1.000000e+00 : f32
    %218 = vector.broadcast %cst_53 : f32 to vector<8x128xf32>
    %219 = arith.addf %218, %217 : vector<8x128xf32>
    %220 = arith.divf %218, %219 : vector<8x128xf32>
    %221 = vector.extract_strided_slice %210 {offsets = [0, 128], sizes = [8, 128], strides = [1, 1]} : vector<8x384xf32> to vector<8x128xf32>
    %222 = vector.extract_strided_slice %212 {offsets = [0, 128], sizes = [8, 128], strides = [1, 1]} : vector<8x384xf32> to vector<8x128xf32>
    %223 = arith.addf %221, %222 : vector<8x128xf32>
    %224 = arith.negf %223 : vector<8x128xf32>
    %225 = math.exp %224 : vector<8x128xf32>
    %cst_54 = arith.constant 1.000000e+00 : f32
    %226 = vector.broadcast %cst_54 : f32 to vector<8x128xf32>
    %227 = arith.addf %226, %225 : vector<8x128xf32>
    %228 = arith.divf %226, %227 : vector<8x128xf32>
    %229 = vector.extract_strided_slice %210 {offsets = [0, 256], sizes = [8, 128], strides = [1, 1]} : vector<8x384xf32> to vector<8x128xf32>
    %230 = vector.extract_strided_slice %212 {offsets = [0, 256], sizes = [8, 128], strides = [1, 1]} : vector<8x384xf32> to vector<8x128xf32>
    %231 = vector.broadcast %8 : vector<1x128xf32> to vector<8x128xf32>
    %232 = arith.addf %230, %231 : vector<8x128xf32>
    %233 = arith.mulf %220, %232 : vector<8x128xf32>
    %234 = arith.addf %229, %233 : vector<8x128xf32>
    %235 = math.tanh %234 : vector<8x128xf32>
    %cst_55 = arith.constant 1.000000e+00 : f32
    %236 = vector.broadcast %cst_55 : f32 to vector<8x128xf32>
    %237 = arith.subf %236, %228 : vector<8x128xf32>
    %238 = arith.mulf %237, %235 : vector<8x128xf32>
    %239 = arith.mulf %228, %163 : vector<8x128xf32>
    %240 = arith.addf %238, %239 : vector<8x128xf32>
    %241 = vector.broadcast %170 : i32 to vector<8x1xi32>
    %242 = arith.cmpi eq, %9, %241 : vector<8x1xi32>
    %243 = vector.shape_cast %242 : vector<8x1xi1> to vector<8x1xi1>
    %244 = vector.broadcast %243 : vector<8x1xi1> to vector<8x128xi1>
    %245 = arith.select %244, %240, %168 : vector<8x128xi1>, vector<8x128xf32>
    %c3_i32 = arith.constant 3 : i32
    %c8_i32_56 = arith.constant 8 : i32
    %246 = arith.muli %arg0, %c8_i32_56 : i32
    %247 = arith.addi %246, %c3_i32 : i32
    %248 = arith.index_cast %c3_i32 : i32 to index
    %c0_57 = arith.constant 0 : index
    %c0_58 = arith.constant 0 : index
    %249 = vector.load %arg1[%248, %c0_57, %c0_58] : memref<8x8x384xbf16, #tpu.memory_space<vmem>>, vector<1x8x384xbf16>
    %250 = vector.shape_cast %249 : vector<1x8x384xbf16> to vector<8x384xbf16>
    %251 = arith.truncf %206 : vector<8x128xf32> to vector<8x128xbf16>
    %cst_59 = arith.constant dense<0.000000e+00> : vector<8x384xf32>
    %252 = tpu.matmul %251, %3, %cst_59 {dimension_numbers = #tpu.dot_dimension_numbers<[1], [0], [0], [1], [0, 0, 1, 1], [], []>} : vector<8x128xbf16>, vector<128x384xbf16>, vector<8x384xf32> -> vector<8x384xf32>
    %253 = vector.extract_strided_slice %250 {offsets = [0, 0], sizes = [8, 128], strides = [1, 1]} : vector<8x384xbf16> to vector<8x128xbf16>
    %254 = vector.extract_strided_slice %252 {offsets = [0, 0], sizes = [8, 128], strides = [1, 1]} : vector<8x384xf32> to vector<8x128xf32>
    %255 = arith.extf %253 : vector<8x128xbf16> to vector<8x128xf32>
    %256 = arith.addf %255, %254 : vector<8x128xf32>
    %257 = arith.negf %256 : vector<8x128xf32>
    %258 = math.exp %257 : vector<8x128xf32>
    %cst_60 = arith.constant 1.000000e+00 : f32
    %259 = vector.broadcast %cst_60 : f32 to vector<8x128xf32>
    %260 = arith.addf %259, %258 : vector<8x128xf32>
    %261 = arith.divf %259, %260 : vector<8x128xf32>
    %262 = vector.extract_strided_slice %250 {offsets = [0, 128], sizes = [8, 128], strides = [1, 1]} : vector<8x384xbf16> to vector<8x128xbf16>
    %263 = vector.extract_strided_slice %252 {offsets = [0, 128], sizes = [8, 128], strides = [1, 1]} : vector<8x384xf32> to vector<8x128xf32>
    %264 = arith.extf %262 : vector<8x128xbf16> to vector<8x128xf32>
    %265 = arith.addf %264, %263 : vector<8x128xf32>
    %266 = arith.negf %265 : vector<8x128xf32>
    %267 = math.exp %266 : vector<8x128xf32>
    %cst_61 = arith.constant 1.000000e+00 : f32
    %268 = vector.broadcast %cst_61 : f32 to vector<8x128xf32>
    %269 = arith.addf %268, %267 : vector<8x128xf32>
    %270 = arith.divf %268, %269 : vector<8x128xf32>
    %271 = vector.extract_strided_slice %250 {offsets = [0, 256], sizes = [8, 128], strides = [1, 1]} : vector<8x384xbf16> to vector<8x128xbf16>
    %272 = vector.extract_strided_slice %252 {offsets = [0, 256], sizes = [8, 128], strides = [1, 1]} : vector<8x384xf32> to vector<8x128xf32>
    %273 = vector.broadcast %4 : vector<1x128xf32> to vector<8x128xf32>
    %274 = arith.addf %272, %273 : vector<8x128xf32>
    %275 = arith.mulf %261, %274 : vector<8x128xf32>
    %276 = arith.extf %271 : vector<8x128xbf16> to vector<8x128xf32>
    %277 = arith.addf %276, %275 : vector<8x128xf32>
    %278 = math.tanh %277 : vector<8x128xf32>
    %cst_62 = arith.constant 1.000000e+00 : f32
    %279 = vector.broadcast %cst_62 : f32 to vector<8x128xf32>
    %280 = arith.subf %279, %270 : vector<8x128xf32>
    %281 = arith.mulf %280, %278 : vector<8x128xf32>
    %282 = arith.mulf %270, %206 : vector<8x128xf32>
    %283 = arith.addf %281, %282 : vector<8x128xf32>
    %284 = arith.truncf %283 : vector<8x128xf32> to vector<8x128xbf16>
    %cst_63 = arith.constant dense<0.000000e+00> : vector<8x384xf32>
    %285 = tpu.matmul %284, %5, %cst_63 {dimension_numbers = #tpu.dot_dimension_numbers<[1], [0], [0], [1], [0, 0, 1, 1], [], []>} : vector<8x128xbf16>, vector<128x384xbf16>, vector<8x384xf32> -> vector<8x384xf32>
    %286 = vector.broadcast %6 : vector<1x384xf32> to vector<8x384xf32>
    %287 = arith.addf %285, %286 : vector<8x384xf32>
    %288 = arith.truncf %240 : vector<8x128xf32> to vector<8x128xbf16>
    %cst_64 = arith.constant dense<0.000000e+00> : vector<8x384xf32>
    %289 = tpu.matmul %288, %7, %cst_64 {dimension_numbers = #tpu.dot_dimension_numbers<[1], [0], [0], [1], [0, 0, 1, 1], [], []>} : vector<8x128xbf16>, vector<128x384xbf16>, vector<8x384xf32> -> vector<8x384xf32>
    %290 = vector.extract_strided_slice %287 {offsets = [0, 0], sizes = [8, 128], strides = [1, 1]} : vector<8x384xf32> to vector<8x128xf32>
    %291 = vector.extract_strided_slice %289 {offsets = [0, 0], sizes = [8, 128], strides = [1, 1]} : vector<8x384xf32> to vector<8x128xf32>
    %292 = arith.addf %290, %291 : vector<8x128xf32>
    %293 = arith.negf %292 : vector<8x128xf32>
    %294 = math.exp %293 : vector<8x128xf32>
    %cst_65 = arith.constant 1.000000e+00 : f32
    %295 = vector.broadcast %cst_65 : f32 to vector<8x128xf32>
    %296 = arith.addf %295, %294 : vector<8x128xf32>
    %297 = arith.divf %295, %296 : vector<8x128xf32>
    %298 = vector.extract_strided_slice %287 {offsets = [0, 128], sizes = [8, 128], strides = [1, 1]} : vector<8x384xf32> to vector<8x128xf32>
    %299 = vector.extract_strided_slice %289 {offsets = [0, 128], sizes = [8, 128], strides = [1, 1]} : vector<8x384xf32> to vector<8x128xf32>
    %300 = arith.addf %298, %299 : vector<8x128xf32>
    %301 = arith.negf %300 : vector<8x128xf32>
    %302 = math.exp %301 : vector<8x128xf32>
    %cst_66 = arith.constant 1.000000e+00 : f32
    %303 = vector.broadcast %cst_66 : f32 to vector<8x128xf32>
    %304 = arith.addf %303, %302 : vector<8x128xf32>
    %305 = arith.divf %303, %304 : vector<8x128xf32>
    %306 = vector.extract_strided_slice %287 {offsets = [0, 256], sizes = [8, 128], strides = [1, 1]} : vector<8x384xf32> to vector<8x128xf32>
    %307 = vector.extract_strided_slice %289 {offsets = [0, 256], sizes = [8, 128], strides = [1, 1]} : vector<8x384xf32> to vector<8x128xf32>
    %308 = vector.broadcast %8 : vector<1x128xf32> to vector<8x128xf32>
    %309 = arith.addf %307, %308 : vector<8x128xf32>
    %310 = arith.mulf %297, %309 : vector<8x128xf32>
    %311 = arith.addf %306, %310 : vector<8x128xf32>
    %312 = math.tanh %311 : vector<8x128xf32>
    %cst_67 = arith.constant 1.000000e+00 : f32
    %313 = vector.broadcast %cst_67 : f32 to vector<8x128xf32>
    %314 = arith.subf %313, %305 : vector<8x128xf32>
    %315 = arith.mulf %314, %312 : vector<8x128xf32>
    %316 = arith.mulf %305, %240 : vector<8x128xf32>
    %317 = arith.addf %315, %316 : vector<8x128xf32>
    %318 = vector.broadcast %247 : i32 to vector<8x1xi32>
    %319 = arith.cmpi eq, %9, %318 : vector<8x1xi32>
    %320 = vector.shape_cast %319 : vector<8x1xi1> to vector<8x1xi1>
    %321 = vector.broadcast %320 : vector<8x1xi1> to vector<8x128xi1>
    %322 = arith.select %321, %317, %245 : vector<8x128xi1>, vector<8x128xf32>
    %c4_i32 = arith.constant 4 : i32
    %c8_i32_68 = arith.constant 8 : i32
    %323 = arith.muli %arg0, %c8_i32_68 : i32
    %324 = arith.addi %323, %c4_i32 : i32
    %325 = arith.index_cast %c4_i32 : i32 to index
    %c0_69 = arith.constant 0 : index
    %c0_70 = arith.constant 0 : index
    %326 = vector.load %arg1[%325, %c0_69, %c0_70] : memref<8x8x384xbf16, #tpu.memory_space<vmem>>, vector<1x8x384xbf16>
    %327 = vector.shape_cast %326 : vector<1x8x384xbf16> to vector<8x384xbf16>
    %328 = arith.truncf %283 : vector<8x128xf32> to vector<8x128xbf16>
    %cst_71 = arith.constant dense<0.000000e+00> : vector<8x384xf32>
    %329 = tpu.matmul %328, %3, %cst_71 {dimension_numbers = #tpu.dot_dimension_numbers<[1], [0], [0], [1], [0, 0, 1, 1], [], []>} : vector<8x128xbf16>, vector<128x384xbf16>, vector<8x384xf32> -> vector<8x384xf32>
    %330 = vector.extract_strided_slice %327 {offsets = [0, 0], sizes = [8, 128], strides = [1, 1]} : vector<8x384xbf16> to vector<8x128xbf16>
    %331 = vector.extract_strided_slice %329 {offsets = [0, 0], sizes = [8, 128], strides = [1, 1]} : vector<8x384xf32> to vector<8x128xf32>
    %332 = arith.extf %330 : vector<8x128xbf16> to vector<8x128xf32>
    %333 = arith.addf %332, %331 : vector<8x128xf32>
    %334 = arith.negf %333 : vector<8x128xf32>
    %335 = math.exp %334 : vector<8x128xf32>
    %cst_72 = arith.constant 1.000000e+00 : f32
    %336 = vector.broadcast %cst_72 : f32 to vector<8x128xf32>
    %337 = arith.addf %336, %335 : vector<8x128xf32>
    %338 = arith.divf %336, %337 : vector<8x128xf32>
    %339 = vector.extract_strided_slice %327 {offsets = [0, 128], sizes = [8, 128], strides = [1, 1]} : vector<8x384xbf16> to vector<8x128xbf16>
    %340 = vector.extract_strided_slice %329 {offsets = [0, 128], sizes = [8, 128], strides = [1, 1]} : vector<8x384xf32> to vector<8x128xf32>
    %341 = arith.extf %339 : vector<8x128xbf16> to vector<8x128xf32>
    %342 = arith.addf %341, %340 : vector<8x128xf32>
    %343 = arith.negf %342 : vector<8x128xf32>
    %344 = math.exp %343 : vector<8x128xf32>
    %cst_73 = arith.constant 1.000000e+00 : f32
    %345 = vector.broadcast %cst_73 : f32 to vector<8x128xf32>
    %346 = arith.addf %345, %344 : vector<8x128xf32>
    %347 = arith.divf %345, %346 : vector<8x128xf32>
    %348 = vector.extract_strided_slice %327 {offsets = [0, 256], sizes = [8, 128], strides = [1, 1]} : vector<8x384xbf16> to vector<8x128xbf16>
    %349 = vector.extract_strided_slice %329 {offsets = [0, 256], sizes = [8, 128], strides = [1, 1]} : vector<8x384xf32> to vector<8x128xf32>
    %350 = vector.broadcast %4 : vector<1x128xf32> to vector<8x128xf32>
    %351 = arith.addf %349, %350 : vector<8x128xf32>
    %352 = arith.mulf %338, %351 : vector<8x128xf32>
    %353 = arith.extf %348 : vector<8x128xbf16> to vector<8x128xf32>
    %354 = arith.addf %353, %352 : vector<8x128xf32>
    %355 = math.tanh %354 : vector<8x128xf32>
    %cst_74 = arith.constant 1.000000e+00 : f32
    %356 = vector.broadcast %cst_74 : f32 to vector<8x128xf32>
    %357 = arith.subf %356, %347 : vector<8x128xf32>
    %358 = arith.mulf %357, %355 : vector<8x128xf32>
    %359 = arith.mulf %347, %283 : vector<8x128xf32>
    %360 = arith.addf %358, %359 : vector<8x128xf32>
    %361 = arith.truncf %360 : vector<8x128xf32> to vector<8x128xbf16>
    %cst_75 = arith.constant dense<0.000000e+00> : vector<8x384xf32>
    %362 = tpu.matmul %361, %5, %cst_75 {dimension_numbers = #tpu.dot_dimension_numbers<[1], [0], [0], [1], [0, 0, 1, 1], [], []>} : vector<8x128xbf16>, vector<128x384xbf16>, vector<8x384xf32> -> vector<8x384xf32>
    %363 = vector.broadcast %6 : vector<1x384xf32> to vector<8x384xf32>
    %364 = arith.addf %362, %363 : vector<8x384xf32>
    %365 = arith.truncf %317 : vector<8x128xf32> to vector<8x128xbf16>
    %cst_76 = arith.constant dense<0.000000e+00> : vector<8x384xf32>
    %366 = tpu.matmul %365, %7, %cst_76 {dimension_numbers = #tpu.dot_dimension_numbers<[1], [0], [0], [1], [0, 0, 1, 1], [], []>} : vector<8x128xbf16>, vector<128x384xbf16>, vector<8x384xf32> -> vector<8x384xf32>
    %367 = vector.extract_strided_slice %364 {offsets = [0, 0], sizes = [8, 128], strides = [1, 1]} : vector<8x384xf32> to vector<8x128xf32>
    %368 = vector.extract_strided_slice %366 {offsets = [0, 0], sizes = [8, 128], strides = [1, 1]} : vector<8x384xf32> to vector<8x128xf32>
    %369 = arith.addf %367, %368 : vector<8x128xf32>
    %370 = arith.negf %369 : vector<8x128xf32>
    %371 = math.exp %370 : vector<8x128xf32>
    %cst_77 = arith.constant 1.000000e+00 : f32
    %372 = vector.broadcast %cst_77 : f32 to vector<8x128xf32>
    %373 = arith.addf %372, %371 : vector<8x128xf32>
    %374 = arith.divf %372, %373 : vector<8x128xf32>
    %375 = vector.extract_strided_slice %364 {offsets = [0, 128], sizes = [8, 128], strides = [1, 1]} : vector<8x384xf32> to vector<8x128xf32>
    %376 = vector.extract_strided_slice %366 {offsets = [0, 128], sizes = [8, 128], strides = [1, 1]} : vector<8x384xf32> to vector<8x128xf32>
    %377 = arith.addf %375, %376 : vector<8x128xf32>
    %378 = arith.negf %377 : vector<8x128xf32>
    %379 = math.exp %378 : vector<8x128xf32>
    %cst_78 = arith.constant 1.000000e+00 : f32
    %380 = vector.broadcast %cst_78 : f32 to vector<8x128xf32>
    %381 = arith.addf %380, %379 : vector<8x128xf32>
    %382 = arith.divf %380, %381 : vector<8x128xf32>
    %383 = vector.extract_strided_slice %364 {offsets = [0, 256], sizes = [8, 128], strides = [1, 1]} : vector<8x384xf32> to vector<8x128xf32>
    %384 = vector.extract_strided_slice %366 {offsets = [0, 256], sizes = [8, 128], strides = [1, 1]} : vector<8x384xf32> to vector<8x128xf32>
    %385 = vector.broadcast %8 : vector<1x128xf32> to vector<8x128xf32>
    %386 = arith.addf %384, %385 : vector<8x128xf32>
    %387 = arith.mulf %374, %386 : vector<8x128xf32>
    %388 = arith.addf %383, %387 : vector<8x128xf32>
    %389 = math.tanh %388 : vector<8x128xf32>
    %cst_79 = arith.constant 1.000000e+00 : f32
    %390 = vector.broadcast %cst_79 : f32 to vector<8x128xf32>
    %391 = arith.subf %390, %382 : vector<8x128xf32>
    %392 = arith.mulf %391, %389 : vector<8x128xf32>
    %393 = arith.mulf %382, %317 : vector<8x128xf32>
    %394 = arith.addf %392, %393 : vector<8x128xf32>
    %395 = vector.broadcast %324 : i32 to vector<8x1xi32>
    %396 = arith.cmpi eq, %9, %395 : vector<8x1xi32>
    %397 = vector.shape_cast %396 : vector<8x1xi1> to vector<8x1xi1>
    %398 = vector.broadcast %397 : vector<8x1xi1> to vector<8x128xi1>
    %399 = arith.select %398, %394, %322 : vector<8x128xi1>, vector<8x128xf32>
    %c5_i32 = arith.constant 5 : i32
    %c8_i32_80 = arith.constant 8 : i32
    %400 = arith.muli %arg0, %c8_i32_80 : i32
    %401 = arith.addi %400, %c5_i32 : i32
    %402 = arith.index_cast %c5_i32 : i32 to index
    %c0_81 = arith.constant 0 : index
    %c0_82 = arith.constant 0 : index
    %403 = vector.load %arg1[%402, %c0_81, %c0_82] : memref<8x8x384xbf16, #tpu.memory_space<vmem>>, vector<1x8x384xbf16>
    %404 = vector.shape_cast %403 : vector<1x8x384xbf16> to vector<8x384xbf16>
    %405 = arith.truncf %360 : vector<8x128xf32> to vector<8x128xbf16>
    %cst_83 = arith.constant dense<0.000000e+00> : vector<8x384xf32>
    %406 = tpu.matmul %405, %3, %cst_83 {dimension_numbers = #tpu.dot_dimension_numbers<[1], [0], [0], [1], [0, 0, 1, 1], [], []>} : vector<8x128xbf16>, vector<128x384xbf16>, vector<8x384xf32> -> vector<8x384xf32>
    %407 = vector.extract_strided_slice %404 {offsets = [0, 0], sizes = [8, 128], strides = [1, 1]} : vector<8x384xbf16> to vector<8x128xbf16>
    %408 = vector.extract_strided_slice %406 {offsets = [0, 0], sizes = [8, 128], strides = [1, 1]} : vector<8x384xf32> to vector<8x128xf32>
    %409 = arith.extf %407 : vector<8x128xbf16> to vector<8x128xf32>
    %410 = arith.addf %409, %408 : vector<8x128xf32>
    %411 = arith.negf %410 : vector<8x128xf32>
    %412 = math.exp %411 : vector<8x128xf32>
    %cst_84 = arith.constant 1.000000e+00 : f32
    %413 = vector.broadcast %cst_84 : f32 to vector<8x128xf32>
    %414 = arith.addf %413, %412 : vector<8x128xf32>
    %415 = arith.divf %413, %414 : vector<8x128xf32>
    %416 = vector.extract_strided_slice %404 {offsets = [0, 128], sizes = [8, 128], strides = [1, 1]} : vector<8x384xbf16> to vector<8x128xbf16>
    %417 = vector.extract_strided_slice %406 {offsets = [0, 128], sizes = [8, 128], strides = [1, 1]} : vector<8x384xf32> to vector<8x128xf32>
    %418 = arith.extf %416 : vector<8x128xbf16> to vector<8x128xf32>
    %419 = arith.addf %418, %417 : vector<8x128xf32>
    %420 = arith.negf %419 : vector<8x128xf32>
    %421 = math.exp %420 : vector<8x128xf32>
    %cst_85 = arith.constant 1.000000e+00 : f32
    %422 = vector.broadcast %cst_85 : f32 to vector<8x128xf32>
    %423 = arith.addf %422, %421 : vector<8x128xf32>
    %424 = arith.divf %422, %423 : vector<8x128xf32>
    %425 = vector.extract_strided_slice %404 {offsets = [0, 256], sizes = [8, 128], strides = [1, 1]} : vector<8x384xbf16> to vector<8x128xbf16>
    %426 = vector.extract_strided_slice %406 {offsets = [0, 256], sizes = [8, 128], strides = [1, 1]} : vector<8x384xf32> to vector<8x128xf32>
    %427 = vector.broadcast %4 : vector<1x128xf32> to vector<8x128xf32>
    %428 = arith.addf %426, %427 : vector<8x128xf32>
    %429 = arith.mulf %415, %428 : vector<8x128xf32>
    %430 = arith.extf %425 : vector<8x128xbf16> to vector<8x128xf32>
    %431 = arith.addf %430, %429 : vector<8x128xf32>
    %432 = math.tanh %431 : vector<8x128xf32>
    %cst_86 = arith.constant 1.000000e+00 : f32
    %433 = vector.broadcast %cst_86 : f32 to vector<8x128xf32>
    %434 = arith.subf %433, %424 : vector<8x128xf32>
    %435 = arith.mulf %434, %432 : vector<8x128xf32>
    %436 = arith.mulf %424, %360 : vector<8x128xf32>
    %437 = arith.addf %435, %436 : vector<8x128xf32>
    %438 = arith.truncf %437 : vector<8x128xf32> to vector<8x128xbf16>
    %cst_87 = arith.constant dense<0.000000e+00> : vector<8x384xf32>
    %439 = tpu.matmul %438, %5, %cst_87 {dimension_numbers = #tpu.dot_dimension_numbers<[1], [0], [0], [1], [0, 0, 1, 1], [], []>} : vector<8x128xbf16>, vector<128x384xbf16>, vector<8x384xf32> -> vector<8x384xf32>
    %440 = vector.broadcast %6 : vector<1x384xf32> to vector<8x384xf32>
    %441 = arith.addf %439, %440 : vector<8x384xf32>
    %442 = arith.truncf %394 : vector<8x128xf32> to vector<8x128xbf16>
    %cst_88 = arith.constant dense<0.000000e+00> : vector<8x384xf32>
    %443 = tpu.matmul %442, %7, %cst_88 {dimension_numbers = #tpu.dot_dimension_numbers<[1], [0], [0], [1], [0, 0, 1, 1], [], []>} : vector<8x128xbf16>, vector<128x384xbf16>, vector<8x384xf32> -> vector<8x384xf32>
    %444 = vector.extract_strided_slice %441 {offsets = [0, 0], sizes = [8, 128], strides = [1, 1]} : vector<8x384xf32> to vector<8x128xf32>
    %445 = vector.extract_strided_slice %443 {offsets = [0, 0], sizes = [8, 128], strides = [1, 1]} : vector<8x384xf32> to vector<8x128xf32>
    %446 = arith.addf %444, %445 : vector<8x128xf32>
    %447 = arith.negf %446 : vector<8x128xf32>
    %448 = math.exp %447 : vector<8x128xf32>
    %cst_89 = arith.constant 1.000000e+00 : f32
    %449 = vector.broadcast %cst_89 : f32 to vector<8x128xf32>
    %450 = arith.addf %449, %448 : vector<8x128xf32>
    %451 = arith.divf %449, %450 : vector<8x128xf32>
    %452 = vector.extract_strided_slice %441 {offsets = [0, 128], sizes = [8, 128], strides = [1, 1]} : vector<8x384xf32> to vector<8x128xf32>
    %453 = vector.extract_strided_slice %443 {offsets = [0, 128], sizes = [8, 128], strides = [1, 1]} : vector<8x384xf32> to vector<8x128xf32>
    %454 = arith.addf %452, %453 : vector<8x128xf32>
    %455 = arith.negf %454 : vector<8x128xf32>
    %456 = math.exp %455 : vector<8x128xf32>
    %cst_90 = arith.constant 1.000000e+00 : f32
    %457 = vector.broadcast %cst_90 : f32 to vector<8x128xf32>
    %458 = arith.addf %457, %456 : vector<8x128xf32>
    %459 = arith.divf %457, %458 : vector<8x128xf32>
    %460 = vector.extract_strided_slice %441 {offsets = [0, 256], sizes = [8, 128], strides = [1, 1]} : vector<8x384xf32> to vector<8x128xf32>
    %461 = vector.extract_strided_slice %443 {offsets = [0, 256], sizes = [8, 128], strides = [1, 1]} : vector<8x384xf32> to vector<8x128xf32>
    %462 = vector.broadcast %8 : vector<1x128xf32> to vector<8x128xf32>
    %463 = arith.addf %461, %462 : vector<8x128xf32>
    %464 = arith.mulf %451, %463 : vector<8x128xf32>
    %465 = arith.addf %460, %464 : vector<8x128xf32>
    %466 = math.tanh %465 : vector<8x128xf32>
    %cst_91 = arith.constant 1.000000e+00 : f32
    %467 = vector.broadcast %cst_91 : f32 to vector<8x128xf32>
    %468 = arith.subf %467, %459 : vector<8x128xf32>
    %469 = arith.mulf %468, %466 : vector<8x128xf32>
    %470 = arith.mulf %459, %394 : vector<8x128xf32>
    %471 = arith.addf %469, %470 : vector<8x128xf32>
    %472 = vector.broadcast %401 : i32 to vector<8x1xi32>
    %473 = arith.cmpi eq, %9, %472 : vector<8x1xi32>
    %474 = vector.shape_cast %473 : vector<8x1xi1> to vector<8x1xi1>
    %475 = vector.broadcast %474 : vector<8x1xi1> to vector<8x128xi1>
    %476 = arith.select %475, %471, %399 : vector<8x128xi1>, vector<8x128xf32>
    %c6_i32 = arith.constant 6 : i32
    %c8_i32_92 = arith.constant 8 : i32
    %477 = arith.muli %arg0, %c8_i32_92 : i32
    %478 = arith.addi %477, %c6_i32 : i32
    %479 = arith.index_cast %c6_i32 : i32 to index
    %c0_93 = arith.constant 0 : index
    %c0_94 = arith.constant 0 : index
    %480 = vector.load %arg1[%479, %c0_93, %c0_94] : memref<8x8x384xbf16, #tpu.memory_space<vmem>>, vector<1x8x384xbf16>
    %481 = vector.shape_cast %480 : vector<1x8x384xbf16> to vector<8x384xbf16>
    %482 = arith.truncf %437 : vector<8x128xf32> to vector<8x128xbf16>
    %cst_95 = arith.constant dense<0.000000e+00> : vector<8x384xf32>
    %483 = tpu.matmul %482, %3, %cst_95 {dimension_numbers = #tpu.dot_dimension_numbers<[1], [0], [0], [1], [0, 0, 1, 1], [], []>} : vector<8x128xbf16>, vector<128x384xbf16>, vector<8x384xf32> -> vector<8x384xf32>
    %484 = vector.extract_strided_slice %481 {offsets = [0, 0], sizes = [8, 128], strides = [1, 1]} : vector<8x384xbf16> to vector<8x128xbf16>
    %485 = vector.extract_strided_slice %483 {offsets = [0, 0], sizes = [8, 128], strides = [1, 1]} : vector<8x384xf32> to vector<8x128xf32>
    %486 = arith.extf %484 : vector<8x128xbf16> to vector<8x128xf32>
    %487 = arith.addf %486, %485 : vector<8x128xf32>
    %488 = arith.negf %487 : vector<8x128xf32>
    %489 = math.exp %488 : vector<8x128xf32>
    %cst_96 = arith.constant 1.000000e+00 : f32
    %490 = vector.broadcast %cst_96 : f32 to vector<8x128xf32>
    %491 = arith.addf %490, %489 : vector<8x128xf32>
    %492 = arith.divf %490, %491 : vector<8x128xf32>
    %493 = vector.extract_strided_slice %481 {offsets = [0, 128], sizes = [8, 128], strides = [1, 1]} : vector<8x384xbf16> to vector<8x128xbf16>
    %494 = vector.extract_strided_slice %483 {offsets = [0, 128], sizes = [8, 128], strides = [1, 1]} : vector<8x384xf32> to vector<8x128xf32>
    %495 = arith.extf %493 : vector<8x128xbf16> to vector<8x128xf32>
    %496 = arith.addf %495, %494 : vector<8x128xf32>
    %497 = arith.negf %496 : vector<8x128xf32>
    %498 = math.exp %497 : vector<8x128xf32>
    %cst_97 = arith.constant 1.000000e+00 : f32
    %499 = vector.broadcast %cst_97 : f32 to vector<8x128xf32>
    %500 = arith.addf %499, %498 : vector<8x128xf32>
    %501 = arith.divf %499, %500 : vector<8x128xf32>
    %502 = vector.extract_strided_slice %481 {offsets = [0, 256], sizes = [8, 128], strides = [1, 1]} : vector<8x384xbf16> to vector<8x128xbf16>
    %503 = vector.extract_strided_slice %483 {offsets = [0, 256], sizes = [8, 128], strides = [1, 1]} : vector<8x384xf32> to vector<8x128xf32>
    %504 = vector.broadcast %4 : vector<1x128xf32> to vector<8x128xf32>
    %505 = arith.addf %503, %504 : vector<8x128xf32>
    %506 = arith.mulf %492, %505 : vector<8x128xf32>
    %507 = arith.extf %502 : vector<8x128xbf16> to vector<8x128xf32>
    %508 = arith.addf %507, %506 : vector<8x128xf32>
    %509 = math.tanh %508 : vector<8x128xf32>
    %cst_98 = arith.constant 1.000000e+00 : f32
    %510 = vector.broadcast %cst_98 : f32 to vector<8x128xf32>
    %511 = arith.subf %510, %501 : vector<8x128xf32>
    %512 = arith.mulf %511, %509 : vector<8x128xf32>
    %513 = arith.mulf %501, %437 : vector<8x128xf32>
    %514 = arith.addf %512, %513 : vector<8x128xf32>
    %515 = arith.truncf %514 : vector<8x128xf32> to vector<8x128xbf16>
    %cst_99 = arith.constant dense<0.000000e+00> : vector<8x384xf32>
    %516 = tpu.matmul %515, %5, %cst_99 {dimension_numbers = #tpu.dot_dimension_numbers<[1], [0], [0], [1], [0, 0, 1, 1], [], []>} : vector<8x128xbf16>, vector<128x384xbf16>, vector<8x384xf32> -> vector<8x384xf32>
    %517 = vector.broadcast %6 : vector<1x384xf32> to vector<8x384xf32>
    %518 = arith.addf %516, %517 : vector<8x384xf32>
    %519 = arith.truncf %471 : vector<8x128xf32> to vector<8x128xbf16>
    %cst_100 = arith.constant dense<0.000000e+00> : vector<8x384xf32>
    %520 = tpu.matmul %519, %7, %cst_100 {dimension_numbers = #tpu.dot_dimension_numbers<[1], [0], [0], [1], [0, 0, 1, 1], [], []>} : vector<8x128xbf16>, vector<128x384xbf16>, vector<8x384xf32> -> vector<8x384xf32>
    %521 = vector.extract_strided_slice %518 {offsets = [0, 0], sizes = [8, 128], strides = [1, 1]} : vector<8x384xf32> to vector<8x128xf32>
    %522 = vector.extract_strided_slice %520 {offsets = [0, 0], sizes = [8, 128], strides = [1, 1]} : vector<8x384xf32> to vector<8x128xf32>
    %523 = arith.addf %521, %522 : vector<8x128xf32>
    %524 = arith.negf %523 : vector<8x128xf32>
    %525 = math.exp %524 : vector<8x128xf32>
    %cst_101 = arith.constant 1.000000e+00 : f32
    %526 = vector.broadcast %cst_101 : f32 to vector<8x128xf32>
    %527 = arith.addf %526, %525 : vector<8x128xf32>
    %528 = arith.divf %526, %527 : vector<8x128xf32>
    %529 = vector.extract_strided_slice %518 {offsets = [0, 128], sizes = [8, 128], strides = [1, 1]} : vector<8x384xf32> to vector<8x128xf32>
    %530 = vector.extract_strided_slice %520 {offsets = [0, 128], sizes = [8, 128], strides = [1, 1]} : vector<8x384xf32> to vector<8x128xf32>
    %531 = arith.addf %529, %530 : vector<8x128xf32>
    %532 = arith.negf %531 : vector<8x128xf32>
    %533 = math.exp %532 : vector<8x128xf32>
    %cst_102 = arith.constant 1.000000e+00 : f32
    %534 = vector.broadcast %cst_102 : f32 to vector<8x128xf32>
    %535 = arith.addf %534, %533 : vector<8x128xf32>
    %536 = arith.divf %534, %535 : vector<8x128xf32>
    %537 = vector.extract_strided_slice %518 {offsets = [0, 256], sizes = [8, 128], strides = [1, 1]} : vector<8x384xf32> to vector<8x128xf32>
    %538 = vector.extract_strided_slice %520 {offsets = [0, 256], sizes = [8, 128], strides = [1, 1]} : vector<8x384xf32> to vector<8x128xf32>
    %539 = vector.broadcast %8 : vector<1x128xf32> to vector<8x128xf32>
    %540 = arith.addf %538, %539 : vector<8x128xf32>
    %541 = arith.mulf %528, %540 : vector<8x128xf32>
    %542 = arith.addf %537, %541 : vector<8x128xf32>
    %543 = math.tanh %542 : vector<8x128xf32>
    %cst_103 = arith.constant 1.000000e+00 : f32
    %544 = vector.broadcast %cst_103 : f32 to vector<8x128xf32>
    %545 = arith.subf %544, %536 : vector<8x128xf32>
    %546 = arith.mulf %545, %543 : vector<8x128xf32>
    %547 = arith.mulf %536, %471 : vector<8x128xf32>
    %548 = arith.addf %546, %547 : vector<8x128xf32>
    %549 = vector.broadcast %478 : i32 to vector<8x1xi32>
    %550 = arith.cmpi eq, %9, %549 : vector<8x1xi32>
    %551 = vector.shape_cast %550 : vector<8x1xi1> to vector<8x1xi1>
    %552 = vector.broadcast %551 : vector<8x1xi1> to vector<8x128xi1>
    %553 = arith.select %552, %548, %476 : vector<8x128xi1>, vector<8x128xf32>
    %c7_i32 = arith.constant 7 : i32
    %c8_i32_104 = arith.constant 8 : i32
    %554 = arith.muli %arg0, %c8_i32_104 : i32
    %555 = arith.addi %554, %c7_i32 : i32
    %556 = arith.index_cast %c7_i32 : i32 to index
    %c0_105 = arith.constant 0 : index
    %c0_106 = arith.constant 0 : index
    %557 = vector.load %arg1[%556, %c0_105, %c0_106] : memref<8x8x384xbf16, #tpu.memory_space<vmem>>, vector<1x8x384xbf16>
    %558 = vector.shape_cast %557 : vector<1x8x384xbf16> to vector<8x384xbf16>
    %559 = arith.truncf %514 : vector<8x128xf32> to vector<8x128xbf16>
    %cst_107 = arith.constant dense<0.000000e+00> : vector<8x384xf32>
    %560 = tpu.matmul %559, %3, %cst_107 {dimension_numbers = #tpu.dot_dimension_numbers<[1], [0], [0], [1], [0, 0, 1, 1], [], []>} : vector<8x128xbf16>, vector<128x384xbf16>, vector<8x384xf32> -> vector<8x384xf32>
    %561 = vector.extract_strided_slice %558 {offsets = [0, 0], sizes = [8, 128], strides = [1, 1]} : vector<8x384xbf16> to vector<8x128xbf16>
    %562 = vector.extract_strided_slice %560 {offsets = [0, 0], sizes = [8, 128], strides = [1, 1]} : vector<8x384xf32> to vector<8x128xf32>
    %563 = arith.extf %561 : vector<8x128xbf16> to vector<8x128xf32>
    %564 = arith.addf %563, %562 : vector<8x128xf32>
    %565 = arith.negf %564 : vector<8x128xf32>
    %566 = math.exp %565 : vector<8x128xf32>
    %cst_108 = arith.constant 1.000000e+00 : f32
    %567 = vector.broadcast %cst_108 : f32 to vector<8x128xf32>
    %568 = arith.addf %567, %566 : vector<8x128xf32>
    %569 = arith.divf %567, %568 : vector<8x128xf32>
    %570 = vector.extract_strided_slice %558 {offsets = [0, 128], sizes = [8, 128], strides = [1, 1]} : vector<8x384xbf16> to vector<8x128xbf16>
    %571 = vector.extract_strided_slice %560 {offsets = [0, 128], sizes = [8, 128], strides = [1, 1]} : vector<8x384xf32> to vector<8x128xf32>
    %572 = arith.extf %570 : vector<8x128xbf16> to vector<8x128xf32>
    %573 = arith.addf %572, %571 : vector<8x128xf32>
    %574 = arith.negf %573 : vector<8x128xf32>
    %575 = math.exp %574 : vector<8x128xf32>
    %cst_109 = arith.constant 1.000000e+00 : f32
    %576 = vector.broadcast %cst_109 : f32 to vector<8x128xf32>
    %577 = arith.addf %576, %575 : vector<8x128xf32>
    %578 = arith.divf %576, %577 : vector<8x128xf32>
    %579 = vector.extract_strided_slice %558 {offsets = [0, 256], sizes = [8, 128], strides = [1, 1]} : vector<8x384xbf16> to vector<8x128xbf16>
    %580 = vector.extract_strided_slice %560 {offsets = [0, 256], sizes = [8, 128], strides = [1, 1]} : vector<8x384xf32> to vector<8x128xf32>
    %581 = vector.broadcast %4 : vector<1x128xf32> to vector<8x128xf32>
    %582 = arith.addf %580, %581 : vector<8x128xf32>
    %583 = arith.mulf %569, %582 : vector<8x128xf32>
    %584 = arith.extf %579 : vector<8x128xbf16> to vector<8x128xf32>
    %585 = arith.addf %584, %583 : vector<8x128xf32>
    %586 = math.tanh %585 : vector<8x128xf32>
    %cst_110 = arith.constant 1.000000e+00 : f32
    %587 = vector.broadcast %cst_110 : f32 to vector<8x128xf32>
    %588 = arith.subf %587, %578 : vector<8x128xf32>
    %589 = arith.mulf %588, %586 : vector<8x128xf32>
    %590 = arith.mulf %578, %514 : vector<8x128xf32>
    %591 = arith.addf %589, %590 : vector<8x128xf32>
    %592 = arith.truncf %591 : vector<8x128xf32> to vector<8x128xbf16>
    %cst_111 = arith.constant dense<0.000000e+00> : vector<8x384xf32>
    %593 = tpu.matmul %592, %5, %cst_111 {dimension_numbers = #tpu.dot_dimension_numbers<[1], [0], [0], [1], [0, 0, 1, 1], [], []>} : vector<8x128xbf16>, vector<128x384xbf16>, vector<8x384xf32> -> vector<8x384xf32>
    %594 = vector.broadcast %6 : vector<1x384xf32> to vector<8x384xf32>
    %595 = arith.addf %593, %594 : vector<8x384xf32>
    %596 = arith.truncf %548 : vector<8x128xf32> to vector<8x128xbf16>
    %cst_112 = arith.constant dense<0.000000e+00> : vector<8x384xf32>
    %597 = tpu.matmul %596, %7, %cst_112 {dimension_numbers = #tpu.dot_dimension_numbers<[1], [0], [0], [1], [0, 0, 1, 1], [], []>} : vector<8x128xbf16>, vector<128x384xbf16>, vector<8x384xf32> -> vector<8x384xf32>
    %598 = vector.extract_strided_slice %595 {offsets = [0, 0], sizes = [8, 128], strides = [1, 1]} : vector<8x384xf32> to vector<8x128xf32>
    %599 = vector.extract_strided_slice %597 {offsets = [0, 0], sizes = [8, 128], strides = [1, 1]} : vector<8x384xf32> to vector<8x128xf32>
    %600 = arith.addf %598, %599 : vector<8x128xf32>
    %601 = arith.negf %600 : vector<8x128xf32>
    %602 = math.exp %601 : vector<8x128xf32>
    %cst_113 = arith.constant 1.000000e+00 : f32
    %603 = vector.broadcast %cst_113 : f32 to vector<8x128xf32>
    %604 = arith.addf %603, %602 : vector<8x128xf32>
    %605 = arith.divf %603, %604 : vector<8x128xf32>
    %606 = vector.extract_strided_slice %595 {offsets = [0, 128], sizes = [8, 128], strides = [1, 1]} : vector<8x384xf32> to vector<8x128xf32>
    %607 = vector.extract_strided_slice %597 {offsets = [0, 128], sizes = [8, 128], strides = [1, 1]} : vector<8x384xf32> to vector<8x128xf32>
    %608 = arith.addf %606, %607 : vector<8x128xf32>
    %609 = arith.negf %608 : vector<8x128xf32>
    %610 = math.exp %609 : vector<8x128xf32>
    %cst_114 = arith.constant 1.000000e+00 : f32
    %611 = vector.broadcast %cst_114 : f32 to vector<8x128xf32>
    %612 = arith.addf %611, %610 : vector<8x128xf32>
    %613 = arith.divf %611, %612 : vector<8x128xf32>
    %614 = vector.extract_strided_slice %595 {offsets = [0, 256], sizes = [8, 128], strides = [1, 1]} : vector<8x384xf32> to vector<8x128xf32>
    %615 = vector.extract_strided_slice %597 {offsets = [0, 256], sizes = [8, 128], strides = [1, 1]} : vector<8x384xf32> to vector<8x128xf32>
    %616 = vector.broadcast %8 : vector<1x128xf32> to vector<8x128xf32>
    %617 = arith.addf %615, %616 : vector<8x128xf32>
    %618 = arith.mulf %605, %617 : vector<8x128xf32>
    %619 = arith.addf %614, %618 : vector<8x128xf32>
    %620 = math.tanh %619 : vector<8x128xf32>
    %cst_115 = arith.constant 1.000000e+00 : f32
    %621 = vector.broadcast %cst_115 : f32 to vector<8x128xf32>
    %622 = arith.subf %621, %613 : vector<8x128xf32>
    %623 = arith.mulf %622, %620 : vector<8x128xf32>
    %624 = arith.mulf %613, %548 : vector<8x128xf32>
    %625 = arith.addf %623, %624 : vector<8x128xf32>
    %626 = vector.broadcast %555 : i32 to vector<8x1xi32>
    %627 = arith.cmpi eq, %9, %626 : vector<8x1xi32>
    %628 = vector.shape_cast %627 : vector<8x1xi1> to vector<8x1xi1>
    %629 = vector.broadcast %628 : vector<8x1xi1> to vector<8x128xi1>
    %630 = arith.select %629, %625, %553 : vector<8x128xi1>, vector<8x128xf32>
    %c8_i32_116 = arith.constant 8 : i32
    %c0_117 = arith.constant 0 : index
    %c0_118 = arith.constant 0 : index
    %c0_119 = arith.constant 0 : index
    %631 = vector.load %arg10[%c0_117, %c0_118, %c0_119] : memref<2x8x128xf32, #tpu.memory_space<vmem>>, vector<1x8x128xf32>
    %632 = vector.shape_cast %631 : vector<1x8x128xf32> to vector<8x128xf32>
    %633 = vector.shape_cast %591 : vector<8x128xf32> to vector<1x8x128xf32>
    tpu.vector_store %arg10[%c0_117, %c0_118, %c0_119], %633 {strides = array<i32>} : memref<2x8x128xf32, #tpu.memory_space<vmem>>, vector<1x8x128xf32>,
    %c1_120 = arith.constant 1 : index
    %c0_121 = arith.constant 0 : index
    %c0_122 = arith.constant 0 : index
    %634 = vector.load %arg10[%c1_120, %c0_121, %c0_122] : memref<2x8x128xf32, #tpu.memory_space<vmem>>, vector<1x8x128xf32>
    %635 = vector.shape_cast %634 : vector<1x8x128xf32> to vector<8x128xf32>
    %636 = vector.shape_cast %625 : vector<8x128xf32> to vector<1x8x128xf32>
    tpu.vector_store %arg10[%c1_120, %c0_121, %c0_122], %636 {strides = array<i32>} : memref<2x8x128xf32, #tpu.memory_space<vmem>>, vector<1x8x128xf32>,
    %c0_123 = arith.constant 0 : index
    %c0_124 = arith.constant 0 : index
    %637 = vector.load %arg9[%c0_123, %c0_124] : memref<8x128xf32, #tpu.memory_space<vmem>>, vector<8x128xf32>
    tpu.vector_store %arg9[%c0_123, %c0_124], %630 {strides = array<i32>} : memref<8x128xf32, #tpu.memory_space<vmem>>, vector<8x128xf32>,
    return
  }
  func.func @transform_0(%arg0: i32) -> (i32, i32, i32) {
    %c0_i32 = arith.constant 0 : i32
    %c0_i32_0 = arith.constant 0 : i32
    %c0_i32_1 = arith.constant 0 : i32
    return %arg0, %c0_i32, %c0_i32_0 : i32, i32, i32
  }
  func.func @transform_1(%arg0: i32) -> (i32, i32) {
    %c0_i32 = arith.constant 0 : i32
    %c0_i32_0 = arith.constant 0 : i32
    %c0_i32_1 = arith.constant 0 : i32
    return %c0_i32, %c0_i32_0 : i32, i32
  }
  func.func @transform_2(%arg0: i32) -> (i32, i32) {
    %c0_i32 = arith.constant 0 : i32
    %c0_i32_0 = arith.constant 0 : i32
    %c0_i32_1 = arith.constant 0 : i32
    return %c0_i32, %c0_i32_0 : i32, i32
  }
  func.func @transform_3(%arg0: i32) -> (i32, i32) {
    %c0_i32 = arith.constant 0 : i32
    %c0_i32_0 = arith.constant 0 : i32
    %c0_i32_1 = arith.constant 0 : i32
    return %c0_i32, %c0_i32_0 : i32, i32
  }
  func.func @transform_4(%arg0: i32) -> (i32, i32) {
    %c0_i32 = arith.constant 0 : i32
    %c0_i32_0 = arith.constant 0 : i32
    %c0_i32_1 = arith.constant 0 : i32
    return %c0_i32, %c0_i32_0 : i32, i32
  }
  func.func @transform_5(%arg0: i32) -> (i32, i32) {
    %c0_i32 = arith.constant 0 : i32
    %c0_i32_0 = arith.constant 0 : i32
    %c0_i32_1 = arith.constant 0 : i32
    return %c0_i32, %c0_i32_0 : i32, i32
  }
  func.func @transform_6(%arg0: i32) -> (i32, i32) {
    %c0_i32 = arith.constant 0 : i32
    %c0_i32_0 = arith.constant 0 : i32
    %c0_i32_1 = arith.constant 0 : i32
    return %c0_i32, %c0_i32_0 : i32, i32
  }
  func.func @transform_7(%arg0: i32) -> (i32, i32) {
    %c0_i32 = arith.constant 0 : i32
    %c0_i32_0 = arith.constant 0 : i32
    %c0_i32_1 = arith.constant 0 : i32
    return %c0_i32, %c0_i32_0 : i32, i32
  }
  func.func @transform_8(%arg0: i32) -> (i32, i32) {
    %c0_i32 = arith.constant 0 : i32
    %c0_i32_0 = arith.constant 0 : i32
    %c0_i32_1 = arith.constant 0 : i32
    return %c0_i32, %c0_i32_0 : i32, i32
  }
}

</mosaic_0001>

<bundles_post_ra>
// kernel: gru4rec_forward.3
= control target key start
LH: loop header
LB: loop body
LE: loop exit
PB: predicated region body
PF: predicated region fallthrough
CT: control target
= control target key end

     0   :  { %v436_v1 = vmov 0   ;;  %vm100_vm0 = vcmask 261120   ;;  %v33_v11 = vlaneseq  ;;  %s566_s1 = inlined_call_operand.vmem [shape: bf16[32,384], index: 1, kind: input, shape index: {}]   ;;  %s567_s0 = inlined_call_operand.vmem [shape: bf16[64,32], index: 0, kind: input, shape index: {}]   ;;  %s568_s2 = inlined_call_operand.vmem [shape: f32[1,384], index: 2, kind: input, shape index: {}]   ;;  %s569_s3 = inlined_call_operand.vmem [shape: bf16[64,384], index: 3, kind: output, shape index: {}]  }
   0x1   :  { %v424_v0 = vld [vmem:[%s566_s1 + $0x4] ss:$12 sps:$4 sm:$0xff]   ;;  %145 = vmatprep.mubr.bf16.mxu0 %v436_v1  ;;  %175 = vmatprep.mubr.bf16.mxu1 %v436_v1  ;;  %v426_v2 = vld [vmem:[%s566_s1] ss:$12 sps:$4 sm:$0xff]   ;;  %v427_v3 = vld [vmem:[%s566_s1 + $0x1c] ss:$12 sps:$4 sm:$0xff]  }
   0x2   :  { %113 = vmatprep.subr.bf16.mxu0 %v424_v0  ;;  %419 = vmatprep.subr.bf16.mxu1 %v424_v0  ;;  %v429_v4 = vld [vmem:[%s566_s1 + $0x18] ss:$12 sps:$4 sm:$0xff]   ;;  %v432_v6 = vld [vmem:[%s566_s1 + $0x8] ss:$12 sps:$4 sm:$0xff]   ;;  %v433_v8 = vld [vmem:[%s566_s1 + $0x20] ss:$12 sps:$4 sm:$0xff]  }
   0x3   :  { %114 = vmatpush1.bf16.msra.mxu0 %v426_v2  ;;  %421 = vmatpush1.bf16.msra.mxu1 %v426_v2  ;;  %v430_v5 = vld [vmem:[%s567_s0] sm:$0xff]   ;;  %v431_v7 = vld [vmem:[%s567_s0 + $0x18] sm:$0xff]   ;;  %v434_v9 = vld [vmem:[%s567_s0 + $0x8] sm:$0xff]   ;;  %v34_v12 = vshrl.u32 %v33_v11, 7 }
   0x4   :  { %115 = vmatprep.subr.bf16.mxu0 %v427_v3  ;;  %420 = vmatprep.subr.bf16.mxu1 %v427_v3  ;;  %v435_v10 = vld [vmem:[%s567_s0 + $0x10] sm:$0xff]   ;;  %v31_v14 = vld [vmem:[%s568_s2] sm:$0x7] }
   0x5   :  { %v35_v13 = vsub.s32 0, %v34_v12  ;;  %v39_v15 = vsub.s32 1, %v34_v12  ;;  %v43_v24 = vsub.s32 2, %v34_v12 }
   0x7   :  { %116 = vmatpush1.bf16.msra.mxu0 %v429_v4  ;;  %422 = vmatpush1.bf16.msra.mxu1 %v429_v4  ;;  %v498_v16 = vrot.slane %v31_v14, %v35_v13  ;;  %v500_v17 = vrot.slane %v31_v14, %v39_v15  ;;  %v44_v37 = vrot.slane %v31_v14, %v43_v24 }
   0x8   :  { %407 = vmatprep.subr.bf16.mxu1 %v432_v6 }
   0xa   :  { %361 = vmatmul.mubr.msk.bf16.vlgmr.msra.gmra.mrb[0].mxu0 %vm100_vm0, %v430_v5  ;;  %364 = vmatmul.mubr.msk.bf16.vlgmr.msra.gmra.mrb[0].mxu1 %vm100_vm0, %v431_v7 }
   0xb   :  { %408 = vmatpush3.bf16.msra.mxu1 %v432_v6  ;;  %155 = vmatprep.mubr.bf16.mxu0 %v436_v1 }
   0xc   :  { %409 = vmatprep.subr.bf16.mxu1 %v433_v8  ;;  %411 = vmatprep.mubr.msk.bf16.mxu1 %vm100_vm0, %v430_v5 }
   0xf   :  { %410 = vmatpush3.bf16.msra.mxu1 %v433_v8 }
  0x12   :  { %362 = vmatmul.mubr.msk.bf16.gmra.mrb[4].mxu0 %vm100_vm0, %v434_v9  ;;  %412 = vmatmul.mubr.msk.bf16.vlgmr.msra.gmra.mrb[4].mxu1 %vm100_vm0, %v434_v9 }
  0x13   :  { %165 = vmatprep.mubr.bf16.mxu0 %v436_v1  ;;  %415 = vmatprep.mubr.msk.bf16.mxu1 %vm100_vm0, %v435_v10 }
  0x1a   :  { %363 = vmatmul.mubr.msk.bf16.gmra.mrb[8].mxu0 %vm100_vm0, %v435_v10  ;;  %416 = vmatmul.mubr.msk.bf16.gmra.mrb[8].mxu1 %vm100_vm0, %v431_v7 }
  0xdd   :  { %v147_v18 = vpop.f32.mrb[0].mxu0  ;;  %v177_v19 = vpop.f32.mrb[0].mxu1 }
  0xde   :  { %v148_v20 = vadd.f32 %v147_v18, %v498_v16  ;;  %v178_v21 = vadd.f32 %v177_v19, %v498_v16  ;;  %v149_v22 = vpop.f32.mrb[1].mxu0  ;;  %v179_v23 = vpop.f32.mrb[1].mxu1 }
  0xdf   :  { %v150_v25 = vadd.f32 %v149_v22, %v500_v17  ;;  %v180_v26 = vadd.f32 %v179_v23, %v500_v17  ;;  %v151_v27 = vpop.f32.mrb[2].mxu0  ;;  %v181_v28 = vpop.f32.mrb[2].mxu1 }
  0xe0   :  { %v152_v29 = vadd.f32 %v151_v27, %v498_v16  ;;  %v182_v30 = vadd.f32 %v181_v28, %v498_v16  ;;  %v153_v31 = vpop.f32.mrb[3].mxu0  ;;  %v183_v32 = vpop.f32.mrb[3].mxu1 }
  0xe1   :  { %v385_v33 = vpack.c.bf16 %v150_v25, %v148_v20  ;;  %v397_v34 = vpack.c.bf16 %v180_v26, %v178_v21  ;;  %v154_v35 = vadd.f32 %v153_v31, %v500_v17  ;;  %v184_v36 = vadd.f32 %v183_v32, %v500_v17 }
  0xe3   :  { %331 = vst [vmem:[%s569_s3] sm:$0xff] %v385_v33  ;;  %343 = vst [vmem:[%s569_s3 + $0x48] sm:$0xff] %v397_v34  ;;  %v387_v38 = vpack.c.bf16 %v154_v35, %v152_v29  ;;  %v399_v39 = vpack.c.bf16 %v184_v36, %v182_v30 }
  0xe5   :  { %333 = vst [vmem:[%s569_s3 + $0xc] sm:$0xff] %v387_v38  ;;  %345 = vst [vmem:[%s569_s3 + $0x54] sm:$0xff] %v399_v39  ;;  %v157_v40 = vpop.f32.mrb[4].mxu0  ;;  %v413_v41 = vpop.f32.mrb[4].mxu1 }
  0xe6   :  { %v158_v42 = vadd.f32 %v157_v40, %v498_v16  ;;  %v229_v43 = vadd.f32 %v413_v41, %v44_v37  ;;  %v159_v44 = vpop.f32.mrb[5].mxu0  ;;  %v220_v45 = vpop.f32.mrb[5].mxu1 }
  0xe7   :  { %v160_v46 = vadd.f32 %v159_v44, %v500_v17  ;;  %v221_v47 = vadd.f32 %v220_v45, %v44_v37  ;;  %v161_v48 = vpop.f32.mrb[6].mxu0  ;;  %v414_v49 = vpop.f32.mrb[6].mxu1 }
  0xe8   :  { %v390_v50 = vpack.c.bf16 %v229_v43, %v229_v43  ;;  %v162_v51 = vadd.f32 %v161_v48, %v498_v16  ;;  %v232_v52 = vadd.f32 %v414_v49, %v44_v37  ;;  %v163_v53 = vpop.f32.mrb[7].mxu0  ;;  %v223_v54 = vpop.f32.mrb[7].mxu1 }
  0xe9   :  { %v389_v55 = vpack.c.bf16 %v160_v46, %v158_v42  ;;  %v386_v56 = vpack.c.bf16 %v221_v47, %v221_v47  ;;  %v164_v57 = vadd.f32 %v163_v53, %v500_v17  ;;  %v224_v58 = vadd.f32 %v223_v54, %v44_v37 }
  0xea   :  { %336 = vst [vmem:[%s569_s3 + $0x20] sm:$0xf] %v390_v50  ;;  %v392_v59 = vpack.c.bf16 %v232_v52, %v232_v52 }
  0xeb   :  { %335 = vst [vmem:[%s569_s3 + $0x18] sm:$0xff] %v389_v55  ;;  %332 = vst [vmem:[%s569_s3 + $0x8] sm:$0xf] %v386_v56  ;;  %v391_v60 = vpack.c.bf16 %v164_v57, %v162_v51  ;;  %v388_v61 = vpack.c.bf16 %v224_v58, %v224_v58 }
  0xec   :  { %338 = vst [vmem:[%s569_s3 + $0x2c] sm:$0xf] %v392_v59 }
  0xed   :  { %337 = vst [vmem:[%s569_s3 + $0x24] sm:$0xff] %v391_v60  ;;  %334 = vst [vmem:[%s569_s3 + $0x14] sm:$0xf] %v388_v61  ;;  %v167_v62 = vpop.f32.mrb[8].mxu0  ;;  %v417_v63 = vpop.f32.mrb[8].mxu1 }
  0xee   :  { %v168_v0 = vadd.f32 %v167_v62, %v498_v16  ;;  %v245_v1 = vadd.f32 %v417_v63, %v44_v37  ;;  %v169_v2 = vpop.f32.mrb[9].mxu0  ;;  %v236_v3 = vpop.f32.mrb[9].mxu1 }
  0xef   :  { %v170_v4 = vadd.f32 %v169_v2, %v500_v17  ;;  %v237_v5 = vadd.f32 %v236_v3, %v44_v37  ;;  %v171_v6 = vpop.f32.mrb[10].mxu0  ;;  %v418_v7 = vpop.f32.mrb[10].mxu1 }
  0xf0   :  { %v398_v8 = vpack.c.bf16 %v245_v1, %v245_v1  ;;  %v172_v9 = vadd.f32 %v171_v6, %v498_v16  ;;  %v248_v10 = vadd.f32 %v418_v7, %v44_v37  ;;  %v173_v11 = vpop.f32.mrb[11].mxu0  ;;  %v239_v12 = vpop.f32.mrb[11].mxu1 }
  0xf1   :  { %v393_v13 = vpack.c.bf16 %v170_v4, %v168_v0  ;;  %v394_v14 = vpack.c.bf16 %v237_v5, %v237_v5  ;;  %v174_v15 = vadd.f32 %v173_v11, %v500_v17  ;;  %v240_v18 = vadd.f32 %v239_v12, %v44_v37 }
  0xf2   :  { %344 = vst [vmem:[%s569_s3 + $0x50] sm:$0xf] %v398_v8  ;;  %v400_v19 = vpack.c.bf16 %v248_v10, %v248_v10 }
  0xf3   :  { %339 = vst [vmem:[%s569_s3 + $0x30] sm:$0xff] %v393_v13  ;;  %340 = vst [vmem:[%s569_s3 + $0x38] sm:$0xf] %v394_v14  ;;  %v395_v16 = vpack.c.bf16 %v174_v15, %v172_v9  ;;  %v396_v20 = vpack.c.bf16 %v240_v18, %v240_v18 }
  0xf4   :  { %346 = vst [vmem:[%s569_s3 + $0x5c] sm:$0xf] %v400_v19 }
  0xf5   :  { %341 = vst [vmem:[%s569_s3 + $0x3c] sm:$0xff] %v395_v16  ;;  %342 = vst [vmem:[%s569_s3 + $0x44] sm:$0xf] %v396_v20 }

// kernel: gru4rec_forward.5
= control target key start
LH: loop header
LB: loop body
LE: loop exit
PB: predicated region body
PF: predicated region fallthrough
CT: control target
= control target key end

     0   :  { %v446_v0 = vmov 0.0   ;;  %vm447_vm0 = vmmov 0   ;;  %v448_v15 = vmov 0   ;;  %vm139_vm1 = vcmask 257024   ;;  %s557_s1 = inlined_call_operand.vmem [shape: bf16[128,32], index: 1, kind: input, shape index: {}]   ;;  %s558_s0 = inlined_call_operand.vmem [shape: f32[8,128], index: 0, kind: input, shape index: {}]   ;;  %s559_s4 = inlined_call_operand.vmem [shape: bf16[32,384], index: 4, kind: input, shape index: {}]   ;;  %s560_s3 = inlined_call_operand.vmem [shape: s32[8,1], index: 3, kind: input, shape index: {}]   ;;  %s561_s2 = inlined_call_operand.vmem [shape: f32[1,32], index: 2, kind: input, shape index: {}]   ;;  %s562_s5 = inlined_call_operand.vmem [shape: f32[8,1], index: 5, kind: output, shape index: {}]  }
   0x1   :  { %386 = vmatprep.subr.bf16.mxu0 %v446_v0  ;;  %v420_v1 = vld [vmem:[%s557_s1] sm:$0xff]   ;;  %402 = vmatprep.mubr.msk.bf16.mxu0 %vm447_vm0, %v446_v0  ;;  %v421_v2 = vld [vmem:[%s557_s1 + $0x8] sm:$0xff]   ;;  %v422_v3 = vld [vmem:[%s557_s1 + $0x10] sm:$0xff]   ;;  %vm186_vm2 = vcmask 261120   ;;  %vm141_vm3 = vcmask 7168   ;;  %v449_v27 = vmov -inf   ;;  %v272_v28 = vlaneseq }
   0x2   :  { %387 = vmatpush3.bf16.msra.mxu0 %v420_v1  ;;  %v423_v4 = vld [vmem:[%s557_s1 + $0x18] sm:$0xff]   ;;  %v424_v5 = vld [vmem:[%s557_s1 + $0x20] sm:$0xff]   ;;  %v425_v6 = vld [vmem:[%s557_s1 + $0x28] sm:$0xff]   ;;  %222 = vmatprep.mubr.bf16.mxu1 %v448_v15  ;;  %142 = vst.msk [vmem:[#allocation3] sm:$0xff] %vm141_vm3, %v449_v27 }
   0x3   :  { %388 = vmatprep.subr.bf16.mxu0 %v446_v0  ;;  %v426_v7 = vld [vmem:[%s557_s1 + $0x30] sm:$0xff]   ;;  %v427_v8 = vld [vmem:[%s557_s1 + $0x38] sm:$0xff]   ;;  %v25_v9 = vld [vmem:[%s558_s0] sm:$0xff]  ;;  %419 = vset.pattern.permute.xlu1 %v448_v15  ;;  %143 = vst.msk [vmem:[#allocation4] sm:$0xff] %vm141_vm3, %v446_v0  ;;  %v273_v29 = vand.u32 127, %v272_v28 }
   0x4   :  { %v26_v10 = vpack.c.bf16 %v25_v9, %v25_v9  ;;  %v428_v11 = vld [vmem:[%s559_s4 + $0x4] ss:$12 sps:$4 sm:$0xff]   ;;  %v430_v12 = vld [vmem:[%s559_s4] ss:$12 sps:$4 sm:$0xff]   ;;  %v431_v13 = vld [vmem:[%s559_s4 + $0x1c] ss:$12 sps:$4 sm:$0xff]   ;;  %418 = vset.pattern.permute.xlu0 %v448_v15 }
   0x5   :  { %190 = vmatprep.subr.bf16.mxu1 %v428_v11  ;;  %v433_v14 = vld [vmem:[%s559_s4 + $0x18] ss:$12 sps:$4 sm:$0xff]   ;;  %v357_v17 = vld [vmem:[%s561_s2] ss:$0 sm:$0xff]  ;;  %v434_v24 = vld [vmem:[%s559_s4 + $0x8] ss:$12 sps:$4 sm:$0xff]  }
   0x6   :  { %389 = vmatpush3.bf16.msra.mxu0 %v421_v2  ;;  %191 = vmatpush1.bf16.msra.mxu1 %v430_v12  ;;  %v325_v16 = vld [vmem:[%s560_s3] sm:$0xff]  ;;  %144 = vst.msk [vmem:[#allocation5] sm:$0xff] %vm141_vm3, %v446_v0  ;;  %v274_v30 = vadd.s32 128, %v273_v29  ;;  %vm280_vm4 = vcmp.ge.s32.totalorder %v273_v29, 1  ;;  %v275_v35 = vadd.s32 256, %v273_v29 }
   0x7   :  { %390 = vmatprep.subr.bf16.mxu0 %v446_v0  ;;  %192 = vmatprep.subr.bf16.mxu1 %v431_v13  ;;  %v435_v26 = vld [vmem:[%s559_s4 + $0x20] ss:$12 sps:$4 sm:$0xff]  }
   0x8   :  { %327 = vperm.xlu1 %419, %v325_v16   ;;  %vm285_vm7 = vcmp.lt.s32.totalorder %v275_v35, 257 }
   0x9   :  { %v292_v50 = vld [vmem:[#allocation3] sm:$0xff] }
   0xa   :  { %391 = vmatpush3.bf16.msra.mxu0 %v422_v3  ;;  %193 = vmatpush1.bf16.msra.mxu1 %v433_v14 }
   0xb   :  { %392 = vmatprep.subr.bf16.mxu0 %v446_v0  ;;  %406 = vmatprep.subr.bf16.mxu1 %v446_v0 }
   0xe   :  { %393 = vmatpush3.bf16.msra.mxu0 %v423_v4  ;;  %v301_v4 = vld [vmem:[#allocation4] sm:$0xff] }
   0xf   :  { %394 = vmatprep.subr.bf16.mxu0 %v446_v0 }
  0x12   :  { %395 = vmatpush3.bf16.msra.mxu0 %v424_v5 }
  0x13   :  { %396 = vmatprep.subr.bf16.mxu0 %v446_v0 }
  0x16   :  { %397 = vmatpush3.bf16.msra.mxu0 %v425_v6 }
  0x17   :  { %398 = vmatprep.subr.bf16.mxu0 %v446_v0 }
  0x1a   :  { %399 = vmatpush3.bf16.msra.mxu0 %v426_v7 }
  0x1b   :  { %400 = vmatprep.subr.bf16.mxu0 %v446_v0 }
  0x1e   :  { %401 = vmatpush3.bf16.msra.mxu0 %v427_v8  ;;  %v332_v8 = vld [vmem:[#allocation5] sm:$0xff] }
  0x21   :  { %403 = vmatmul.mubr.bf16.vlgmr.msra.gmra.mrb[0].mxu0 %v26_v10 }
  0x87   :  { %v328_v31 = vpop.permute.xlu1 %327 }
  0x88   :  { %vm329_vm5 = vcmp.eq.s32.totalorder %v273_v29, %v328_v31  ;;  %vm330_vm6 = vcmp.eq.s32.totalorder %v274_v30, %v328_v31  ;;  %vm331_vm8 = vcmp.eq.s32.totalorder %v275_v35, %v328_v31 }
  0xf4   :  { %v132_v18 = vpop.f32.mrb[0].mxu0 }
  0xf5   :  { %v133_v19 = vadd.f32 %v357_v17, %v132_v18  ;;  %v404_v20 = vpop.f32.mrb[1].mxu0 }
  0xf6   :  { %v135_v21 = vpop.f32.mrb[2].mxu0 }
  0xf7   :  { %v138_v22 = vpack.c.bf16 %v133_v19, %v133_v19  ;;  %v405_v23 = vpop.f32.mrb[3].mxu0 }
  0xf9   :  { %140 = vst.msk [vmem:[#allocation2] sm:$0xf] %vm139_vm1, %v138_v22 }
 0x100   :  { %v145_v25 = vld [vmem:[#allocation2] sm:$0xf] }
 0x101   :  { %372 = vmatmul.mubr.msk.bf16.vlgmr.msra.gmra.mrb[0].mxu1 %vm186_vm2, %v145_v25 }
 0x102   :  { %407 = vmatpush3.bf16.msra.mxu1 %v434_v24  ;;  %410 = vmatprep.mubr.msk.bf16.mxu1 %vm447_vm0, %v446_v0 }
 0x103   :  { %408 = vmatprep.subr.bf16.mxu1 %v446_v0 }
 0x106   :  { %409 = vmatpush3.bf16.msra.mxu1 %v435_v26 }
 0x109   :  { %411 = vmatmul.mubr.msk.bf16.vlgmr.msra.gmra.mrb[4].mxu1 %vm186_vm2, %v145_v25 }
 0x1d4   :  { %v224_v32 = vpop.f32.mrb[0].mxu1 }
 0x1d5   :  { %v226_v33 = vpop.f32.mrb[1].mxu1  ;;  %v289_v36 = vsel %vm280_vm4, %v224_v32, -inf }
 0x1d6   :  { %v228_v34 = vpop.f32.mrb[2].mxu1  ;;  %v333_v38 = vsel %vm329_vm5, %v289_v36, 0.0  ;;  %v334_v39 = vsel %vm330_vm6, %v226_v33, 0.0  ;;  %v293_v41 = vmax.f32 %v289_v36, %v226_v33 }
 0x1d7   :  { %v229_v37 = vpop.f32.mrb[3].mxu1  ;;  %v336_v44 = vadd.f32 %v334_v39, %v333_v38 }
 0x1dc   :  { %v265_v40 = vpop.f32.mrb[4].mxu1 }
 0x1dd   :  { %v291_v42 = vsel %vm285_vm7, %v265_v40, -inf  ;;  %v412_v43 = vpop.f32.mrb[5].mxu1 }
 0x1de   :  { %v268_v45 = vpop.f32.mrb[6].mxu1  ;;  %v294_v46 = vmax.f32 %v293_v41, %v291_v42  ;;  %v335_v47 = vsel %vm331_vm8, %v291_v42, 0.0 }
 0x1df   :  { %v413_v48 = vpop.f32.mrb[7].mxu1  ;;  %v337_v49 = vadd.f32 %v336_v44, %v335_v47 }
 0x1e0   :  { %295 = vmax.xlane.f32.xlu0 %v294_v46 }
 0x26d   :  { %v296_v51 = vpop.xlane.xlu0 %295 }
 0x26e   :  { %v297_v52 = vmax.f32 %v292_v50, %v296_v51 }
 0x270   :  { %v298_v53 = vsub.f32 %v292_v50, %v297_v52  ;;  %324 = vst.msk [vmem:[#allocation3] sm:$0xff] %vm141_vm3, %v297_v52  ;;  %305 = vperm.xlu0 %418, %v297_v52  }
 0x272   :  { %v299_v2 = vmul.f32 1.442695, %v298_v53 }
 0x277   :  { %v345_v14 = vld [vmem:[#allocation3] sm:$0xff] }
 0x2ef   :  { %v306_v54 = vpop.permute.xlu0 %305 }
 0x2f0   :  { %v308_v55 = vsub.f32 %v289_v36, %v306_v54  ;;  %v309_v56 = vsub.f32 %v226_v33, %v306_v54  ;;  %v310_v57 = vsub.f32 %v291_v42, %v306_v54 }
 0x2f2   :  { %v311_v58 = vmul.f32 1.442695, %v308_v55  ;;  %v313_v59 = vmul.f32 1.442695, %v309_v56  ;;  %v315_v60 = vmul.f32 1.442695, %v310_v57 }
 0x2f4   :  { %436 = vpow2.f32 %v311_v58 }
 0x2f5   :  { %438 = vpow2.f32 %v313_v59 }
 0x2f6   :  { %440 = vpow2.f32 %v315_v60 }
 0x2f7   :  { %442 = vpow2.f32 %v299_v2 }
 0x2fe   :  { %v437_v61 = vpop.eup %436 }
 0x2ff   :  { %v439_v62 = vpop.eup %438 }
 0x300   :  { %v317_v63 = vadd.f32 %v439_v62, %v437_v61  ;;  %v441_v0 = vpop.eup %440 }
 0x301   :  { %v443_v3 = vpop.eup %442 }
 0x302   :  { %v318_v1 = vadd.f32 %v441_v0, %v317_v63  ;;  %v302_v5 = vmul.f32 %v443_v3, %v301_v4 }
 0x304   :  { %319 = vadd.xlane.f32.xlu1 %v318_v1 }
 0x308   :  { %338 = vadd.xlane.f32.xlu1 %v337_v49 }
 0x391   :  { %v320_v6 = vpop.xlane.xlu1 %319 }
 0x392   :  { %v321_v7 = vadd.f32 %v320_v6, %v302_v5 }
 0x394   :  { %323 = vst.msk [vmem:[#allocation4] sm:$0xff] %vm141_vm3, %v321_v7 }
 0x395   :  { %v339_v9 = vpop.xlane.xlu1 %338 }
 0x396   :  { %v340_v10 = vadd.f32 %v339_v9, %v332_v8 }
 0x398   :  { %341 = vst.msk [vmem:[#allocation5] sm:$0xff] %vm141_vm3, %v340_v10 }
 0x39b   :  { %v346_v11 = vld [vmem:[#allocation4] sm:$0xff] }
 0x39c   :  { %444 = vlog2.f32 %v346_v11 }
 0x39f   :  { %v350_v16 = vld [vmem:[#allocation5] sm:$0xff] }
 0x3a6   :  { %v445_v12 = vpop.eup %444 }
 0x3a7   :  { %v348_v13 = vmul.f32 0.6931472, %v445_v12 }
 0x3a9   :  { %v349_v15 = vadd.f32 %v348_v13, %v345_v14 }
 0x3ab   :  { %v351_v17 = vsub.f32 %v349_v15, %v350_v16 }
 0x3ad   :  { %352 = vst.msk [vmem:[%s562_s5] sm:$0xff] %vm141_vm3, %v351_v17 }

// kernel: gru4rec_forward.4
= control target key start
LH: loop header
LB: loop body
LE: loop exit
PB: predicated region body
PF: predicated region fallthrough
CT: control target
= control target key end

     0   :  { %v6561_v1 = vmov 0.0   ;;  %v6567_v2 = vmov 0   ;;  %vm4294_vm0 = vmmov 0   ;;  %v6559_v25 = vmov 0.0|0.0   ;;  %s6550_s2 = inlined_call_operand.vmem [shape: bf16[128,384], index: 2, kind: input, shape index: {}]   ;;  %s6551_s4 = inlined_call_operand.vmem [shape: bf16[128,384], index: 4, kind: input, shape index: {}]   ;;  %s6552_s6 = inlined_call_operand.vmem [shape: bf16[128,384], index: 6, kind: input, shape index: {}]   ;;  %s6553_s1 = inlined_call_operand.vmem [shape: s32[8,1], index: 1, kind: input, shape index: {}]   ;;  %s6554_s0 = inlined_call_operand.vmem [shape: bf16[8,8,384], index: 0, kind: input, shape index: {}]   ;;  %s6555_s3 = inlined_call_operand.vmem [shape: f32[1,128], index: 3, kind: input, shape index: {}]   ;;  %s6556_s5 = inlined_call_operand.vmem [shape: f32[1,384], index: 5, kind: input, shape index: {}]   ;;  %s6557_s7 = inlined_call_operand.vmem [shape: f32[1,128], index: 7, kind: input, shape index: {}]   ;;  %s6558_s8 = inlined_call_operand.vmem [shape: f32[8,128], index: 8, kind: output, shape index: {}]  }
   0x1   :  { %v4344_v0 = vld [vmem:[%s6550_s2 + $0x4] ss:$12 sps:$4 sm:$0xff]   ;;  %3352 = vmatprep.subr.bf16.mxu1 %v6561_v1  ;;  %305 = vmatprep.mubr.bf16.mxu0 %v6567_v2  ;;  %v4351_v3 = vld [vmem:[%s6550_s2] ss:$12 sps:$4 sm:$0xff]   ;;  %v4360_v4 = vld [vmem:[%s6550_s2 + $0x1c] ss:$12 sps:$4 sm:$0xff]  }
   0x2   :  { %3368 = vmatprep.mubr.msk.bf16.mxu1 %vm4294_vm0, %v6561_v1  ;;  %3884 = vset.pattern.permute.xlu0 %v6567_v2  ;;  %v4367_v5 = vld [vmem:[%s6550_s2 + $0x18] ss:$12 sps:$4 sm:$0xff]   ;;  %v4373_v6 = vld [vmem:[%s6550_s2 + $0x34] ss:$12 sps:$4 sm:$0xff]   ;;  %v4379_v7 = vld [vmem:[%s6550_s2 + $0x30] ss:$12 sps:$4 sm:$0xff]  }
   0x3   :  { %273 = vmatprep.subr.bf16.mxu0 %v4344_v0  ;;  %3885 = vset.pattern.permute.xlu1 %v6567_v2  ;;  %v4385_v8 = vld [vmem:[%s6550_s2 + $0x4c] ss:$12 sps:$4 sm:$0xff]   ;;  %v4390_v9 = vld [vmem:[%s6550_s2 + $0x8] ss:$12 sps:$4 sm:$0xff]   ;;  %v4403_v11 = vld [vmem:[%s6550_s2 + $0x64] ss:$12 sps:$4 sm:$0xff]  }
   0x4   :  { %274 = vmatpush1.bf16.msra.mxu0 %v4351_v3  ;;  %v4396_v10 = vld [vmem:[%s6550_s2 + $0x48] ss:$12 sps:$4 sm:$0xff]   ;;  %3353 = vmatpush3.bf16.msra.mxu1 %v4390_v9  ;;  %v4409_v12 = vld [vmem:[%s6550_s2 + $0x20] ss:$12 sps:$4 sm:$0xff]   ;;  %v4421_v14 = vld [vmem:[%s6550_s2 + $0x38] ss:$12 sps:$4 sm:$0xff]  }
   0x5   :  { %275 = vmatprep.subr.bf16.mxu0 %v4360_v4  ;;  %3354 = vmatprep.subr.bf16.mxu1 %v6561_v1  ;;  %v4414_v13 = vld [vmem:[%s6550_s2 + $0x60] ss:$12 sps:$4 sm:$0xff]   ;;  %v4427_v15 = vld [vmem:[%s6550_s2 + $0x7c] ss:$12 sps:$4 sm:$0xff]   ;;  %v4434_v16 = vld [vmem:[%s6550_s2 + $0x78] ss:$12 sps:$4 sm:$0xff]  }
   0x6   :  { %v4440_v17 = vld [vmem:[%s6550_s2 + $0x50] ss:$12 sps:$4 sm:$0xff]   ;;  %v4446_v18 = vld [vmem:[%s6550_s2 + $0x94] ss:$12 sps:$4 sm:$0xff]   ;;  %v4465_v21 = vld [vmem:[%s6550_s2 + $0xac] ss:$12 sps:$4 sm:$0xff]  }
   0x7   :  { %v4453_v19 = vld [vmem:[%s6550_s2 + $0x90] ss:$12 sps:$4 sm:$0xff]   ;;  %v4459_v20 = vld [vmem:[%s6550_s2 + $0x68] ss:$12 sps:$4 sm:$0xff]   ;;  %v4478_v23 = vld [vmem:[%s6550_s2 + $0x80] ss:$12 sps:$4 sm:$0xff]  }
   0x8   :  { %276 = vmatpush1.bf16.msra.mxu0 %v4367_v5  ;;  %3355 = vmatpush3.bf16.msra.mxu1 %v4409_v12  ;;  %v4472_v22 = vld [vmem:[%s6550_s2 + $0xa8] ss:$12 sps:$4 sm:$0xff]   ;;  %v4487_v24 = vld [vmem:[%s6550_s2 + $0x98] ss:$12 sps:$4 sm:$0xff]   ;;  %v4495_v26 = vld [vmem:[%s6550_s2 + $0xb0] ss:$12 sps:$4 sm:$0xff]  }
   0x9   :  { %277 = vmatprep.subr.bf16.mxu0 %v4373_v6  ;;  %3356 = vmatprep.subr.bf16.mxu1 %v6561_v1  ;;  %v4507_v27 = vld [vmem:[%s6551_s4 + $0x4] ss:$12 sps:$4 sm:$0xff]   ;;  %v4512_v28 = vld [vmem:[%s6551_s4] ss:$12 sps:$4 sm:$0xff]   ;;  %v4518_v29 = vld [vmem:[%s6551_s4 + $0x8] ss:$12 sps:$4 sm:$0xff]  }
   0xa   :  { %v4525_v30 = vld [vmem:[%s6551_s4 + $0x1c] ss:$12 sps:$4 sm:$0xff]   ;;  %v4530_v31 = vld [vmem:[%s6551_s4 + $0x18] ss:$12 sps:$4 sm:$0xff]   ;;  %v4535_v32 = vld [vmem:[%s6551_s4 + $0x20] ss:$12 sps:$4 sm:$0xff]  }
   0xb   :  { %6695 = vst [vmem:[#allocation3_spill] sm:$0xff] %v4535_v32  ;;  %v4544_v33 = vld [vmem:[%s6551_s4 + $0x34] ss:$12 sps:$4 sm:$0xff]   ;;  %v4550_v34 = vld [vmem:[%s6551_s4 + $0x30] ss:$12 sps:$4 sm:$0xff]  }
   0xc   :  { %278 = vmatpush1.bf16.msra.mxu0 %v4379_v7  ;;  %3357 = vmatpush3.bf16.msra.mxu1 %v4421_v14  ;;  %6696 = vst [vmem:[#allocation4_spill] sm:$0xff] %v4544_v33  ;;  %6697 = vst [vmem:[#allocation5_spill] sm:$0xff] %v4550_v34  ;;  %v4555_v35 = vld [vmem:[%s6551_s4 + $0x38] ss:$12 sps:$4 sm:$0xff]   ;;  %v4569_v37 = vld [vmem:[%s6551_s4 + $0x48] ss:$12 sps:$4 sm:$0xff]  }
   0xd   :  { %279 = vmatprep.subr.bf16.mxu0 %v4385_v8  ;;  %3358 = vmatprep.subr.bf16.mxu1 %v6561_v1  ;;  %6698 = vst [vmem:[#allocation6_spill] sm:$0xff] %v4555_v35  ;;  %v4563_v36 = vld [vmem:[%s6551_s4 + $0x4c] ss:$12 sps:$4 sm:$0xff]   ;;  %6700 = vst [vmem:[#allocation8_spill] sm:$0xff] %v4569_v37  ;;  %v4574_v38 = vld [vmem:[%s6551_s4 + $0x50] ss:$12 sps:$4 sm:$0xff]  }
   0xe   :  { %6699 = vst [vmem:[#allocation7_spill] sm:$0xff] %v4563_v36  ;;  %6701 = vst [vmem:[#allocation9_spill] sm:$0xff] %v4574_v38  ;;  %v4582_v39 = vld [vmem:[%s6551_s4 + $0x64] ss:$12 sps:$4 sm:$0xff]   ;;  %v4588_v40 = vld [vmem:[%s6551_s4 + $0x60] ss:$12 sps:$4 sm:$0xff]  }
   0xf   :  { %6702 = vst [vmem:[#allocation10_spill] sm:$0xff] %v4582_v39  ;;  %6703 = vst [vmem:[#allocation11_spill] sm:$0xff] %v4588_v40  ;;  %v4593_v41 = vld [vmem:[%s6551_s4 + $0x68] ss:$12 sps:$4 sm:$0xff]   ;;  %v4605_v43 = vld [vmem:[%s6551_s4 + $0x78] ss:$12 sps:$4 sm:$0xff]  }
  0x10   :  { %280 = vmatpush1.bf16.msra.mxu0 %v4396_v10  ;;  %3359 = vmatpush3.bf16.msra.mxu1 %v4440_v17  ;;  %6704 = vst [vmem:[#allocation12_spill] sm:$0xff] %v4593_v41  ;;  %v4599_v42 = vld [vmem:[%s6551_s4 + $0x7c] ss:$12 sps:$4 sm:$0xff]   ;;  %6706 = vst [vmem:[#allocation14_spill] sm:$0xff] %v4605_v43  ;;  %v4612_v44 = vld [vmem:[%s6551_s4 + $0x80] ss:$12 sps:$4 sm:$0xff]  }
  0x11   :  { %281 = vmatprep.subr.bf16.mxu0 %v4403_v11  ;;  %3360 = vmatprep.subr.bf16.mxu1 %v6561_v1  ;;  %6705 = vst [vmem:[#allocation13_spill] sm:$0xff] %v4599_v42  ;;  %6707 = vst [vmem:[#allocation15_spill] sm:$0xff] %v4612_v44  ;;  %v4617_v45 = vld [vmem:[%s6551_s4 + $0x94] ss:$12 sps:$4 sm:$0xff]   ;;  %v4623_v46 = vld [vmem:[%s6551_s4 + $0x90] ss:$12 sps:$4 sm:$0xff]  }
  0x12   :  { %6708 = vst [vmem:[#allocation16_spill] sm:$0xff] %v4617_v45  ;;  %6709 = vst [vmem:[#allocation17_spill] sm:$0xff] %v4623_v46  ;;  %v4628_v47 = vld [vmem:[%s6551_s4 + $0x98] ss:$12 sps:$4 sm:$0xff]   ;;  %v4642_v49 = vld [vmem:[%s6551_s4 + $0xa8] ss:$12 sps:$4 sm:$0xff]  }
  0x13   :  { %6710 = vst [vmem:[#allocation18_spill] sm:$0xff] %v4628_v47  ;;  %v4633_v48 = vld [vmem:[%s6551_s4 + $0xac] ss:$12 sps:$4 sm:$0xff]   ;;  %6712 = vst [vmem:[#allocation20_spill] sm:$0xff] %v4642_v49  ;;  %v4647_v50 = vld [vmem:[%s6551_s4 + $0xb0] ss:$12 sps:$4 sm:$0xff]  }
  0x14   :  { %282 = vmatpush1.bf16.msra.mxu0 %v4414_v13  ;;  %3361 = vmatpush3.bf16.msra.mxu1 %v4459_v20  ;;  %6711 = vst [vmem:[#allocation19_spill] sm:$0xff] %v4633_v48  ;;  %6713 = vst [vmem:[#allocation21_spill] sm:$0xff] %v4647_v50  ;;  %v4652_v51 = vld [vmem:[%s6552_s6 + $0x4] ss:$12 sps:$4 sm:$0xff]  }
  0x15   :  { %283 = vmatprep.subr.bf16.mxu0 %v4427_v15  ;;  %3362 = vmatprep.subr.bf16.mxu1 %v6561_v1  ;;  %6714 = vst [vmem:[#allocation22_spill] sm:$0xff] %v4652_v51  ;;  %v4665_v52 = vld [vmem:[%s6553_s1] sm:$0xff] }
  0x16   :  { %6715 = vst [vmem:[#allocation23_spill] sm:$0xff] %v4665_v52  ;;  %vm853_vm1 = vcmp.eq.s32.totalorder %v4665_v52, 0  ;;  %v142_v54 = vld [vmem:[%s6554_s0] sm:$0xff] }
  0x17   :  { %v854_v53 = vsel %vm853_vm1, 1, %v6567_v2  ;;  %v363_v55 = vrot.slane %v142_v54, 4  ;;  %v354_v56 = vunpack.c.l.bf16 %v142_v54  ;;  %v4675_v54 = vld [vmem:[%s6555_s3] ss:$0 sm:$0xff] }
  0x18   :  { %284 = vmatpush1.bf16.msra.mxu0 %v4434_v16  ;;  %3363 = vmatpush3.bf16.msra.mxu1 %v4478_v23 }
  0x19   :  { %285 = vmatprep.subr.bf16.mxu0 %v4446_v18  ;;  %3364 = vmatprep.subr.bf16.mxu1 %v6561_v1  ;;  %v365_v58 = vunpack.c.l.bf16 %v363_v55  ;;  %v143_v55 = vld [vmem:[%s6554_s0 + $0x8] sm:$0xf] }
  0x1a   :  { %856 = vperm.xlu0 %3884, %v854_v53  }
  0x1c   :  { %286 = vmatpush1.bf16.msra.mxu0 %v4453_v19  ;;  %3365 = vmatpush3.bf16.msra.mxu1 %v4487_v24 }
  0x1d   :  { %287 = vmatprep.subr.bf16.mxu0 %v4465_v21  ;;  %3366 = vmatprep.subr.bf16.mxu1 %v6561_v1 }
  0x20   :  { %288 = vmatpush1.bf16.msra.mxu0 %v4472_v22  ;;  %3367 = vmatpush3.bf16.msra.mxu1 %v4495_v26 }
  0x21   :  { %3372 = vmatprep.subr.bf16.mxu1 %v6561_v1  ;;  %533 = vmatprep.subr.bf16.mxu0 %v4507_v27 }
  0x23   :  { %306 = vmatmul.mubr.bf16.vlgmr.msra.gmra.mrb[0].mxu0 %v6559_v25  ;;  %3369 = vmatmul.mubr.bf16.vlgmr.msra.gmra.mrb[0].mxu1 %v6559_v25 }
  0x24   :  { %565 = vmatprep.mubr.bf16.mxu0 %v6567_v2  ;;  %3388 = vmatprep.mubr.msk.bf16.mxu1 %vm4294_vm0, %v6561_v1 }
  0x25   :  { %534 = vmatpush1.bf16.msra.mxu0 %v4512_v28  ;;  %3373 = vmatpush3.bf16.msra.mxu1 %v4518_v29 }
  0x26   :  { %3374 = vmatprep.subr.bf16.mxu1 %v6561_v1  ;;  %535 = vmatprep.subr.bf16.mxu0 %v4525_v30 }
  0x29   :  { %536 = vmatpush1.bf16.msra.mxu0 %v4530_v31  ;;  %3375 = vmatpush3.bf16.msra.mxu1 %v4535_v32 }
  0x2a   :  { %3376 = vmatprep.subr.bf16.mxu1 %v6561_v1  ;;  %537 = vmatprep.subr.bf16.mxu0 %v4544_v33 }
  0x2d   :  { %538 = vmatpush1.bf16.msra.mxu0 %v4550_v34  ;;  %3377 = vmatpush3.bf16.msra.mxu1 %v4555_v35 }
  0x2e   :  { %3378 = vmatprep.subr.bf16.mxu1 %v6561_v1  ;;  %539 = vmatprep.subr.bf16.mxu0 %v4563_v36 }
  0x31   :  { %540 = vmatpush1.bf16.msra.mxu0 %v4569_v37  ;;  %3379 = vmatpush3.bf16.msra.mxu1 %v4574_v38 }
  0x32   :  { %3380 = vmatprep.subr.bf16.mxu1 %v6561_v1  ;;  %541 = vmatprep.subr.bf16.mxu0 %v4582_v39 }
  0x35   :  { %542 = vmatpush1.bf16.msra.mxu0 %v4588_v40  ;;  %3381 = vmatpush3.bf16.msra.mxu1 %v4593_v41 }
  0x36   :  { %543 = vmatprep.subr.bf16.mxu0 %v4599_v42  ;;  %3382 = vmatprep.subr.bf16.mxu1 %v6561_v1 }
  0x39   :  { %544 = vmatpush1.bf16.msra.mxu0 %v4605_v43  ;;  %3383 = vmatpush3.bf16.msra.mxu1 %v4612_v44 }
  0x3a   :  { %545 = vmatprep.subr.bf16.mxu0 %v4617_v45  ;;  %3384 = vmatprep.subr.bf16.mxu1 %v6561_v1 }
  0x3d   :  { %546 = vmatpush1.bf16.msra.mxu0 %v4623_v46  ;;  %3385 = vmatpush3.bf16.msra.mxu1 %v4628_v47 }
  0x3e   :  { %547 = vmatprep.subr.bf16.mxu0 %v4633_v48  ;;  %3386 = vmatprep.subr.bf16.mxu1 %v6561_v1 }
  0x41   :  { %548 = vmatpush1.bf16.msra.mxu0 %v4642_v49  ;;  %3387 = vmatpush3.bf16.msra.mxu1 %v4647_v50 }
  0x42   :  { %743 = vmatprep.subr.bf16.mxu0 %v4652_v51  ;;  %3392 = vmatprep.subr.bf16.mxu1 %v6561_v1 }
  0xf6   :  { %v307_v57 = vpop.f32.mrb[0].mxu0  ;;  %v348_v52 = vpop.f32.mrb[0].mxu1 }
  0xf7   :  { %v355_v59 = vadd.f32 %v354_v56, %v307_v57  ;;  %v309_v60 = vpop.f32.mrb[1].mxu0  ;;  %v3370_v51 = vpop.f32.mrb[1].mxu1 }
  0xf8   :  { %v311_v61 = vpop.f32.mrb[2].mxu0  ;;  %v366_v25 = vadd.f32 %v365_v58, %v309_v60  ;;  %v351_v2 = vpop.f32.mrb[2].mxu1  ;;  %v381_v51 = vunpack.c.l.bf16 %v143_v55  ;;  %v4714_v55 = vld [vmem:[%s6552_s6 + $0x20] ss:$12 sps:$4 sm:$0xff]  }
  0xf9   :  { %v3040_v62 = vmul.f32 -1.442695, %v355_v59  ;;  %v312_v63 = vpop.f32.mrb[3].mxu0  ;;  %v3371_v53 = vpop.f32.mrb[3].mxu1 }
  0xfa   :  { %v3041_v1 = vmul.f32 -1.442695, %v366_v25  ;;  %v379_v25 = vadd.f32 %v4675_v54, %v348_v52  ;;  %v4700_v63 = vld [vmem:[%s6552_s6 + $0x1c] ss:$12 sps:$4 sm:$0xff]   ;;  %v4709_v53 = vld [vmem:[%s6552_s6 + $0x18] ss:$12 sps:$4 sm:$0xff]  }
  0xfb   :  { %3982 = vpow2.f32 %v3040_v62  ;;  %v4686_v62 = vld [vmem:[%s6552_s6] ss:$12 sps:$4 sm:$0xff]  }
  0xfc   :  { %3984 = vpow2.f32 %v3041_v1 }
 0x105   :  { %v3983_v50 = vpop.eup %3982 }
 0x106   :  { %v359_v49 = vadd.f32 1.0, %v3983_v50  ;;  %v3985_v48 = vpop.eup %3984 }
 0x107   :  { %v370_v56 = vadd.f32 1.0, %v3985_v48  ;;  %v4691_v48 = vld [vmem:[%s6552_s6 + $0x8] ss:$12 sps:$4 sm:$0xff]  }
 0x108   :  { %3986 = vrcp.f32 %v359_v49 }
 0x109   :  { %3988 = vrcp.f32 %v370_v56  ;;  %v6716_v56 = vmov 0.0  }
 0x112   :  { %v3987_v2 = vpop.eup %3986 }
 0x113   :  { %v380_v1 = vmul.f32 %v3987_v2, %v379_v25  ;;  %v3989_v49 = vpop.eup %3988  ;;  %v4721_v25 = vld [vmem:[%s6552_s6 + $0x34] ss:$12 sps:$4 sm:$0xff]   ;;  %v4731_v2 = vld [vmem:[%s6552_s6 + $0x30] ss:$12 sps:$4 sm:$0xff]  }
 0x114   :  { %v384_v50 = vsub.f32 1.0, %v3989_v49  ;;  %v386_v60 = vmul.f32 0.0, %v3989_v49  ;;  %v4750_v49 = vld [vmem:[%s6552_s6 + $0x48] ss:$12 sps:$4 sm:$0xff]  }
 0x115   :  { %v382_v57 = vadd.f32 %v381_v51, %v380_v1  ;;  %v6717_v51 = vmov 0   ;;  %v4736_v1 = vld [vmem:[%s6552_s6 + $0x38] ss:$12 sps:$4 sm:$0xff]   ;;  %6718 = vst [vmem:[#allocation24_spill] sm:$0xff] %v4750_v49 }
 0x117   :  { %3990 = vtanh.f32 %v382_v57  ;;  %v4743_v57 = vld [vmem:[%s6552_s6 + $0x4c] ss:$12 sps:$4 sm:$0xff]  }
 0x121   :  { %v3991_v58 = vpop.eup %3990 }
 0x122   :  { %v385_v59 = vmul.f32 %v3991_v58, %v384_v50  ;;  %v4755_v50 = vld [vmem:[%s6552_s6 + $0x50] ss:$12 sps:$4 sm:$0xff]  }
 0x123   :  { %6719 = vst [vmem:[#allocation25_spill] sm:$0xff] %v4755_v50  ;;  %v4762_v58 = vld [vmem:[%s6552_s6 + $0x64] ss:$12 sps:$4 sm:$0xff]  }
 0x124   :  { %v4681_v61 = vadd.f32 %v386_v60, %v385_v59  ;;  %6720 = vst [vmem:[#allocation26_spill] sm:$0xff] %v4762_v58  ;;  %v4769_v59 = vld [vmem:[%s6552_s6 + $0x60] ss:$12 sps:$4 sm:$0xff]   ;;  %v4774_v60 = vld [vmem:[%s6552_s6 + $0x68] ss:$12 sps:$4 sm:$0xff]  }
 0x125   :  { %6721 = vst [vmem:[#allocation27_spill] sm:$0xff] %v4769_v59  ;;  %6722 = vst [vmem:[#allocation28_spill] sm:$0xff] %v4774_v60 }
 0x126   :  { %v4695_v52 = vpack.c.bf16 %v4681_v61, %v4681_v61 }
 0x128   :  { %566 = vmatmul.mubr.bf16.vlgmr.msra.gmra.mrb[4].mxu0 %v4695_v52  ;;  %3389 = vmatmul.mubr.bf16.vlgmr.msra.gmra.mrb[4].mxu1 %v4695_v52 }
 0x129   :  { %744 = vmatpush1.bf16.msra.mxu0 %v4686_v62  ;;  %3393 = vmatpush3.bf16.msra.mxu1 %v4691_v48 }
 0x12a   :  { %745 = vmatprep.subr.bf16.mxu0 %v4700_v63  ;;  %3394 = vmatprep.subr.bf16.mxu1 %v6716_v56 }
 0x12b   :  { %775 = vmatprep.mubr.bf16.mxu0 %v6717_v51  ;;  %3408 = vmatprep.mubr.msk.bf16.mxu1 %vm4294_vm0, %v6716_v56 }
 0x12d   :  { %746 = vmatpush1.bf16.msra.mxu0 %v4709_v53  ;;  %3395 = vmatpush3.bf16.msra.mxu1 %v4714_v55 }
 0x12e   :  { %747 = vmatprep.subr.bf16.mxu0 %v4721_v25  ;;  %3396 = vmatprep.subr.bf16.mxu1 %v6716_v56 }
 0x131   :  { %748 = vmatpush1.bf16.msra.mxu0 %v4731_v2  ;;  %3397 = vmatpush3.bf16.msra.mxu1 %v4736_v1 }
 0x132   :  { %749 = vmatprep.subr.bf16.mxu0 %v4743_v57  ;;  %3398 = vmatprep.subr.bf16.mxu1 %v6716_v56 }
 0x135   :  { %750 = vmatpush1.bf16.msra.mxu0 %v4750_v49  ;;  %3399 = vmatpush3.bf16.msra.mxu1 %v4755_v50  ;;  %v4781_v49 = vld [vmem:[%s6552_s6 + $0x7c] ss:$12 sps:$4 sm:$0xff]   ;;  %v4788_v50 = vld [vmem:[%s6552_s6 + $0x78] ss:$12 sps:$4 sm:$0xff]  }
 0x136   :  { %751 = vmatprep.subr.bf16.mxu0 %v4762_v58  ;;  %3400 = vmatprep.subr.bf16.mxu1 %v6716_v56  ;;  %6723 = vst [vmem:[#allocation29_spill] sm:$0xff] %v4781_v49  ;;  %6724 = vst [vmem:[#allocation30_spill] sm:$0xff] %v4788_v50  ;;  %v4793_v58 = vld [vmem:[%s6552_s6 + $0x80] ss:$12 sps:$4 sm:$0xff]  }
 0x137   :  { %6725 = vst [vmem:[#allocation31_spill] sm:$0xff] %v4793_v58 }
 0x139   :  { %752 = vmatpush1.bf16.msra.mxu0 %v4769_v59  ;;  %3401 = vmatpush3.bf16.msra.mxu1 %v4774_v60  ;;  %v4800_v59 = vld [vmem:[%s6552_s6 + $0x94] ss:$12 sps:$4 sm:$0xff]   ;;  %v4807_v60 = vld [vmem:[%s6552_s6 + $0x90] ss:$12 sps:$4 sm:$0xff]  }
 0x13a   :  { %753 = vmatprep.subr.bf16.mxu0 %v4781_v49  ;;  %3402 = vmatprep.subr.bf16.mxu1 %v6716_v56  ;;  %6726 = vst [vmem:[#allocation32_spill] sm:$0xff] %v4800_v59  ;;  %v4812_v49 = vld [vmem:[%s6552_s6 + $0x98] ss:$12 sps:$4 sm:$0xff]  }
 0x13b   :  { %6727 = vst [vmem:[#allocation33_spill] sm:$0xff] %v4812_v49 }
 0x13d   :  { %754 = vmatpush1.bf16.msra.mxu0 %v4788_v50  ;;  %3403 = vmatpush3.bf16.msra.mxu1 %v4793_v58  ;;  %v4819_v50 = vld [vmem:[%s6552_s6 + $0xac] ss:$12 sps:$4 sm:$0xff]   ;;  %v4826_v58 = vld [vmem:[%s6552_s6 + $0xa8] ss:$12 sps:$4 sm:$0xff]  }
 0x13e   :  { %755 = vmatprep.subr.bf16.mxu0 %v4800_v59  ;;  %3404 = vmatprep.subr.bf16.mxu1 %v6716_v56  ;;  %v4831_v59 = vld [vmem:[%s6552_s6 + $0xb0] ss:$12 sps:$4 sm:$0xff]  }
 0x141   :  { %756 = vmatpush1.bf16.msra.mxu0 %v4807_v60  ;;  %3405 = vmatpush3.bf16.msra.mxu1 %v4812_v49  ;;  %v6728_v49 = vmov 0.0|0.0  }
 0x142   :  { %757 = vmatprep.subr.bf16.mxu0 %v4819_v50  ;;  %3406 = vmatprep.subr.bf16.mxu1 %v6716_v56 }
 0x145   :  { %758 = vmatpush1.bf16.msra.mxu0 %v4826_v58  ;;  %3407 = vmatpush3.bf16.msra.mxu1 %v4831_v59 }
 0x146   :  { %864 = vmatprep.subr.bf16.mxu0 %v4344_v0  ;;  %3412 = vmatprep.subr.bf16.mxu1 %v6716_v56  ;;  %v6729_v0 = vld [vmem:[#allocation19_spill] sm:$0xff] }
 0x148   :  { %776 = vmatmul.mubr.bf16.vlgmr.msra.gmra.mrb[4].mxu0 %v6728_v49  ;;  %3409 = vmatmul.mubr.bf16.vlgmr.msra.gmra.mrb[8].mxu1 %v6728_v49 }
 0x149   :  { %865 = vmatpush1.bf16.msra.mxu0 %v4351_v3  ;;  %3413 = vmatpush3.bf16.msra.mxu1 %v4390_v9  ;;  %v6730_v3 = vld [vmem:[#allocation20_spill] sm:$0xff] }
 0x14a   :  { %866 = vmatprep.subr.bf16.mxu0 %v4360_v4  ;;  %3414 = vmatprep.subr.bf16.mxu1 %v6716_v56  ;;  %v6731_v4 = vld [vmem:[#allocation21_spill] sm:$0xff] }
 0x14b   :  { %896 = vmatprep.mubr.bf16.mxu0 %v6717_v51  ;;  %3428 = vmatprep.mubr.msk.bf16.mxu1 %vm4294_vm0, %v6716_v56 }
 0x14d   :  { %867 = vmatpush1.bf16.msra.mxu0 %v4367_v5  ;;  %3415 = vmatpush3.bf16.msra.mxu1 %v4409_v12  ;;  %v6732_v5 = vld [vmem:[#allocation22_spill] sm:$0xff] }
 0x14e   :  { %868 = vmatprep.subr.bf16.mxu0 %v4373_v6  ;;  %3416 = vmatprep.subr.bf16.mxu1 %v6716_v56 }
 0x151   :  { %869 = vmatpush1.bf16.msra.mxu0 %v4379_v7  ;;  %3417 = vmatpush3.bf16.msra.mxu1 %v4421_v14 }
 0x152   :  { %870 = vmatprep.subr.bf16.mxu0 %v4385_v8  ;;  %3418 = vmatprep.subr.bf16.mxu1 %v6716_v56 }
 0x155   :  { %871 = vmatpush1.bf16.msra.mxu0 %v4396_v10  ;;  %3419 = vmatpush3.bf16.msra.mxu1 %v4440_v17 }
 0x156   :  { %872 = vmatprep.subr.bf16.mxu0 %v4403_v11  ;;  %3420 = vmatprep.subr.bf16.mxu1 %v6716_v56 }
 0x159   :  { %873 = vmatpush1.bf16.msra.mxu0 %v4414_v13  ;;  %3421 = vmatpush3.bf16.msra.mxu1 %v4459_v20 }
 0x15a   :  { %874 = vmatprep.subr.bf16.mxu0 %v4427_v15  ;;  %3422 = vmatprep.subr.bf16.mxu1 %v6716_v56 }
 0x15d   :  { %875 = vmatpush1.bf16.msra.mxu0 %v4434_v16  ;;  %3423 = vmatpush3.bf16.msra.mxu1 %v4478_v23 }
 0x15e   :  { %876 = vmatprep.subr.bf16.mxu0 %v4446_v18  ;;  %3424 = vmatprep.subr.bf16.mxu1 %v6716_v56 }
 0x161   :  { %877 = vmatpush1.bf16.msra.mxu0 %v4453_v19  ;;  %3425 = vmatpush3.bf16.msra.mxu1 %v4487_v24 }
 0x162   :  { %878 = vmatprep.subr.bf16.mxu0 %v4465_v21  ;;  %3426 = vmatprep.subr.bf16.mxu1 %v6716_v56 }
 0x165   :  { %879 = vmatpush1.bf16.msra.mxu0 %v4472_v22  ;;  %3427 = vmatpush3.bf16.msra.mxu1 %v4495_v26 }
 0x166   :  { %974 = vmatprep.subr.bf16.mxu0 %v4507_v27  ;;  %3432 = vmatprep.subr.bf16.mxu1 %v6716_v56 }
 0x168   :  { %897 = vmatmul.mubr.bf16.vlgmr.msra.gmra.mrb[8].mxu0 %v4695_v52  ;;  %3429 = vmatmul.mubr.bf16.vlgmr.msra.gmra.mrb[12].mxu1 %v4695_v52 }
 0x169   :  { %975 = vmatpush1.bf16.msra.mxu0 %v4512_v28  ;;  %3433 = vmatpush3.bf16.msra.mxu1 %v4518_v29 }
 0x16a   :  { %976 = vmatprep.subr.bf16.mxu0 %v4525_v30  ;;  %3434 = vmatprep.subr.bf16.mxu1 %v6716_v56 }
 0x16b   :  { %1006 = vmatprep.mubr.bf16.mxu0 %v6717_v51  ;;  %3448 = vmatprep.mubr.msk.bf16.mxu1 %vm4294_vm0, %v6716_v56 }
 0x16d   :  { %977 = vmatpush1.bf16.msra.mxu0 %v4530_v31  ;;  %3435 = vmatpush3.bf16.msra.mxu1 %v4535_v32 }
 0x16e   :  { %978 = vmatprep.subr.bf16.mxu0 %v4544_v33  ;;  %3436 = vmatprep.subr.bf16.mxu1 %v6716_v56 }
 0x171   :  { %979 = vmatpush1.bf16.msra.mxu0 %v4550_v34  ;;  %3437 = vmatpush3.bf16.msra.mxu1 %v4555_v35 }
 0x172   :  { %980 = vmatprep.subr.bf16.mxu0 %v4563_v36  ;;  %3438 = vmatprep.subr.bf16.mxu1 %v6716_v56 }
 0x175   :  { %981 = vmatpush1.bf16.msra.mxu0 %v4569_v37  ;;  %3439 = vmatpush3.bf16.msra.mxu1 %v4574_v38 }
 0x176   :  { %982 = vmatprep.subr.bf16.mxu0 %v4582_v39  ;;  %3440 = vmatprep.subr.bf16.mxu1 %v6716_v56 }
 0x179   :  { %983 = vmatpush1.bf16.msra.mxu0 %v4588_v40  ;;  %3441 = vmatpush3.bf16.msra.mxu1 %v4593_v41 }
 0x17a   :  { %984 = vmatprep.subr.bf16.mxu0 %v4599_v42  ;;  %3442 = vmatprep.subr.bf16.mxu1 %v6716_v56 }
 0x17d   :  { %985 = vmatpush1.bf16.msra.mxu0 %v4605_v43  ;;  %3443 = vmatpush3.bf16.msra.mxu1 %v4612_v44 }
 0x17e   :  { %986 = vmatprep.subr.bf16.mxu0 %v4617_v45  ;;  %3444 = vmatprep.subr.bf16.mxu1 %v6716_v56  ;;  %v390_v45 = vlaneseq }
 0x181   :  { %987 = vmatpush1.bf16.msra.mxu0 %v4623_v46  ;;  %3445 = vmatpush3.bf16.msra.mxu1 %v4628_v47  ;;  %v391_v46 = vshrl.u32 %v390_v45, 7 }
 0x182   :  { %988 = vmatprep.subr.bf16.mxu0 %v6729_v0  ;;  %3446 = vmatprep.subr.bf16.mxu1 %v6716_v56  ;;  %v102_v0 = vld [vmem:[%s6556_s5] sm:$0x7] }
 0x183   :  { %v392_v44 = vsub.s32 0, %v391_v46  ;;  %v396_v47 = vsub.s32 1, %v391_v46 }
 0x185   :  { %989 = vmatpush1.bf16.msra.mxu0 %v6730_v3  ;;  %3447 = vmatpush3.bf16.msra.mxu1 %v6731_v4  ;;  %v4916_v43 = vrot.slane %v102_v0, %v392_v44  ;;  %v4918_v4 = vrot.slane %v102_v0, %v396_v47  ;;  %v6735_v47 = vld [vmem:[#allocation23_spill] sm:$0xff] }
 0x186   :  { %1056 = vmatprep.subr.bf16.mxu0 %v6732_v5  ;;  %3452 = vmatprep.subr.bf16.mxu1 %v6716_v56  ;;  %vm1160_vm2 = vcmp.eq.s32.totalorder %v6735_v47, 1 }
 0x187   :  { %6733 = vst [vmem:[#allocation34_spill] sm:$0xff] %v4916_v43  ;;  %6734 = vst [vmem:[#allocation35_spill] sm:$0xff] %v4918_v4  ;;  %v1161_v35 = vsel %vm1160_vm2, 1, %v6717_v51 }
 0x188   :  { %1163 = vperm.xlu0 %3884, %v1161_v35  }
 0x1fb   :  { %v608_v6 = vpop.f32.mrb[4].mxu1 }
 0x1fc   :  { %v3390_v7 = vpop.f32.mrb[5].mxu1 }
 0x1fd   :  { %v611_v52 = vpop.f32.mrb[6].mxu1 }
 0x1fe   :  { %v3391_v49 = vpop.f32.mrb[7].mxu1 }
 0x21b   :  { %v777_v3 = vpop.f32.mrb[4].mxu0  ;;  %v818_v5 = vpop.f32.mrb[8].mxu1 }
 0x21c   :  { %v3832_v42 = vadd.f32 %v777_v3, %v4916_v43  ;;  %v779_v41 = vpop.f32.mrb[5].mxu0  ;;  %v3410_v7 = vpop.f32.mrb[9].mxu1  ;;  %v400_v3 = vsub.s32 2, %v391_v46 }
 0x21d   :  { %v781_v52 = vpop.f32.mrb[6].mxu0  ;;  %v821_v49 = vpop.f32.mrb[10].mxu1  ;;  %v3833_v38 = vadd.f32 %v779_v41, %v4918_v4 }
 0x21e   :  { %v3091_v40 = vmul.f32 -1.442695, %v3832_v42  ;;  %v782_v45 = vpop.f32.mrb[7].mxu0  ;;  %v3411_v39 = vpop.f32.mrb[11].mxu1  ;;  %v4927_v42 = vld [vmem:[%s6557_s7] ss:$0 sm:$0xff] }
 0x21f   :  { %v3092_v37 = vmul.f32 -1.442695, %v3833_v38  ;;  %6736 = vst [vmem:[#allocation36_spill] sm:$0xff] %v4927_v42  ;;  %v4929_v39 = vrot.slane %v102_v0, %v400_v3 }
 0x220   :  { %3992 = vpow2.f32 %v3091_v40 }
 0x221   :  { %3994 = vpow2.f32 %v3092_v37  ;;  %v844_v37 = vadd.f32 %v4927_v42, %v818_v5  ;;  %v609_v35 = vadd.f32 %v608_v6, %v4929_v39 }
 0x22a   :  { %v3993_v44 = vpop.eup %3992 }
 0x22b   :  { %v828_v36 = vadd.f32 1.0, %v3993_v44  ;;  %v3995_v7 = vpop.eup %3994 }
 0x22c   :  { %v835_v40 = vadd.f32 1.0, %v3995_v7 }
 0x22d   :  { %3996 = vrcp.f32 %v828_v36  ;;  %v3094_v36 = vld [vmem:[%s6554_s0 + $0xc] sm:$0xff] }
 0x22e   :  { %v954_v41 = vrot.slane %v3094_v36, 4  ;;  %3998 = vrcp.f32 %v835_v40  ;;  %v945_v52 = vunpack.c.l.bf16 %v3094_v36 }
 0x230   :  { %v956_v47 = vunpack.c.l.bf16 %v954_v41 }
 0x237   :  { %v3997_v38 = vpop.eup %3996 }
 0x238   :  { %v845_v46 = vmul.f32 %v3997_v38, %v844_v37  ;;  %v3999_v32 = vpop.eup %3998 }
 0x239   :  { %v848_v40 = vsub.f32 1.0, %v3999_v32  ;;  %v850_v38 = vmul.f32 0.0, %v3999_v32 }
 0x23a   :  { %v846_v49 = vadd.f32 %v845_v46, %v609_v35 }
 0x23b   :  { %v898_v45 = vpop.f32.mrb[8].mxu0  ;;  %v939_v44 = vpop.f32.mrb[12].mxu1 }
 0x23c   :  { %4000 = vtanh.f32 %v846_v49  ;;  %v946_v0 = vadd.f32 %v945_v52, %v898_v45  ;;  %v900_v3 = vpop.f32.mrb[9].mxu0  ;;  %v3430_v7 = vpop.f32.mrb[13].mxu1 }
 0x23d   :  { %v902_v5 = vpop.f32.mrb[10].mxu0  ;;  %v942_v42 = vpop.f32.mrb[14].mxu1  ;;  %v957_v33 = vadd.f32 %v956_v47, %v900_v3 }
 0x23e   :  { %v3096_v4 = vmul.f32 -1.442695, %v946_v0  ;;  %v903_v43 = vpop.f32.mrb[11].mxu0  ;;  %v3431_v34 = vpop.f32.mrb[15].mxu1 }
 0x23f   :  { %v3097_v6 = vmul.f32 -1.442695, %v957_v33  ;;  %v3095_v43 = vld [vmem:[%s6554_s0 + $0x14] sm:$0xf] }
 0x240   :  { %4002 = vpow2.f32 %v3096_v4  ;;  %v964_v4 = vadd.f32 %v4675_v54, %v939_v44  ;;  %v966_v47 = vunpack.c.l.bf16 %v3095_v43  ;;  %v6739_v44 = vld [vmem:[#allocation25_spill] sm:$0xff] }
 0x241   :  { %4004 = vpow2.f32 %v3097_v6  ;;  %v6747_v43 = vld [vmem:[#allocation33_spill] sm:$0xff] }
 0x246   :  { %v4001_v37 = vpop.eup %4000 }
 0x247   :  { %v849_v36 = vmul.f32 %v4001_v37, %v848_v40  ;;  %v6740_v40 = vld [vmem:[#allocation26_spill] sm:$0xff]  ;;  %v6741_v37 = vld [vmem:[#allocation27_spill] sm:$0xff] }
 0x249   :  { %v4936_v35 = vadd.f32 %v850_v38, %v849_v36  ;;  %v6742_v36 = vld [vmem:[#allocation28_spill] sm:$0xff]  ;;  %v6743_v38 = vld [vmem:[#allocation29_spill] sm:$0xff] }
 0x24a   :  { %v4003_v41 = vpop.eup %4002 }
 0x24b   :  { %6737 = vst [vmem:[#allocation37_spill] sm:$0xff] %v4936_v35  ;;  %v950_v46 = vadd.f32 1.0, %v4003_v41  ;;  %v4005_v52 = vpop.eup %4004  ;;  %v6744_v41 = vld [vmem:[#allocation30_spill] sm:$0xff] }
 0x24c   :  { %v961_v34 = vadd.f32 1.0, %v4005_v52  ;;  %v6746_v52 = vld [vmem:[#allocation32_spill] sm:$0xff] }
 0x24d   :  { %4006 = vrcp.f32 %v950_v46  ;;  %v6745_v46 = vld [vmem:[#allocation31_spill] sm:$0xff] }
 0x24e   :  { %4008 = vrcp.f32 %v961_v34  ;;  %v1055_v34 = vpack.c.bf16 %v4936_v35, %v4936_v35 }
 0x257   :  { %v4007_v33 = vpop.eup %4006 }
 0x258   :  { %v965_v42 = vmul.f32 %v4007_v33, %v964_v4  ;;  %v4009_v32 = vpop.eup %4008  ;;  %v4989_v4 = vld [vmem:[%s6550_s2 + $0x4] ss:$12 sps:$4 sm:$0xff]   ;;  %v5003_v33 = vld [vmem:[%s6550_s2 + $0x1c] ss:$12 sps:$4 sm:$0xff]  }
 0x259   :  { %v969_v45 = vsub.f32 1.0, %v4009_v32  ;;  %v971_v7 = vmul.f32 %v4009_v32, %v4681_v61  ;;  %v6738_v61 = vld [vmem:[#allocation24_spill] sm:$0xff] }
 0x25a   :  { %v967_v49 = vadd.f32 %v966_v47, %v965_v42  ;;  %v4996_v47 = vld [vmem:[%s6550_s2] ss:$12 sps:$4 sm:$0xff]   ;;  %v5013_v42 = vld [vmem:[%s6550_s2 + $0x18] ss:$12 sps:$4 sm:$0xff]  }
 0x25c   :  { %4010 = vtanh.f32 %v967_v49  ;;  %v5027_v49 = vld [vmem:[%s6550_s2 + $0x30] ss:$12 sps:$4 sm:$0xff]  }
 0x266   :  { %v4011_v0 = vpop.eup %4010 }
 0x267   :  { %v970_v3 = vmul.f32 %v4011_v0, %v969_v45 }
 0x269   :  { %v4943_v5 = vadd.f32 %v971_v7, %v970_v3  ;;  %v6768_v7 = vld [vmem:[#allocation34_spill] sm:$0xff] }
 0x26b   :  { %v4947_v6 = vpack.c.bf16 %v4943_v5, %v4943_v5 }
 0x26d   :  { %1007 = vmatmul.mubr.bf16.vlgmr.msra.gmra.mrb[12].mxu0 %v4947_v6  ;;  %3449 = vmatmul.mubr.bf16.vlgmr.msra.gmra.mrb[16].mxu1 %v4947_v6 }
 0x26e   :  { %1057 = vmatpush1.bf16.msra.mxu0 %v4686_v62  ;;  %3453 = vmatpush3.bf16.msra.mxu1 %v4691_v48 }
 0x26f   :  { %1058 = vmatprep.subr.bf16.mxu0 %v4700_v63  ;;  %3454 = vmatprep.subr.bf16.mxu1 %v6716_v56 }
 0x270   :  { %1088 = vmatprep.mubr.bf16.mxu0 %v6717_v51  ;;  %3468 = vmatprep.mubr.msk.bf16.mxu1 %vm4294_vm0, %v6716_v56 }
 0x272   :  { %1059 = vmatpush1.bf16.msra.mxu0 %v4709_v53  ;;  %3455 = vmatpush3.bf16.msra.mxu1 %v4714_v55 }
 0x273   :  { %1060 = vmatprep.subr.bf16.mxu0 %v4721_v25  ;;  %3456 = vmatprep.subr.bf16.mxu1 %v6716_v56 }
 0x276   :  { %1061 = vmatpush1.bf16.msra.mxu0 %v4731_v2  ;;  %3457 = vmatpush3.bf16.msra.mxu1 %v4736_v1 }
 0x277   :  { %1062 = vmatprep.subr.bf16.mxu0 %v4743_v57  ;;  %3458 = vmatprep.subr.bf16.mxu1 %v6716_v56 }
 0x27a   :  { %1063 = vmatpush1.bf16.msra.mxu0 %v6738_v61  ;;  %3459 = vmatpush3.bf16.msra.mxu1 %v6739_v44 }
 0x27b   :  { %1064 = vmatprep.subr.bf16.mxu0 %v6740_v40  ;;  %3460 = vmatprep.subr.bf16.mxu1 %v6716_v56 }
 0x27e   :  { %1065 = vmatpush1.bf16.msra.mxu0 %v6741_v37  ;;  %3461 = vmatpush3.bf16.msra.mxu1 %v6742_v36 }
 0x27f   :  { %1066 = vmatprep.subr.bf16.mxu0 %v6743_v38  ;;  %3462 = vmatprep.subr.bf16.mxu1 %v6716_v56 }
 0x282   :  { %1067 = vmatpush1.bf16.msra.mxu0 %v6744_v41  ;;  %3463 = vmatpush3.bf16.msra.mxu1 %v6745_v46 }
 0x283   :  { %1068 = vmatprep.subr.bf16.mxu0 %v6746_v52  ;;  %3464 = vmatprep.subr.bf16.mxu1 %v6716_v56 }
 0x286   :  { %1069 = vmatpush1.bf16.msra.mxu0 %v4807_v60  ;;  %3465 = vmatpush3.bf16.msra.mxu1 %v6747_v43 }
 0x287   :  { %1070 = vmatprep.subr.bf16.mxu0 %v4819_v50  ;;  %3466 = vmatprep.subr.bf16.mxu1 %v6716_v56 }
 0x28a   :  { %1071 = vmatpush1.bf16.msra.mxu0 %v4826_v58  ;;  %3467 = vmatpush3.bf16.msra.mxu1 %v4831_v59 }
 0x28b   :  { %1171 = vmatprep.subr.bf16.mxu0 %v4989_v4  ;;  %3472 = vmatprep.subr.bf16.mxu1 %v6716_v56 }
 0x28d   :  { %1089 = vmatmul.mubr.bf16.vlgmr.msra.gmra.mrb[12].mxu0 %v1055_v34  ;;  %3469 = vmatmul.mubr.bf16.vlgmr.msra.gmra.mrb[20].mxu1 %v1055_v34 }
 0x28e   :  { %1172 = vmatpush1.bf16.msra.mxu0 %v4996_v47  ;;  %3473 = vmatpush3.bf16.msra.mxu1 %v4390_v9  ;;  %v5020_v9 = vld [vmem:[%s6550_s2 + $0x34] ss:$12 sps:$4 sm:$0xff]  }
 0x28f   :  { %1173 = vmatprep.subr.bf16.mxu0 %v5003_v33  ;;  %3474 = vmatprep.subr.bf16.mxu1 %v6716_v56 }
 0x290   :  { %1203 = vmatprep.mubr.bf16.mxu0 %v6717_v51  ;;  %3488 = vmatprep.mubr.msk.bf16.mxu1 %vm4294_vm0, %v6716_v56 }
 0x292   :  { %1174 = vmatpush1.bf16.msra.mxu0 %v5013_v42  ;;  %3475 = vmatpush3.bf16.msra.mxu1 %v4409_v12  ;;  %v6751_v12 = vld [vmem:[#allocation6_spill] sm:$0xff] }
 0x293   :  { %1175 = vmatprep.subr.bf16.mxu0 %v5020_v9  ;;  %3476 = vmatprep.subr.bf16.mxu1 %v6716_v56 }
 0x296   :  { %1176 = vmatpush1.bf16.msra.mxu0 %v5027_v49  ;;  %3477 = vmatpush3.bf16.msra.mxu1 %v4421_v14  ;;  %v6753_v14 = vld [vmem:[#allocation8_spill] sm:$0xff] }
 0x297   :  { %1177 = vmatprep.subr.bf16.mxu0 %v4385_v8  ;;  %3478 = vmatprep.subr.bf16.mxu1 %v6716_v56  ;;  %v6748_v8 = vld [vmem:[#allocation3_spill] sm:$0xff] }
 0x29a   :  { %1178 = vmatpush1.bf16.msra.mxu0 %v4396_v10  ;;  %3479 = vmatpush3.bf16.msra.mxu1 %v4440_v17  ;;  %v6749_v10 = vld [vmem:[#allocation4_spill] sm:$0xff]  ;;  %v6756_v17 = vld [vmem:[#allocation11_spill] sm:$0xff] }
 0x29b   :  { %1179 = vmatprep.subr.bf16.mxu0 %v4403_v11  ;;  %3480 = vmatprep.subr.bf16.mxu1 %v6716_v56  ;;  %v6750_v11 = vld [vmem:[#allocation5_spill] sm:$0xff] }
 0x29e   :  { %1180 = vmatpush1.bf16.msra.mxu0 %v4414_v13  ;;  %3481 = vmatpush3.bf16.msra.mxu1 %v4459_v20  ;;  %v6752_v13 = vld [vmem:[#allocation7_spill] sm:$0xff]  ;;  %v6759_v20 = vld [vmem:[#allocation14_spill] sm:$0xff] }
 0x29f   :  { %1181 = vmatprep.subr.bf16.mxu0 %v4427_v15  ;;  %3482 = vmatprep.subr.bf16.mxu1 %v6716_v56  ;;  %v6754_v15 = vld [vmem:[#allocation9_spill] sm:$0xff] }
 0x2a2   :  { %1182 = vmatpush1.bf16.msra.mxu0 %v4434_v16  ;;  %3483 = vmatpush3.bf16.msra.mxu1 %v4478_v23  ;;  %v6755_v16 = vld [vmem:[#allocation10_spill] sm:$0xff]  ;;  %v6762_v23 = vld [vmem:[#allocation17_spill] sm:$0xff] }
 0x2a3   :  { %1183 = vmatprep.subr.bf16.mxu0 %v4446_v18  ;;  %3484 = vmatprep.subr.bf16.mxu1 %v6716_v56  ;;  %v6757_v18 = vld [vmem:[#allocation12_spill] sm:$0xff] }
 0x2a6   :  { %1184 = vmatpush1.bf16.msra.mxu0 %v4453_v19  ;;  %3485 = vmatpush3.bf16.msra.mxu1 %v4487_v24  ;;  %v6758_v19 = vld [vmem:[#allocation13_spill] sm:$0xff]  ;;  %v6763_v24 = vld [vmem:[#allocation18_spill] sm:$0xff] }
 0x2a7   :  { %1185 = vmatprep.subr.bf16.mxu0 %v4465_v21  ;;  %3486 = vmatprep.subr.bf16.mxu1 %v6716_v56  ;;  %v6760_v21 = vld [vmem:[#allocation15_spill] sm:$0xff] }
 0x2aa   :  { %1186 = vmatpush1.bf16.msra.mxu0 %v4472_v22  ;;  %3487 = vmatpush3.bf16.msra.mxu1 %v4495_v26  ;;  %v6761_v22 = vld [vmem:[#allocation16_spill] sm:$0xff]  ;;  %v6764_v26 = vld [vmem:[#allocation19_spill] sm:$0xff] }
 0x2ab   :  { %1281 = vmatprep.subr.bf16.mxu0 %v4507_v27  ;;  %3492 = vmatprep.subr.bf16.mxu1 %v6716_v56  ;;  %v6765_v27 = vld [vmem:[#allocation20_spill] sm:$0xff] }
 0x2ad   :  { %1204 = vmatmul.mubr.bf16.vlgmr.msra.gmra.mrb[16].mxu0 %v4947_v6  ;;  %3489 = vmatmul.mubr.bf16.vlgmr.msra.gmra.mrb[24].mxu1 %v4947_v6 }
 0x2ae   :  { %1282 = vmatpush1.bf16.msra.mxu0 %v4512_v28  ;;  %3493 = vmatpush3.bf16.msra.mxu1 %v4518_v29  ;;  %v6766_v28 = vld [vmem:[#allocation21_spill] sm:$0xff]  ;;  %v6767_v29 = vld [vmem:[#allocation22_spill] sm:$0xff] }
 0x2af   :  { %1283 = vmatprep.subr.bf16.mxu0 %v4525_v30  ;;  %3494 = vmatprep.subr.bf16.mxu1 %v6716_v56 }
 0x2b0   :  { %1313 = vmatprep.mubr.bf16.mxu0 %v6717_v51  ;;  %3508 = vmatprep.mubr.msk.bf16.mxu1 %vm4294_vm0, %v6716_v56 }
 0x2b2   :  { %1284 = vmatpush1.bf16.msra.mxu0 %v4530_v31  ;;  %3495 = vmatpush3.bf16.msra.mxu1 %v6748_v8 }
 0x2b3   :  { %1285 = vmatprep.subr.bf16.mxu0 %v6749_v10  ;;  %3496 = vmatprep.subr.bf16.mxu1 %v6716_v56 }
 0x2b6   :  { %1286 = vmatpush1.bf16.msra.mxu0 %v6750_v11  ;;  %3497 = vmatpush3.bf16.msra.mxu1 %v6751_v12 }
 0x2b7   :  { %1287 = vmatprep.subr.bf16.mxu0 %v6752_v13  ;;  %3498 = vmatprep.subr.bf16.mxu1 %v6716_v56 }
 0x2ba   :  { %1288 = vmatpush1.bf16.msra.mxu0 %v6753_v14  ;;  %3499 = vmatpush3.bf16.msra.mxu1 %v6754_v15  ;;  %v6769_v15 = vld [vmem:[#allocation35_spill] sm:$0xff] }
 0x2bb   :  { %1289 = vmatprep.subr.bf16.mxu0 %v6755_v16  ;;  %3500 = vmatprep.subr.bf16.mxu1 %v6716_v56 }
 0x2be   :  { %1290 = vmatpush1.bf16.msra.mxu0 %v6756_v17  ;;  %3501 = vmatpush3.bf16.msra.mxu1 %v6757_v18 }
 0x2bf   :  { %1291 = vmatprep.subr.bf16.mxu0 %v6758_v19  ;;  %3502 = vmatprep.subr.bf16.mxu1 %v6716_v56 }
 0x2c2   :  { %1292 = vmatpush1.bf16.msra.mxu0 %v6759_v20  ;;  %3503 = vmatpush3.bf16.msra.mxu1 %v6760_v21  ;;  %v6770_v20 = vld [vmem:[#allocation23_spill] sm:$0xff] }
 0x2c3   :  { %1293 = vmatprep.subr.bf16.mxu0 %v6761_v22  ;;  %3504 = vmatprep.subr.bf16.mxu1 %v6716_v56  ;;  %vm1467_vm3 = vcmp.eq.s32.totalorder %v6770_v20, 2 }
 0x2c4   :  { %v1468_v21 = vsel %vm1467_vm3, 1, %v6717_v51 }
 0x2c5   :  { %1470 = vperm.xlu1 %3885, %v1468_v21  }
 0x2c6   :  { %1294 = vmatpush1.bf16.msra.mxu0 %v6762_v23  ;;  %3505 = vmatpush3.bf16.msra.mxu1 %v6763_v24  ;;  %v3100_v24 = vld [vmem:[%s6554_s0 + $0x18] sm:$0xff] }
 0x2c7   :  { %1295 = vmatprep.subr.bf16.mxu0 %v6764_v26  ;;  %3506 = vmatprep.subr.bf16.mxu1 %v6716_v56  ;;  %v6771_v26 = vld [vmem:[#allocation36_spill] sm:$0xff] }
 0x2ca   :  { %1296 = vmatpush1.bf16.msra.mxu0 %v6765_v27  ;;  %3507 = vmatpush3.bf16.msra.mxu1 %v6766_v28 }
 0x2cb   :  { %1363 = vmatprep.subr.bf16.mxu0 %v6767_v29  ;;  %3512 = vmatprep.subr.bf16.mxu1 %v6716_v56  ;;  %v1261_v29 = vrot.slane %v3100_v24, 4 }
 0x340   :  { %v1049_v30 = vpop.f32.mrb[16].mxu1 }
 0x341   :  { %v3450_v31 = vpop.f32.mrb[17].mxu1 }
 0x342   :  { %v1052_v32 = vpop.f32.mrb[18].mxu1  ;;  %v1050_v31 = vadd.f32 %v1049_v30, %v4929_v39 }
 0x343   :  { %v3451_v45 = vpop.f32.mrb[19].mxu1 }
 0x344   :  { %v1252_v45 = vunpack.c.l.bf16 %v3100_v24 }
 0x360   :  { %v1090_v0 = vpop.f32.mrb[12].mxu0  ;;  %v1131_v3 = vpop.f32.mrb[20].mxu1 }
 0x361   :  { %v3834_v6 = vadd.f32 %v1090_v0, %v6768_v7  ;;  %v1092_v34 = vpop.f32.mrb[13].mxu0  ;;  %v3470_v8 = vpop.f32.mrb[21].mxu1  ;;  %v1151_v27 = vadd.f32 %v6771_v26, %v1131_v3 }
 0x362   :  { %v1094_v10 = vpop.f32.mrb[14].mxu0  ;;  %v1134_v11 = vpop.f32.mrb[22].mxu1  ;;  %v3835_v16 = vadd.f32 %v1092_v34, %v6769_v15  ;;  %v1263_v8 = vunpack.c.l.bf16 %v1261_v29 }
 0x363   :  { %v3098_v12 = vmul.f32 -1.442695, %v3834_v6  ;;  %v1095_v13 = vpop.f32.mrb[15].mxu0  ;;  %v3471_v14 = vpop.f32.mrb[23].mxu1 }
 0x364   :  { %v3099_v17 = vmul.f32 -1.442695, %v3835_v16 }
 0x365   :  { %4012 = vpow2.f32 %v3098_v12 }
 0x366   :  { %4014 = vpow2.f32 %v3099_v17 }
 0x36f   :  { %v4013_v18 = vpop.eup %4012 }
 0x370   :  { %v1141_v19 = vadd.f32 1.0, %v4013_v18  ;;  %v4015_v22 = vpop.eup %4014 }
 0x371   :  { %v1148_v23 = vadd.f32 1.0, %v4015_v22 }
 0x372   :  { %4016 = vrcp.f32 %v1141_v19 }
 0x373   :  { %4018 = vrcp.f32 %v1148_v23 }
 0x37c   :  { %v4017_v28 = vpop.eup %4016 }
 0x37d   :  { %v1152_v32 = vmul.f32 %v4017_v28, %v1151_v27  ;;  %v4019_v19 = vpop.eup %4018 }
 0x37e   :  { %v1155_v20 = vsub.f32 1.0, %v4019_v19  ;;  %v1157_v23 = vmul.f32 %v4019_v19, %v4936_v35  ;;  %v5337_v19 = vld [vmem:[%s6551_s4 + $0x38] ss:$12 sps:$4 sm:$0xff]  }
 0x37f   :  { %v1153_v0 = vadd.f32 %v1152_v32, %v1050_v31  ;;  %v5105_v31 = vld [vmem:[%s6554_s0 + $0x20] ss:$12 sps:$4 sm:$0xff]   ;;  %6785 = vst [vmem:[#allocation6_spill] sm:$0xff] %v5337_v19 }
 0x380   :  { %v1205_v6 = vpop.f32.mrb[16].mxu0  ;;  %v1246_v34 = vpop.f32.mrb[24].mxu1 }
 0x381   :  { %4020 = vtanh.f32 %v1153_v0  ;;  %v1253_v10 = vadd.f32 %v1252_v45, %v1205_v6  ;;  %v1207_v11 = vpop.f32.mrb[17].mxu0  ;;  %v3490_v12 = vpop.f32.mrb[25].mxu1  ;;  %v1271_v45 = vadd.f32 %v4675_v54, %v1246_v34  ;;  %v1273_v0 = vunpack.c.l.bf16 %v5105_v31  ;;  %v5324_v34 = vld [vmem:[%s6551_s4 + $0x34] ss:$12 sps:$4 sm:$0xff]  }
 0x382   :  { %v1209_v13 = vpop.f32.mrb[18].mxu0  ;;  %v1249_v14 = vpop.f32.mrb[26].mxu1  ;;  %v1264_v18 = vadd.f32 %v1263_v8, %v1207_v11  ;;  %6783 = vst [vmem:[#allocation4_spill] sm:$0xff] %v5324_v34 }
 0x383   :  { %v3102_v16 = vmul.f32 -1.442695, %v1253_v10  ;;  %v1210_v17 = vpop.f32.mrb[19].mxu0  ;;  %v3491_v3 = vpop.f32.mrb[27].mxu1 }
 0x384   :  { %v3103_v30 = vmul.f32 -1.442695, %v1264_v18  ;;  %v5331_v18 = vld [vmem:[%s6551_s4 + $0x30] ss:$12 sps:$4 sm:$0xff]  }
 0x385   :  { %4022 = vpow2.f32 %v3102_v16  ;;  %6784 = vst [vmem:[#allocation5_spill] sm:$0xff] %v5331_v18 }
 0x386   :  { %4024 = vpow2.f32 %v3103_v30  ;;  %v5343_v30 = vld [vmem:[%s6551_s4 + $0x4c] ss:$12 sps:$4 sm:$0xff]  }
 0x387   :  { %6786 = vst [vmem:[#allocation7_spill] sm:$0xff] %v5343_v30 }
 0x38b   :  { %v4021_v21 = vpop.eup %4020 }
 0x38c   :  { %v1156_v22 = vmul.f32 %v4021_v21, %v1155_v20  ;;  %v5350_v20 = vld [vmem:[%s6551_s4 + $0x48] ss:$12 sps:$4 sm:$0xff]   ;;  %v5356_v21 = vld [vmem:[%s6551_s4 + $0x50] ss:$12 sps:$4 sm:$0xff]  }
 0x38d   :  { %6787 = vst [vmem:[#allocation8_spill] sm:$0xff] %v5350_v20  ;;  %6788 = vst [vmem:[#allocation9_spill] sm:$0xff] %v5356_v21 }
 0x38e   :  { %v5100_v24 = vadd.f32 %v1157_v23, %v1156_v22  ;;  %v5362_v22 = vld [vmem:[%s6551_s4 + $0x64] ss:$12 sps:$4 sm:$0xff]   ;;  %v5369_v23 = vld [vmem:[%s6551_s4 + $0x60] ss:$12 sps:$4 sm:$0xff]  }
 0x38f   :  { %v4023_v27 = vpop.eup %4022  ;;  %6789 = vst [vmem:[#allocation10_spill] sm:$0xff] %v5362_v22  ;;  %6790 = vst [vmem:[#allocation11_spill] sm:$0xff] %v5369_v23 }
 0x390   :  { %6772 = vst [vmem:[#allocation24_spill] sm:$0xff] %v5100_v24  ;;  %v1257_v28 = vadd.f32 1.0, %v4023_v27  ;;  %v4025_v29 = vpop.eup %4024  ;;  %v1362_v54 = vpack.c.bf16 %v5100_v24, %v5100_v24  ;;  %v5375_v27 = vld [vmem:[%s6551_s4 + $0x68] ss:$12 sps:$4 sm:$0xff]  }
 0x391   :  { %v1268_v32 = vadd.f32 1.0, %v4025_v29  ;;  %6791 = vst [vmem:[#allocation12_spill] sm:$0xff] %v5375_v27  ;;  %v5388_v29 = vld [vmem:[%s6551_s4 + $0x78] ss:$12 sps:$4 sm:$0xff]  }
 0x392   :  { %4026 = vrcp.f32 %v1257_v28  ;;  %v5381_v28 = vld [vmem:[%s6551_s4 + $0x7c] ss:$12 sps:$4 sm:$0xff]   ;;  %6793 = vst [vmem:[#allocation14_spill] sm:$0xff] %v5388_v29 }
 0x393   :  { %4028 = vrcp.f32 %v1268_v32  ;;  %6792 = vst [vmem:[#allocation13_spill] sm:$0xff] %v5381_v28  ;;  %v5394_v32 = vld [vmem:[%s6551_s4 + $0x80] ss:$12 sps:$4 sm:$0xff]  }
 0x394   :  { %6794 = vst [vmem:[#allocation15_spill] sm:$0xff] %v5394_v32 }
 0x39c   :  { %v4027_v6 = vpop.eup %4026 }
 0x39d   :  { %v1272_v8 = vmul.f32 %v4027_v6, %v1271_v45  ;;  %v4029_v11 = vpop.eup %4028  ;;  %v5400_v45 = vld [vmem:[%s6551_s4 + $0x94] ss:$12 sps:$4 sm:$0xff]   ;;  %v5413_v6 = vld [vmem:[%s6551_s4 + $0x98] ss:$12 sps:$4 sm:$0xff]  }
 0x39e   :  { %v1276_v12 = vsub.f32 1.0, %v4029_v11  ;;  %v1278_v16 = vmul.f32 %v4029_v11, %v4943_v5  ;;  %v5250_v5 = vld [vmem:[%s6550_s2 + $0x90] ss:$12 sps:$4 sm:$0xff]   ;;  %6795 = vst [vmem:[#allocation16_spill] sm:$0xff] %v5400_v45  ;;  %6797 = vst [vmem:[#allocation18_spill] sm:$0xff] %v5413_v6 }
 0x39f   :  { %v1274_v10 = vadd.f32 %v1273_v0, %v1272_v8  ;;  %v5407_v0 = vld [vmem:[%s6551_s4 + $0x90] ss:$12 sps:$4 sm:$0xff]   ;;  %v5419_v8 = vld [vmem:[%s6551_s4 + $0xac] ss:$12 sps:$4 sm:$0xff]  }
 0x3a0   :  { %6796 = vst [vmem:[#allocation17_spill] sm:$0xff] %v5407_v0  ;;  %6798 = vst [vmem:[#allocation19_spill] sm:$0xff] %v5419_v8  ;;  %v5432_v11 = vld [vmem:[%s6551_s4 + $0xb0] ss:$12 sps:$4 sm:$0xff]  }
 0x3a1   :  { %4030 = vtanh.f32 %v1274_v10  ;;  %v5426_v10 = vld [vmem:[%s6551_s4 + $0xa8] ss:$12 sps:$4 sm:$0xff]   ;;  %6800 = vst [vmem:[#allocation21_spill] sm:$0xff] %v5432_v11 }
 0x3a2   :  { %6799 = vst [vmem:[#allocation20_spill] sm:$0xff] %v5426_v10 }
 0x3ab   :  { %v4031_v13 = vpop.eup %4030 }
 0x3ac   :  { %v1277_v14 = vmul.f32 %v4031_v13, %v1276_v12  ;;  %v5438_v12 = vld [vmem:[%s6552_s6 + $0x4] ss:$12 sps:$4 sm:$0xff]  }
 0x3ad   :  { %6801 = vst [vmem:[#allocation22_spill] sm:$0xff] %v5438_v12 }
 0x3ae   :  { %v5110_v17 = vadd.f32 %v1278_v16, %v1277_v14 }
 0x3b0   :  { %v5114_v3 = vpack.c.bf16 %v5110_v17, %v5110_v17 }
 0x3b2   :  { %1314 = vmatmul.mubr.bf16.vlgmr.msra.gmra.mrb[20].mxu0 %v5114_v3  ;;  %3509 = vmatmul.mubr.bf16.vlgmr.msra.gmra.mrb[28].mxu1 %v5114_v3 }
 0x3b3   :  { %1364 = vmatpush1.bf16.msra.mxu0 %v4686_v62  ;;  %3513 = vmatpush3.bf16.msra.mxu1 %v4691_v48  ;;  %v5159_v62 = vld [vmem:[%s6550_s2 + $0x8] ss:$12 sps:$4 sm:$0xff]   ;;  %v5171_v48 = vld [vmem:[%s6550_s2 + $0x20] ss:$12 sps:$4 sm:$0xff]  }
 0x3b4   :  { %1365 = vmatprep.subr.bf16.mxu0 %v4700_v63  ;;  %3514 = vmatprep.subr.bf16.mxu1 %v6716_v56  ;;  %v5180_v63 = vld [vmem:[%s6550_s2 + $0x38] ss:$12 sps:$4 sm:$0xff]  }
 0x3b5   :  { %1395 = vmatprep.mubr.bf16.mxu0 %v6717_v51  ;;  %3528 = vmatprep.mubr.msk.bf16.mxu1 %vm4294_vm0, %v6716_v56 }
 0x3b7   :  { %1366 = vmatpush1.bf16.msra.mxu0 %v4709_v53  ;;  %3515 = vmatpush3.bf16.msra.mxu1 %v4714_v55  ;;  %v5186_v53 = vld [vmem:[%s6550_s2 + $0x4c] ss:$12 sps:$4 sm:$0xff]   ;;  %v5193_v55 = vld [vmem:[%s6550_s2 + $0x48] ss:$12 sps:$4 sm:$0xff]  }
 0x3b8   :  { %1367 = vmatprep.subr.bf16.mxu0 %v4721_v25  ;;  %3516 = vmatprep.subr.bf16.mxu1 %v6716_v56  ;;  %v5199_v25 = vld [vmem:[%s6550_s2 + $0x50] ss:$12 sps:$4 sm:$0xff]  }
 0x3bb   :  { %1368 = vmatpush1.bf16.msra.mxu0 %v4731_v2  ;;  %3517 = vmatpush3.bf16.msra.mxu1 %v4736_v1  ;;  %v5205_v2 = vld [vmem:[%s6550_s2 + $0x64] ss:$12 sps:$4 sm:$0xff]   ;;  %v5212_v1 = vld [vmem:[%s6550_s2 + $0x60] ss:$12 sps:$4 sm:$0xff]  }
 0x3bc   :  { %1369 = vmatprep.subr.bf16.mxu0 %v4743_v57  ;;  %3518 = vmatprep.subr.bf16.mxu1 %v6716_v56  ;;  %v5218_v57 = vld [vmem:[%s6550_s2 + $0x68] ss:$12 sps:$4 sm:$0xff]  }
 0x3bf   :  { %1370 = vmatpush1.bf16.msra.mxu0 %v6738_v61  ;;  %3519 = vmatpush3.bf16.msra.mxu1 %v6739_v44  ;;  %v5256_v61 = vld [vmem:[%s6550_s2 + $0x98] ss:$12 sps:$4 sm:$0xff]  }
 0x3c0   :  { %1371 = vmatprep.subr.bf16.mxu0 %v6740_v40  ;;  %3520 = vmatprep.subr.bf16.mxu1 %v6716_v56  ;;  %6773 = vst [vmem:[#allocation25_spill] sm:$0xff] %v5256_v61  ;;  %v5262_v44 = vld [vmem:[%s6550_s2 + $0xac] ss:$12 sps:$4 sm:$0xff]   ;;  %v5269_v40 = vld [vmem:[%s6550_s2 + $0xa8] ss:$12 sps:$4 sm:$0xff]  }
 0x3c1   :  { %6774 = vst [vmem:[#allocation26_spill] sm:$0xff] %v5262_v44  ;;  %6775 = vst [vmem:[#allocation27_spill] sm:$0xff] %v5269_v40 }
 0x3c3   :  { %1372 = vmatpush1.bf16.msra.mxu0 %v6741_v37  ;;  %3521 = vmatpush3.bf16.msra.mxu1 %v6742_v36  ;;  %v5275_v37 = vld [vmem:[%s6550_s2 + $0xb0] ss:$12 sps:$4 sm:$0xff]  }
 0x3c4   :  { %1373 = vmatprep.subr.bf16.mxu0 %v6743_v38  ;;  %3522 = vmatprep.subr.bf16.mxu1 %v6716_v56  ;;  %6776 = vst [vmem:[#allocation28_spill] sm:$0xff] %v5275_v37  ;;  %v5281_v36 = vld [vmem:[%s6551_s4 + $0x4] ss:$12 sps:$4 sm:$0xff]   ;;  %v5290_v38 = vld [vmem:[%s6551_s4] ss:$12 sps:$4 sm:$0xff]  }
 0x3c5   :  { %6777 = vst [vmem:[#allocation29_spill] sm:$0xff] %v5281_v36  ;;  %6778 = vst [vmem:[#allocation30_spill] sm:$0xff] %v5290_v38 }
 0x3c7   :  { %1374 = vmatpush1.bf16.msra.mxu0 %v6744_v41  ;;  %3523 = vmatpush3.bf16.msra.mxu1 %v6745_v46  ;;  %v5296_v41 = vld [vmem:[%s6551_s4 + $0x8] ss:$12 sps:$4 sm:$0xff]  }
 0x3c8   :  { %1375 = vmatprep.subr.bf16.mxu0 %v6746_v52  ;;  %3524 = vmatprep.subr.bf16.mxu1 %v6716_v56  ;;  %6779 = vst [vmem:[#allocation31_spill] sm:$0xff] %v5296_v41  ;;  %v5302_v46 = vld [vmem:[%s6551_s4 + $0x1c] ss:$12 sps:$4 sm:$0xff]   ;;  %v5312_v52 = vld [vmem:[%s6551_s4 + $0x18] ss:$12 sps:$4 sm:$0xff]  }
 0x3c9   :  { %6780 = vst [vmem:[#allocation32_spill] sm:$0xff] %v5302_v46  ;;  %6781 = vst [vmem:[#allocation33_spill] sm:$0xff] %v5312_v52 }
 0x3cb   :  { %1376 = vmatpush1.bf16.msra.mxu0 %v4807_v60  ;;  %3525 = vmatpush3.bf16.msra.mxu1 %v6747_v43  ;;  %v5243_v60 = vld [vmem:[%s6550_s2 + $0x94] ss:$12 sps:$4 sm:$0xff]  }
 0x3cc   :  { %1377 = vmatprep.subr.bf16.mxu0 %v4819_v50  ;;  %3526 = vmatprep.subr.bf16.mxu1 %v6716_v56  ;;  %v5224_v50 = vld [vmem:[%s6550_s2 + $0x7c] ss:$12 sps:$4 sm:$0xff]   ;;  %v5318_v43 = vld [vmem:[%s6551_s4 + $0x20] ss:$12 sps:$4 sm:$0xff]  }
 0x3cd   :  { %6782 = vst [vmem:[#allocation3_spill] sm:$0xff] %v5318_v43 }
 0x3cf   :  { %1378 = vmatpush1.bf16.msra.mxu0 %v4826_v58  ;;  %3527 = vmatpush3.bf16.msra.mxu1 %v4831_v59  ;;  %v5231_v58 = vld [vmem:[%s6550_s2 + $0x78] ss:$12 sps:$4 sm:$0xff]   ;;  %v5237_v59 = vld [vmem:[%s6550_s2 + $0x80] ss:$12 sps:$4 sm:$0xff]  }
 0x3d0   :  { %1478 = vmatprep.subr.bf16.mxu0 %v4989_v4  ;;  %3532 = vmatprep.subr.bf16.mxu1 %v6716_v56 }
 0x3d2   :  { %1396 = vmatmul.mubr.bf16.vlgmr.msra.gmra.mrb[20].mxu0 %v1362_v54  ;;  %3529 = vmatmul.mubr.bf16.vlgmr.msra.gmra.mrb[32].mxu1 %v1362_v54 }
 0x3d3   :  { %1479 = vmatpush1.bf16.msra.mxu0 %v4996_v47  ;;  %3533 = vmatpush3.bf16.msra.mxu1 %v5159_v62 }
 0x3d4   :  { %1480 = vmatprep.subr.bf16.mxu0 %v5003_v33  ;;  %3534 = vmatprep.subr.bf16.mxu1 %v6716_v56 }
 0x3d5   :  { %1510 = vmatprep.mubr.bf16.mxu0 %v6717_v51  ;;  %3548 = vmatprep.mubr.msk.bf16.mxu1 %vm4294_vm0, %v6716_v56 }
 0x3d7   :  { %1481 = vmatpush1.bf16.msra.mxu0 %v5013_v42  ;;  %3535 = vmatpush3.bf16.msra.mxu1 %v5171_v48 }
 0x3d8   :  { %1482 = vmatprep.subr.bf16.mxu0 %v5020_v9  ;;  %3536 = vmatprep.subr.bf16.mxu1 %v6716_v56 }
 0x3db   :  { %1483 = vmatpush1.bf16.msra.mxu0 %v5027_v49  ;;  %3537 = vmatpush3.bf16.msra.mxu1 %v5180_v63 }
 0x3dc   :  { %1484 = vmatprep.subr.bf16.mxu0 %v5186_v53  ;;  %3538 = vmatprep.subr.bf16.mxu1 %v6716_v56 }
 0x3df   :  { %1485 = vmatpush1.bf16.msra.mxu0 %v5193_v55  ;;  %3539 = vmatpush3.bf16.msra.mxu1 %v5199_v25 }
 0x3e0   :  { %1486 = vmatprep.subr.bf16.mxu0 %v5205_v2  ;;  %3540 = vmatprep.subr.bf16.mxu1 %v6716_v56 }
 0x3e3   :  { %1487 = vmatpush1.bf16.msra.mxu0 %v5212_v1  ;;  %3541 = vmatpush3.bf16.msra.mxu1 %v5218_v57 }
 0x3e4   :  { %1488 = vmatprep.subr.bf16.mxu0 %v5224_v50  ;;  %3542 = vmatprep.subr.bf16.mxu1 %v6716_v56 }
 0x3e7   :  { %1489 = vmatpush1.bf16.msra.mxu0 %v5231_v58  ;;  %3543 = vmatpush3.bf16.msra.mxu1 %v5237_v59 }
 0x3e8   :  { %1490 = vmatprep.subr.bf16.mxu0 %v5243_v60  ;;  %3544 = vmatprep.subr.bf16.mxu1 %v6716_v56 }
 0x3eb   :  { %1491 = vmatpush1.bf16.msra.mxu0 %v5250_v5  ;;  %3545 = vmatpush3.bf16.msra.mxu1 %v5256_v61 }
 0x3ec   :  { %1492 = vmatprep.subr.bf16.mxu0 %v5262_v44  ;;  %3546 = vmatprep.subr.bf16.mxu1 %v6716_v56 }
 0x3ef   :  { %1493 = vmatpush1.bf16.msra.mxu0 %v5269_v40  ;;  %3547 = vmatpush3.bf16.msra.mxu1 %v5275_v37 }
 0x3f0   :  { %1588 = vmatprep.subr.bf16.mxu0 %v5281_v36  ;;  %3552 = vmatprep.subr.bf16.mxu1 %v6716_v56 }
 0x3f2   :  { %1511 = vmatmul.mubr.bf16.vlgmr.msra.gmra.mrb[24].mxu0 %v5114_v3  ;;  %3549 = vmatmul.mubr.bf16.vlgmr.msra.gmra.mrb[36].mxu1 %v5114_v3 }
 0x3f3   :  { %1589 = vmatpush1.bf16.msra.mxu0 %v5290_v38  ;;  %3553 = vmatpush3.bf16.msra.mxu1 %v5296_v41 }
 0x3f4   :  { %1590 = vmatprep.subr.bf16.mxu0 %v5302_v46  ;;  %3554 = vmatprep.subr.bf16.mxu1 %v6716_v56 }
 0x3f5   :  { %1620 = vmatprep.mubr.bf16.mxu0 %v6717_v51  ;;  %3568 = vmatprep.mubr.msk.bf16.mxu1 %vm4294_vm0, %v6716_v56 }
 0x3f7   :  { %1591 = vmatpush1.bf16.msra.mxu0 %v5312_v52  ;;  %3555 = vmatpush3.bf16.msra.mxu1 %v5318_v43 }
 0x3f8   :  { %1592 = vmatprep.subr.bf16.mxu0 %v5324_v34  ;;  %3556 = vmatprep.subr.bf16.mxu1 %v6716_v56 }
 0x3fb   :  { %1593 = vmatpush1.bf16.msra.mxu0 %v5331_v18  ;;  %3557 = vmatpush3.bf16.msra.mxu1 %v5337_v19 }
 0x3fc   :  { %1594 = vmatprep.subr.bf16.mxu0 %v5343_v30  ;;  %3558 = vmatprep.subr.bf16.mxu1 %v6716_v56 }
 0x3ff   :  { %1595 = vmatpush1.bf16.msra.mxu0 %v5350_v20  ;;  %3559 = vmatpush3.bf16.msra.mxu1 %v5356_v21 }
 0x400   :  { %1596 = vmatprep.subr.bf16.mxu0 %v5362_v22  ;;  %3560 = vmatprep.subr.bf16.mxu1 %v6716_v56 }
 0x403   :  { %1597 = vmatpush1.bf16.msra.mxu0 %v5369_v23  ;;  %3561 = vmatpush3.bf16.msra.mxu1 %v5375_v27 }
 0x404   :  { %1598 = vmatprep.subr.bf16.mxu0 %v5381_v28  ;;  %3562 = vmatprep.subr.bf16.mxu1 %v6716_v56 }
 0x407   :  { %1599 = vmatpush1.bf16.msra.mxu0 %v5388_v29  ;;  %3563 = vmatpush3.bf16.msra.mxu1 %v5394_v32 }
 0x408   :  { %1600 = vmatprep.subr.bf16.mxu0 %v5400_v45  ;;  %3564 = vmatprep.subr.bf16.mxu1 %v6716_v56 }
 0x40b   :  { %1601 = vmatpush1.bf16.msra.mxu0 %v5407_v0  ;;  %3565 = vmatpush3.bf16.msra.mxu1 %v5413_v6 }
 0x40c   :  { %1602 = vmatprep.subr.bf16.mxu0 %v5419_v8  ;;  %3566 = vmatprep.subr.bf16.mxu1 %v6716_v56 }
 0x40f   :  { %1603 = vmatpush1.bf16.msra.mxu0 %v5426_v10  ;;  %3567 = vmatpush3.bf16.msra.mxu1 %v5432_v11 }
 0x410   :  { %1670 = vmatprep.subr.bf16.mxu0 %v5438_v12  ;;  %3572 = vmatprep.subr.bf16.mxu1 %v6716_v56 }
 0x485   :  { %v1356_v13 = vpop.f32.mrb[28].mxu1 }
 0x486   :  { %v3510_v14 = vpop.f32.mrb[29].mxu1 }
 0x487   :  { %v1359_v16 = vpop.f32.mrb[30].mxu1 }
 0x488   :  { %v3511_v3 = vpop.f32.mrb[31].mxu1  ;;  %v5447_v16 = vld [vmem:[%s6553_s1] sm:$0xff] }
 0x489   :  { %6802 = vst [vmem:[#allocation23_spill] sm:$0xff] %v5447_v16  ;;  %vm1774_vm4 = vcmp.eq.s32.totalorder %v5447_v16, 3 }
 0x4a5   :  { %v1397_v54 = vpop.f32.mrb[20].mxu0  ;;  %v1438_v35 = vpop.f32.mrb[32].mxu1 }
 0x4a6   :  { %v3836_v10 = vadd.f32 %v1397_v54, %v6768_v7  ;;  %v1399_v8 = vpop.f32.mrb[21].mxu0  ;;  %v3530_v6 = vpop.f32.mrb[33].mxu1 }
 0x4a7   :  { %v1401_v11 = vpop.f32.mrb[22].mxu0  ;;  %v1441_v0 = vpop.f32.mrb[34].mxu1  ;;  %v3837_v28 = vadd.f32 %v1399_v8, %v6769_v15  ;;  %v1357_v8 = vadd.f32 %v1356_v13, %v4929_v39 }
 0x4a8   :  { %v3104_v45 = vmul.f32 -1.442695, %v3836_v10  ;;  %v1402_v32 = vpop.f32.mrb[23].mxu0  ;;  %v3531_v29 = vpop.f32.mrb[35].mxu1  ;;  %v1775_v0 = vsel %vm1774_vm4, 1, %v6717_v51 }
 0x4a9   :  { %v3105_v12 = vmul.f32 -1.442695, %v3837_v28  ;;  %1777 = vperm.xlu1 %3885, %v1775_v0   ;;  %v3106_v28 = vld [vmem:[%s6554_s0 + $0x24] sm:$0xff] }
 0x4aa   :  { %4032 = vpow2.f32 %v3104_v45  ;;  %v1458_v45 = vadd.f32 %v6771_v26, %v1438_v35  ;;  %v1568_v6 = vrot.slane %v3106_v28, 4  ;;  %v1559_v11 = vunpack.c.l.bf16 %v3106_v28 }
 0x4ab   :  { %4034 = vpow2.f32 %v3105_v12 }
 0x4b4   :  { %v4033_v27 = vpop.eup %4032 }
 0x4b5   :  { %v1448_v14 = vadd.f32 1.0, %v4033_v27  ;;  %v4035_v32 = vpop.eup %4034 }
 0x4b6   :  { %v1455_v29 = vadd.f32 1.0, %v4035_v32 }
 0x4b7   :  { %4036 = vrcp.f32 %v1448_v14  ;;  %v1570_v14 = vunpack.c.l.bf16 %v1568_v6 }
 0x4b8   :  { %4038 = vrcp.f32 %v1455_v29 }
 0x4c1   :  { %v4037_v27 = vpop.eup %4036 }
 0x4c2   :  { %v1459_v10 = vmul.f32 %v4037_v27, %v1458_v45  ;;  %v4039_v21 = vpop.eup %4038 }
 0x4c3   :  { %v1462_v45 = vsub.f32 1.0, %v4039_v21  ;;  %v1464_v27 = vmul.f32 %v4039_v21, %v5100_v24  ;;  %v5614_v24 = vld [vmem:[%s6552_s6 + $0xa8] ss:$12 sps:$4 sm:$0xff]  }
 0x4c4   :  { %v1460_v12 = vadd.f32 %v1459_v10, %v1357_v8 }
 0x4c5   :  { %v1512_v3 = vpop.f32.mrb[24].mxu0  ;;  %v1553_v54 = vpop.f32.mrb[36].mxu1 }
 0x4c6   :  { %4040 = vtanh.f32 %v1460_v12  ;;  %v1560_v0 = vadd.f32 %v1559_v11, %v1512_v3  ;;  %v1514_v32 = vpop.f32.mrb[25].mxu0  ;;  %v3550_v16 = vpop.f32.mrb[37].mxu1 }
 0x4c7   :  { %v1516_v15 = vpop.f32.mrb[26].mxu0  ;;  %v1556_v7 = vpop.f32.mrb[38].mxu1  ;;  %v1571_v26 = vadd.f32 %v1570_v14, %v1514_v32  ;;  %v1580_v16 = vunpack.c.h.bf16 %v5105_v31  ;;  %v5478_v31 = vld [vmem:[%s6552_s6] ss:$12 sps:$4 sm:$0xff]  }
 0x4c8   :  { %v3108_v23 = vmul.f32 -1.442695, %v1560_v0  ;;  %v1517_v22 = vpop.f32.mrb[27].mxu0  ;;  %v3551_v35 = vpop.f32.mrb[39].mxu1 }
 0x4c9   :  { %v3109_v13 = vmul.f32 -1.442695, %v1571_v26  ;;  %v5462_v22 = vld [vmem:[%s6555_s3] ss:$0 sm:$0xff] }
 0x4ca   :  { %4042 = vpow2.f32 %v3108_v23  ;;  %v1578_v23 = vadd.f32 %v5462_v22, %v1553_v54  ;;  %v5490_v54 = vld [vmem:[%s6552_s6 + $0x1c] ss:$12 sps:$4 sm:$0xff]  }
 0x4cb   :  { %4044 = vpow2.f32 %v3109_v13 }
 0x4d0   :  { %v4041_v29 = vpop.eup %4040 }
 0x4d1   :  { %v1463_v28 = vmul.f32 %v4041_v29, %v1462_v45  ;;  %v5500_v45 = vld [vmem:[%s6552_s6 + $0x18] ss:$12 sps:$4 sm:$0xff]   ;;  %v5506_v29 = vld [vmem:[%s6552_s6 + $0x20] ss:$12 sps:$4 sm:$0xff]  }
 0x4d3   :  { %v5457_v6 = vadd.f32 %v1464_v27, %v1463_v28  ;;  %v5512_v28 = vld [vmem:[%s6552_s6 + $0x34] ss:$12 sps:$4 sm:$0xff]   ;;  %v5519_v27 = vld [vmem:[%s6552_s6 + $0x30] ss:$12 sps:$4 sm:$0xff]  }
 0x4d4   :  { %v4043_v8 = vpop.eup %4042 }
 0x4d5   :  { %6803 = vst [vmem:[#allocation36_spill] sm:$0xff] %v5457_v6  ;;  %v1564_v10 = vadd.f32 1.0, %v4043_v8  ;;  %v4045_v15 = vpop.eup %4044  ;;  %v5525_v8 = vld [vmem:[%s6552_s6 + $0x38] ss:$12 sps:$4 sm:$0xff]  }
 0x4d6   :  { %v1575_v7 = vadd.f32 1.0, %v4045_v15  ;;  %v5538_v15 = vld [vmem:[%s6552_s6 + $0x48] ss:$12 sps:$4 sm:$0xff]  }
 0x4d7   :  { %4046 = vrcp.f32 %v1564_v10  ;;  %v5531_v10 = vld [vmem:[%s6552_s6 + $0x4c] ss:$12 sps:$4 sm:$0xff]  }
 0x4d8   :  { %4048 = vrcp.f32 %v1575_v7  ;;  %v5544_v7 = vld [vmem:[%s6552_s6 + $0x50] ss:$12 sps:$4 sm:$0xff]  }
 0x4e1   :  { %v4047_v11 = vpop.eup %4046 }
 0x4e2   :  { %v1579_v12 = vmul.f32 %v4047_v11, %v1578_v23  ;;  %v4049_v3 = vpop.eup %4048  ;;  %v5550_v23 = vld [vmem:[%s6552_s6 + $0x64] ss:$12 sps:$4 sm:$0xff]   ;;  %v5563_v11 = vld [vmem:[%s6552_s6 + $0x68] ss:$12 sps:$4 sm:$0xff]  }
 0x4e3   :  { %v1583_v14 = vsub.f32 1.0, %v4049_v3  ;;  %v1585_v35 = vmul.f32 %v4049_v3, %v5110_v17  ;;  %v5484_v17 = vld [vmem:[%s6552_s6 + $0x8] ss:$12 sps:$4 sm:$0xff]   ;;  %v5582_v3 = vld [vmem:[%s6552_s6 + $0x80] ss:$12 sps:$4 sm:$0xff]  }
 0x4e4   :  { %v1581_v21 = vadd.f32 %v1580_v16, %v1579_v12  ;;  %v5557_v16 = vld [vmem:[%s6552_s6 + $0x60] ss:$12 sps:$4 sm:$0xff]   ;;  %v5569_v12 = vld [vmem:[%s6552_s6 + $0x7c] ss:$12 sps:$4 sm:$0xff]  }
 0x4e6   :  { %4050 = vtanh.f32 %v1581_v21  ;;  %v5576_v21 = vld [vmem:[%s6552_s6 + $0x78] ss:$12 sps:$4 sm:$0xff]  }
 0x4f0   :  { %v4051_v0 = vpop.eup %4050 }
 0x4f1   :  { %v1584_v32 = vmul.f32 %v4051_v0, %v1583_v14  ;;  %v5588_v14 = vld [vmem:[%s6552_s6 + $0x94] ss:$12 sps:$4 sm:$0xff]   ;;  %v5595_v0 = vld [vmem:[%s6552_s6 + $0x90] ss:$12 sps:$4 sm:$0xff]  }
 0x4f2   :  { %6804 = vst [vmem:[#allocation38_spill] sm:$0xff] %v5595_v0 }
 0x4f3   :  { %v5467_v26 = vadd.f32 %v1585_v35, %v1584_v32  ;;  %v5601_v32 = vld [vmem:[%s6552_s6 + $0x98] ss:$12 sps:$4 sm:$0xff]  }
 0x4f4   :  { %6805 = vst [vmem:[#allocation39_spill] sm:$0xff] %v5601_v32  ;;  %v5607_v35 = vld [vmem:[%s6552_s6 + $0xac] ss:$12 sps:$4 sm:$0xff]  }
 0x4f5   :  { %v5471_v13 = vpack.c.bf16 %v5467_v26, %v5467_v26 }
 0x4f7   :  { %1621 = vmatmul.mubr.bf16.vlgmr.msra.gmra.mrb[28].mxu0 %v5471_v13  ;;  %3569 = vmatmul.mubr.bf16.vlgmr.msra.gmra.mrb[40].mxu1 %v5471_v13 }
 0x4f8   :  { %1671 = vmatpush1.bf16.msra.mxu0 %v5478_v31  ;;  %3573 = vmatpush3.bf16.msra.mxu1 %v5484_v17 }
 0x4f9   :  { %1672 = vmatprep.subr.bf16.mxu0 %v5490_v54  ;;  %3574 = vmatprep.subr.bf16.mxu1 %v6716_v56 }
 0x4fa   :  { %1702 = vmatprep.mubr.bf16.mxu0 %v6717_v51  ;;  %3588 = vmatprep.mubr.msk.bf16.mxu1 %vm4294_vm0, %v6716_v56 }
 0x4fc   :  { %1673 = vmatpush1.bf16.msra.mxu0 %v5500_v45  ;;  %3575 = vmatpush3.bf16.msra.mxu1 %v5506_v29 }
 0x4fd   :  { %1674 = vmatprep.subr.bf16.mxu0 %v5512_v28  ;;  %3576 = vmatprep.subr.bf16.mxu1 %v6716_v56 }
 0x500   :  { %1675 = vmatpush1.bf16.msra.mxu0 %v5519_v27  ;;  %3577 = vmatpush3.bf16.msra.mxu1 %v5525_v8 }
 0x501   :  { %1676 = vmatprep.subr.bf16.mxu0 %v5531_v10  ;;  %3578 = vmatprep.subr.bf16.mxu1 %v6716_v56 }
 0x504   :  { %1677 = vmatpush1.bf16.msra.mxu0 %v5538_v15  ;;  %3579 = vmatpush3.bf16.msra.mxu1 %v5544_v7 }
 0x505   :  { %1678 = vmatprep.subr.bf16.mxu0 %v5550_v23  ;;  %3580 = vmatprep.subr.bf16.mxu1 %v6716_v56 }
 0x508   :  { %1679 = vmatpush1.bf16.msra.mxu0 %v5557_v16  ;;  %3581 = vmatpush3.bf16.msra.mxu1 %v5563_v11 }
 0x509   :  { %1680 = vmatprep.subr.bf16.mxu0 %v5569_v12  ;;  %3582 = vmatprep.subr.bf16.mxu1 %v6716_v56 }
 0x50c   :  { %1681 = vmatpush1.bf16.msra.mxu0 %v5576_v21  ;;  %3583 = vmatpush3.bf16.msra.mxu1 %v5582_v3 }
 0x50d   :  { %1682 = vmatprep.subr.bf16.mxu0 %v5588_v14  ;;  %3584 = vmatprep.subr.bf16.mxu1 %v6716_v56 }
 0x510   :  { %1683 = vmatpush1.bf16.msra.mxu0 %v5595_v0  ;;  %3585 = vmatpush3.bf16.msra.mxu1 %v5601_v32  ;;  %v5620_v32 = vld [vmem:[%s6552_s6 + $0xb0] ss:$12 sps:$4 sm:$0xff]   ;;  %v1669_v0 = vpack.c.bf16 %v5457_v6, %v5457_v6 }
 0x511   :  { %1684 = vmatprep.subr.bf16.mxu0 %v5607_v35  ;;  %3586 = vmatprep.subr.bf16.mxu1 %v6716_v56 }
 0x514   :  { %1685 = vmatpush1.bf16.msra.mxu0 %v5614_v24  ;;  %3587 = vmatpush3.bf16.msra.mxu1 %v5620_v32 }
 0x515   :  { %1785 = vmatprep.subr.bf16.mxu0 %v4989_v4  ;;  %3592 = vmatprep.subr.bf16.mxu1 %v6716_v56  ;;  %v6806_v4 = vld [vmem:[#allocation9_spill] sm:$0xff] }
 0x517   :  { %1703 = vmatmul.mubr.bf16.vlgmr.msra.gmra.mrb[28].mxu0 %v1669_v0  ;;  %3589 = vmatmul.mubr.bf16.vlgmr.msra.gmra.mrb[44].mxu1 %v1669_v0  ;;  %v6813_v0 = vld [vmem:[#allocation16_spill] sm:$0xff] }
 0x518   :  { %1786 = vmatpush1.bf16.msra.mxu0 %v4996_v47  ;;  %3593 = vmatpush3.bf16.msra.mxu1 %v5159_v62  ;;  %v6807_v47 = vld [vmem:[#allocation10_spill] sm:$0xff] }
 0x519   :  { %1787 = vmatprep.subr.bf16.mxu0 %v5003_v33  ;;  %3594 = vmatprep.subr.bf16.mxu1 %v6716_v56  ;;  %v6808_v33 = vld [vmem:[#allocation11_spill] sm:$0xff] }
 0x51a   :  { %1817 = vmatprep.mubr.bf16.mxu0 %v6717_v51  ;;  %3608 = vmatprep.mubr.msk.bf16.mxu1 %vm4294_vm0, %v6716_v56 }
 0x51c   :  { %1788 = vmatpush1.bf16.msra.mxu0 %v5013_v42  ;;  %3595 = vmatpush3.bf16.msra.mxu1 %v5171_v48  ;;  %v6809_v42 = vld [vmem:[#allocation12_spill] sm:$0xff] }
 0x51d   :  { %1789 = vmatprep.subr.bf16.mxu0 %v5020_v9  ;;  %3596 = vmatprep.subr.bf16.mxu1 %v6716_v56  ;;  %v6810_v9 = vld [vmem:[#allocation13_spill] sm:$0xff] }
 0x520   :  { %1790 = vmatpush1.bf16.msra.mxu0 %v5027_v49  ;;  %3597 = vmatpush3.bf16.msra.mxu1 %v5180_v63  ;;  %v6811_v49 = vld [vmem:[#allocation14_spill] sm:$0xff] }
 0x521   :  { %1791 = vmatprep.subr.bf16.mxu0 %v5186_v53  ;;  %3598 = vmatprep.subr.bf16.mxu1 %v6716_v56 }
 0x524   :  { %1792 = vmatpush1.bf16.msra.mxu0 %v5193_v55  ;;  %3599 = vmatpush3.bf16.msra.mxu1 %v5199_v25 }
 0x525   :  { %1793 = vmatprep.subr.bf16.mxu0 %v5205_v2  ;;  %3600 = vmatprep.subr.bf16.mxu1 %v6716_v56 }
 0x528   :  { %1794 = vmatpush1.bf16.msra.mxu0 %v5212_v1  ;;  %3601 = vmatpush3.bf16.msra.mxu1 %v5218_v57 }
 0x529   :  { %1795 = vmatprep.subr.bf16.mxu0 %v5224_v50  ;;  %3602 = vmatprep.subr.bf16.mxu1 %v6716_v56 }
 0x52c   :  { %1796 = vmatpush1.bf16.msra.mxu0 %v5231_v58  ;;  %3603 = vmatpush3.bf16.msra.mxu1 %v5237_v59 }
 0x52d   :  { %1797 = vmatprep.subr.bf16.mxu0 %v5243_v60  ;;  %3604 = vmatprep.subr.bf16.mxu1 %v6716_v56 }
 0x530   :  { %1798 = vmatpush1.bf16.msra.mxu0 %v5250_v5  ;;  %3605 = vmatpush3.bf16.msra.mxu1 %v5256_v61 }
 0x531   :  { %1799 = vmatprep.subr.bf16.mxu0 %v5262_v44  ;;  %3606 = vmatprep.subr.bf16.mxu1 %v6716_v56 }
 0x534   :  { %1800 = vmatpush1.bf16.msra.mxu0 %v5269_v40  ;;  %3607 = vmatpush3.bf16.msra.mxu1 %v5275_v37 }
 0x535   :  { %1895 = vmatprep.subr.bf16.mxu0 %v5281_v36  ;;  %3612 = vmatprep.subr.bf16.mxu1 %v6716_v56 }
 0x537   :  { %1818 = vmatmul.mubr.bf16.vlgmr.msra.gmra.mrb[32].mxu0 %v5471_v13  ;;  %3609 = vmatmul.mubr.bf16.vlgmr.msra.gmra.mrb[48].mxu1 %v5471_v13  ;;  %v6812_v13 = vld [vmem:[#allocation15_spill] sm:$0xff] }
 0x538   :  { %1896 = vmatpush1.bf16.msra.mxu0 %v5290_v38  ;;  %3613 = vmatpush3.bf16.msra.mxu1 %v5296_v41 }
 0x539   :  { %1897 = vmatprep.subr.bf16.mxu0 %v5302_v46  ;;  %3614 = vmatprep.subr.bf16.mxu1 %v6716_v56 }
 0x53a   :  { %1927 = vmatprep.mubr.bf16.mxu0 %v6717_v51  ;;  %3628 = vmatprep.mubr.msk.bf16.mxu1 %vm4294_vm0, %v6716_v56 }
 0x53c   :  { %1898 = vmatpush1.bf16.msra.mxu0 %v5312_v52  ;;  %3615 = vmatpush3.bf16.msra.mxu1 %v5318_v43 }
 0x53d   :  { %1899 = vmatprep.subr.bf16.mxu0 %v5324_v34  ;;  %3616 = vmatprep.subr.bf16.mxu1 %v6716_v56 }
 0x540   :  { %1900 = vmatpush1.bf16.msra.mxu0 %v5331_v18  ;;  %3617 = vmatpush3.bf16.msra.mxu1 %v5337_v19  ;;  %v6820_v18 = vld [vmem:[#allocation34_spill] sm:$0xff] }
 0x541   :  { %1901 = vmatprep.subr.bf16.mxu0 %v5343_v30  ;;  %3618 = vmatprep.subr.bf16.mxu1 %v6716_v56 }
 0x544   :  { %1902 = vmatpush1.bf16.msra.mxu0 %v5350_v20  ;;  %3619 = vmatpush3.bf16.msra.mxu1 %v6806_v4  ;;  %v6814_v4 = vld [vmem:[#allocation17_spill] sm:$0xff]  ;;  %v6816_v20 = vld [vmem:[#allocation19_spill] sm:$0xff] }
 0x545   :  { %1903 = vmatprep.subr.bf16.mxu0 %v6807_v47  ;;  %3620 = vmatprep.subr.bf16.mxu1 %v6716_v56  ;;  %v6815_v47 = vld [vmem:[#allocation18_spill] sm:$0xff] }
 0x548   :  { %1904 = vmatpush1.bf16.msra.mxu0 %v6808_v33  ;;  %3621 = vmatpush3.bf16.msra.mxu1 %v6809_v42  ;;  %v6817_v42 = vld [vmem:[#allocation20_spill] sm:$0xff]  ;;  %v6819_v33 = vld [vmem:[#allocation22_spill] sm:$0xff] }
 0x549   :  { %1905 = vmatprep.subr.bf16.mxu0 %v6810_v9  ;;  %3622 = vmatprep.subr.bf16.mxu1 %v6716_v56  ;;  %v6818_v9 = vld [vmem:[#allocation21_spill] sm:$0xff] }
 0x54c   :  { %1906 = vmatpush1.bf16.msra.mxu0 %v6811_v49  ;;  %3623 = vmatpush3.bf16.msra.mxu1 %v6812_v13 }
 0x54d   :  { %1907 = vmatprep.subr.bf16.mxu0 %v6813_v0  ;;  %3624 = vmatprep.subr.bf16.mxu1 %v6716_v56 }
 0x550   :  { %1908 = vmatpush1.bf16.msra.mxu0 %v6814_v4  ;;  %3625 = vmatpush3.bf16.msra.mxu1 %v6815_v47 }
 0x551   :  { %1909 = vmatprep.subr.bf16.mxu0 %v6816_v20  ;;  %3626 = vmatprep.subr.bf16.mxu1 %v6716_v56 }
 0x554   :  { %1910 = vmatpush1.bf16.msra.mxu0 %v6817_v42  ;;  %3627 = vmatpush3.bf16.msra.mxu1 %v6818_v9  ;;  %v6821_v9 = vld [vmem:[#allocation35_spill] sm:$0xff] }
 0x555   :  { %1977 = vmatprep.subr.bf16.mxu0 %v6819_v33  ;;  %3632 = vmatprep.subr.bf16.mxu1 %v6716_v56 }
 0x5ca   :  { %v1663_v13 = vpop.f32.mrb[40].mxu1 }
 0x5cb   :  { %v3570_v0 = vpop.f32.mrb[41].mxu1 }
 0x5cc   :  { %v1666_v49 = vpop.f32.mrb[42].mxu1 }
 0x5cd   :  { %v3571_v30 = vpop.f32.mrb[43].mxu1 }
 0x5ce   :  { %v6822_v30 = vld [vmem:[#allocation23_spill] sm:$0xff] }
 0x5cf   :  { %vm2081_vm5 = vcmp.eq.s32.totalorder %v6822_v30, 4 }
 0x5d0   :  { %v2082_v49 = vsel %vm2081_vm5, 1, %v6717_v51 }
 0x5d1   :  { %2084 = vperm.xlu0 %3884, %v2082_v49  }
 0x5ea   :  { %v1704_v19 = vpop.f32.mrb[28].mxu0  ;;  %v1745_v4 = vpop.f32.mrb[44].mxu1 }
 0x5eb   :  { %v3838_v47 = vadd.f32 %v1704_v19, %v6820_v18  ;;  %v1706_v34 = vpop.f32.mrb[29].mxu0  ;;  %v3590_v20 = vpop.f32.mrb[45].mxu1 }
 0x5ec   :  { %v1708_v43 = vpop.f32.mrb[30].mxu0  ;;  %v1748_v52 = vpop.f32.mrb[46].mxu1  ;;  %v3839_v38 = vadd.f32 %v1706_v34, %v6821_v9 }
 0x5ed   :  { %v3110_v46 = vmul.f32 -1.442695, %v3838_v47  ;;  %v1709_v42 = vpop.f32.mrb[31].mxu0  ;;  %v3591_v41 = vpop.f32.mrb[47].mxu1  ;;  %v3112_v52 = vld [vmem:[%s6554_s0 + $0x30] sm:$0xff]  ;;  %v1664_v43 = vadd.f32 %v1663_v13, %v4929_v39 }
 0x5ee   :  { %v3111_v33 = vmul.f32 -1.442695, %v3839_v38  ;;  %v5709_v41 = vld [vmem:[%s6557_s7] ss:$0 sm:$0xff]  ;;  %v1866_v47 = vunpack.c.l.bf16 %v3112_v52 }
 0x5ef   :  { %4052 = vpow2.f32 %v3110_v46  ;;  %6823 = vst [vmem:[#allocation40_spill] sm:$0xff] %v5709_v41  ;;  %v1765_v38 = vadd.f32 %v5709_v41, %v1745_v4  ;;  %v1875_v46 = vrot.slane %v3112_v52, 4 }
 0x5f0   :  { %4054 = vpow2.f32 %v3111_v33 }
 0x5f1   :  { %v1877_v49 = vunpack.c.l.bf16 %v1875_v46 }
 0x5f9   :  { %v4053_v36 = vpop.eup %4052 }
 0x5fa   :  { %v1755_v0 = vadd.f32 1.0, %v4053_v36  ;;  %v4055_v19 = vpop.eup %4054 }
 0x5fb   :  { %v1762_v20 = vadd.f32 1.0, %v4055_v19 }
 0x5fc   :  { %4056 = vrcp.f32 %v1755_v0 }
 0x5fd   :  { %4058 = vrcp.f32 %v1762_v20 }
 0x606   :  { %v4057_v36 = vpop.eup %4056 }
 0x607   :  { %v1766_v34 = vmul.f32 %v4057_v36, %v1765_v38  ;;  %v4059_v61 = vpop.eup %4058 }
 0x608   :  { %v1769_v38 = vsub.f32 1.0, %v4059_v61  ;;  %v1771_v36 = vmul.f32 %v4059_v61, %v5457_v6 }
 0x609   :  { %v1767_v33 = vadd.f32 %v1766_v34, %v1664_v43 }
 0x60a   :  { %v1819_v42 = vpop.f32.mrb[32].mxu0  ;;  %v1860_v0 = vpop.f32.mrb[48].mxu1 }
 0x60b   :  { %4060 = vtanh.f32 %v1767_v33  ;;  %v1867_v19 = vadd.f32 %v1866_v47, %v1819_v42  ;;  %v1821_v30 = vpop.f32.mrb[33].mxu0  ;;  %v3610_v9 = vpop.f32.mrb[49].mxu1 }
 0x60c   :  { %v1823_v18 = vpop.f32.mrb[34].mxu0  ;;  %v1863_v37 = vpop.f32.mrb[50].mxu1  ;;  %v1878_v41 = vadd.f32 %v1877_v49, %v1821_v30 }
 0x60d   :  { %v3114_v40 = vmul.f32 -1.442695, %v1867_v19  ;;  %v1824_v44 = vpop.f32.mrb[35].mxu0  ;;  %v3611_v4 = vpop.f32.mrb[51].mxu1  ;;  %v1885_v37 = vadd.f32 %v5462_v22, %v1860_v0  ;;  %v6826_v0 = vld [vmem:[#allocation39_spill] sm:$0xff] }
 0x60e   :  { %v3115_v13 = vmul.f32 -1.442695, %v1878_v41  ;;  %v5719_v44 = vld [vmem:[%s6554_s0 + $0x38] ss:$12 sps:$4 sm:$0xff]  }
 0x60f   :  { %4062 = vpow2.f32 %v3114_v40  ;;  %v1887_v9 = vunpack.c.l.bf16 %v5719_v44 }
 0x610   :  { %4064 = vpow2.f32 %v3115_v13 }
 0x615   :  { %v4061_v20 = vpop.eup %4060 }
 0x616   :  { %v1770_v52 = vmul.f32 %v4061_v20, %v1769_v38  ;;  %v5770_v20 = vld [vmem:[%s6550_s2 + $0x4] ss:$12 sps:$4 sm:$0xff]  }
 0x618   :  { %v5714_v46 = vadd.f32 %v1771_v36, %v1770_v52  ;;  %v5777_v52 = vld [vmem:[%s6550_s2] ss:$12 sps:$4 sm:$0xff]   ;;  %v5784_v36 = vld [vmem:[%s6550_s2 + $0x1c] ss:$12 sps:$4 sm:$0xff]  }
 0x619   :  { %v4063_v43 = vpop.eup %4062 }
 0x61a   :  { %6824 = vst [vmem:[#allocation41_spill] sm:$0xff] %v5714_v46  ;;  %v1871_v34 = vadd.f32 1.0, %v4063_v43  ;;  %v4065_v18 = vpop.eup %4064  ;;  %v1976_v38 = vpack.c.bf16 %v5714_v46, %v5714_v46  ;;  %v5794_v43 = vld [vmem:[%s6550_s2 + $0x18] ss:$12 sps:$4 sm:$0xff]  }
 0x61b   :  { %v1882_v40 = vadd.f32 1.0, %v4065_v18  ;;  %v6840_v18 = vld [vmem:[#allocation7_spill] sm:$0xff] }
 0x61c   :  { %4066 = vrcp.f32 %v1871_v34  ;;  %v5808_v34 = vld [vmem:[%s6550_s2 + $0x30] ss:$12 sps:$4 sm:$0xff]  }
 0x61d   :  { %4068 = vrcp.f32 %v1882_v40  ;;  %v6841_v40 = vld [vmem:[#allocation8_spill] sm:$0xff] }
 0x626   :  { %v4067_v30 = vpop.eup %4066 }
 0x627   :  { %v1886_v41 = vmul.f32 %v4067_v30, %v1885_v37  ;;  %v4069_v47 = vpop.eup %4068  ;;  %v6842_v37 = vld [vmem:[#allocation9_spill] sm:$0xff]  ;;  %v6844_v30 = vld [vmem:[#allocation11_spill] sm:$0xff] }
 0x628   :  { %v1890_v33 = vsub.f32 1.0, %v4069_v47  ;;  %v1892_v19 = vmul.f32 %v4069_v47, %v5467_v26  ;;  %v6825_v26 = vld [vmem:[#allocation38_spill] sm:$0xff] }
 0x629   :  { %v1888_v61 = vadd.f32 %v1887_v9, %v1886_v41  ;;  %v6843_v9 = vld [vmem:[#allocation10_spill] sm:$0xff]  ;;  %v6845_v41 = vld [vmem:[#allocation12_spill] sm:$0xff] }
 0x62a   :  { %v6847_v47 = vld [vmem:[#allocation14_spill] sm:$0xff] }
 0x62b   :  { %4070 = vtanh.f32 %v1888_v61  ;;  %v6846_v61 = vld [vmem:[#allocation13_spill] sm:$0xff] }
 0x635   :  { %v4071_v42 = vpop.eup %4070 }
 0x636   :  { %v1891_v49 = vmul.f32 %v4071_v42, %v1890_v33  ;;  %v6848_v33 = vld [vmem:[#allocation15_spill] sm:$0xff]  ;;  %v6849_v42 = vld [vmem:[#allocation16_spill] sm:$0xff] }
 0x638   :  { %v5724_v4 = vadd.f32 %v1892_v19, %v1891_v49  ;;  %v6850_v49 = vld [vmem:[#allocation17_spill] sm:$0xff]  ;;  %v6851_v19 = vld [vmem:[#allocation18_spill] sm:$0xff] }
 0x63a   :  { %v5728_v13 = vpack.c.bf16 %v5724_v4, %v5724_v4 }
 0x63c   :  { %1928 = vmatmul.mubr.bf16.vlgmr.msra.gmra.mrb[36].mxu0 %v5728_v13  ;;  %3629 = vmatmul.mubr.bf16.vlgmr.msra.gmra.mrb[52].mxu1 %v5728_v13 }
 0x63d   :  { %1978 = vmatpush1.bf16.msra.mxu0 %v5478_v31  ;;  %3633 = vmatpush3.bf16.msra.mxu1 %v5484_v17 }
 0x63e   :  { %1979 = vmatprep.subr.bf16.mxu0 %v5490_v54  ;;  %3634 = vmatprep.subr.bf16.mxu1 %v6716_v56 }
 0x63f   :  { %2009 = vmatprep.mubr.bf16.mxu0 %v6717_v51  ;;  %3648 = vmatprep.mubr.msk.bf16.mxu1 %vm4294_vm0, %v6716_v56 }
 0x641   :  { %1980 = vmatpush1.bf16.msra.mxu0 %v5500_v45  ;;  %3635 = vmatpush3.bf16.msra.mxu1 %v5506_v29 }
 0x642   :  { %1981 = vmatprep.subr.bf16.mxu0 %v5512_v28  ;;  %3636 = vmatprep.subr.bf16.mxu1 %v6716_v56 }
 0x645   :  { %1982 = vmatpush1.bf16.msra.mxu0 %v5519_v27  ;;  %3637 = vmatpush3.bf16.msra.mxu1 %v5525_v8 }
 0x646   :  { %1983 = vmatprep.subr.bf16.mxu0 %v5531_v10  ;;  %3638 = vmatprep.subr.bf16.mxu1 %v6716_v56 }
 0x649   :  { %1984 = vmatpush1.bf16.msra.mxu0 %v5538_v15  ;;  %3639 = vmatpush3.bf16.msra.mxu1 %v5544_v7 }
 0x64a   :  { %1985 = vmatprep.subr.bf16.mxu0 %v5550_v23  ;;  %3640 = vmatprep.subr.bf16.mxu1 %v6716_v56 }
 0x64d   :  { %1986 = vmatpush1.bf16.msra.mxu0 %v5557_v16  ;;  %3641 = vmatpush3.bf16.msra.mxu1 %v5563_v11 }
 0x64e   :  { %1987 = vmatprep.subr.bf16.mxu0 %v5569_v12  ;;  %3642 = vmatprep.subr.bf16.mxu1 %v6716_v56 }
 0x651   :  { %1988 = vmatpush1.bf16.msra.mxu0 %v5576_v21  ;;  %3643 = vmatpush3.bf16.msra.mxu1 %v5582_v3 }
 0x652   :  { %1989 = vmatprep.subr.bf16.mxu0 %v5588_v14  ;;  %3644 = vmatprep.subr.bf16.mxu1 %v6716_v56 }
 0x655   :  { %1990 = vmatpush1.bf16.msra.mxu0 %v6825_v26  ;;  %3645 = vmatpush3.bf16.msra.mxu1 %v6826_v0 }
 0x656   :  { %1991 = vmatprep.subr.bf16.mxu0 %v5607_v35  ;;  %3646 = vmatprep.subr.bf16.mxu1 %v6716_v56 }
 0x659   :  { %1992 = vmatpush1.bf16.msra.mxu0 %v5614_v24  ;;  %3647 = vmatpush3.bf16.msra.mxu1 %v5620_v32 }
 0x65a   :  { %2092 = vmatprep.subr.bf16.mxu0 %v5770_v20  ;;  %3652 = vmatprep.subr.bf16.mxu1 %v6716_v56 }
 0x65c   :  { %2010 = vmatmul.mubr.bf16.vlgmr.msra.gmra.mrb[36].mxu0 %v1976_v38  ;;  %3649 = vmatmul.mubr.bf16.vlgmr.msra.gmra.mrb[56].mxu1 %v1976_v38  ;;  %v6853_v38 = vld [vmem:[#allocation20_spill] sm:$0xff] }
 0x65d   :  { %2093 = vmatpush1.bf16.msra.mxu0 %v5777_v52  ;;  %3653 = vmatpush3.bf16.msra.mxu1 %v5159_v62  ;;  %v5801_v62 = vld [vmem:[%s6550_s2 + $0x34] ss:$12 sps:$4 sm:$0xff]  }
 0x65e   :  { %2094 = vmatprep.subr.bf16.mxu0 %v5784_v36  ;;  %3654 = vmatprep.subr.bf16.mxu1 %v6716_v56 }
 0x65f   :  { %2124 = vmatprep.mubr.bf16.mxu0 %v6717_v51  ;;  %3668 = vmatprep.mubr.msk.bf16.mxu1 %vm4294_vm0, %v6716_v56 }
 0x661   :  { %2095 = vmatpush1.bf16.msra.mxu0 %v5794_v43  ;;  %3655 = vmatpush3.bf16.msra.mxu1 %v5171_v48  ;;  %v6827_v48 = vld [vmem:[#allocation25_spill] sm:$0xff] }
 0x662   :  { %2096 = vmatprep.subr.bf16.mxu0 %v5801_v62  ;;  %3656 = vmatprep.subr.bf16.mxu1 %v6716_v56 }
 0x665   :  { %2097 = vmatpush1.bf16.msra.mxu0 %v5808_v34  ;;  %3657 = vmatpush3.bf16.msra.mxu1 %v5180_v63  ;;  %v6828_v63 = vld [vmem:[#allocation26_spill] sm:$0xff] }
 0x666   :  { %2098 = vmatprep.subr.bf16.mxu0 %v5186_v53  ;;  %3658 = vmatprep.subr.bf16.mxu1 %v6716_v56  ;;  %v6829_v53 = vld [vmem:[#allocation27_spill] sm:$0xff] }
 0x669   :  { %2099 = vmatpush1.bf16.msra.mxu0 %v5193_v55  ;;  %3659 = vmatpush3.bf16.msra.mxu1 %v5199_v25  ;;  %v6830_v55 = vld [vmem:[#allocation28_spill] sm:$0xff]  ;;  %v6831_v25 = vld [vmem:[#allocation29_spill] sm:$0xff] }
 0x66a   :  { %2100 = vmatprep.subr.bf16.mxu0 %v5205_v2  ;;  %3660 = vmatprep.subr.bf16.mxu1 %v6716_v56  ;;  %v6832_v2 = vld [vmem:[#allocation30_spill] sm:$0xff] }
 0x66d   :  { %2101 = vmatpush1.bf16.msra.mxu0 %v5212_v1  ;;  %3661 = vmatpush3.bf16.msra.mxu1 %v5218_v57  ;;  %v6833_v1 = vld [vmem:[#allocation31_spill] sm:$0xff]  ;;  %v6834_v57 = vld [vmem:[#allocation32_spill] sm:$0xff] }
 0x66e   :  { %2102 = vmatprep.subr.bf16.mxu0 %v5224_v50  ;;  %3662 = vmatprep.subr.bf16.mxu1 %v6716_v56  ;;  %v6835_v50 = vld [vmem:[#allocation33_spill] sm:$0xff] }
 0x671   :  { %2103 = vmatpush1.bf16.msra.mxu0 %v5231_v58  ;;  %3663 = vmatpush3.bf16.msra.mxu1 %v5237_v59  ;;  %v6836_v58 = vld [vmem:[#allocation3_spill] sm:$0xff]  ;;  %v6837_v59 = vld [vmem:[#allocation4_spill] sm:$0xff] }
 0x672   :  { %2104 = vmatprep.subr.bf16.mxu0 %v5243_v60  ;;  %3664 = vmatprep.subr.bf16.mxu1 %v6716_v56  ;;  %v6838_v60 = vld [vmem:[#allocation5_spill] sm:$0xff] }
 0x675   :  { %2105 = vmatpush1.bf16.msra.mxu0 %v5250_v5  ;;  %3665 = vmatpush3.bf16.msra.mxu1 %v6827_v48  ;;  %v6839_v5 = vld [vmem:[#allocation6_spill] sm:$0xff]  ;;  %v6854_v48 = vld [vmem:[#allocation21_spill] sm:$0xff] }
 0x676   :  { %2106 = vmatprep.subr.bf16.mxu0 %v6828_v63  ;;  %3666 = vmatprep.subr.bf16.mxu1 %v6716_v56  ;;  %v6855_v63 = vld [vmem:[#allocation22_spill] sm:$0xff] }
 0x679   :  { %2107 = vmatpush1.bf16.msra.mxu0 %v6829_v53  ;;  %3667 = vmatpush3.bf16.msra.mxu1 %v6830_v55 }
 0x67a   :  { %2202 = vmatprep.subr.bf16.mxu0 %v6831_v25  ;;  %3672 = vmatprep.subr.bf16.mxu1 %v6716_v56 }
 0x67c   :  { %2125 = vmatmul.mubr.bf16.vlgmr.msra.gmra.mrb[40].mxu0 %v5728_v13  ;;  %3669 = vmatmul.mubr.bf16.vlgmr.msra.gmra.mrb[60].mxu1 %v5728_v13  ;;  %v6852_v13 = vld [vmem:[#allocation19_spill] sm:$0xff] }
 0x67d   :  { %2203 = vmatpush1.bf16.msra.mxu0 %v6832_v2  ;;  %3673 = vmatpush3.bf16.msra.mxu1 %v6833_v1 }
 0x67e   :  { %2204 = vmatprep.subr.bf16.mxu0 %v6834_v57  ;;  %3674 = vmatprep.subr.bf16.mxu1 %v6716_v56 }
 0x67f   :  { %2234 = vmatprep.mubr.bf16.mxu0 %v6717_v51  ;;  %3688 = vmatprep.mubr.msk.bf16.mxu1 %vm4294_vm0, %v6716_v56 }
 0x681   :  { %2205 = vmatpush1.bf16.msra.mxu0 %v6835_v50  ;;  %3675 = vmatpush3.bf16.msra.mxu1 %v6836_v58  ;;  %v6856_v50 = vld [vmem:[#allocation34_spill] sm:$0xff] }
 0x682   :  { %2206 = vmatprep.subr.bf16.mxu0 %v6837_v59  ;;  %3676 = vmatprep.subr.bf16.mxu1 %v6716_v56 }
 0x685   :  { %2207 = vmatpush1.bf16.msra.mxu0 %v6838_v60  ;;  %3677 = vmatpush3.bf16.msra.mxu1 %v6839_v5 }
 0x686   :  { %2208 = vmatprep.subr.bf16.mxu0 %v6840_v18  ;;  %3678 = vmatprep.subr.bf16.mxu1 %v6716_v56 }
 0x689   :  { %2209 = vmatpush1.bf16.msra.mxu0 %v6841_v40  ;;  %3679 = vmatpush3.bf16.msra.mxu1 %v6842_v37 }
 0x68a   :  { %2210 = vmatprep.subr.bf16.mxu0 %v6843_v9  ;;  %3680 = vmatprep.subr.bf16.mxu1 %v6716_v56 }
 0x68d   :  { %2211 = vmatpush1.bf16.msra.mxu0 %v6844_v30  ;;  %3681 = vmatpush3.bf16.msra.mxu1 %v6845_v41  ;;  %v6857_v30 = vld [vmem:[#allocation35_spill] sm:$0xff] }
 0x68e   :  { %2212 = vmatprep.subr.bf16.mxu0 %v6846_v61  ;;  %3682 = vmatprep.subr.bf16.mxu1 %v6716_v56 }
 0x691   :  { %2213 = vmatpush1.bf16.msra.mxu0 %v6847_v47  ;;  %3683 = vmatpush3.bf16.msra.mxu1 %v6848_v33 }
 0x692   :  { %2214 = vmatprep.subr.bf16.mxu0 %v6849_v42  ;;  %3684 = vmatprep.subr.bf16.mxu1 %v6716_v56  ;;  %v6858_v42 = vld [vmem:[#allocation23_spill] sm:$0xff] }
 0x693   :  { %vm2388_vm6 = vcmp.eq.s32.totalorder %v6858_v42, 5 }
 0x695   :  { %2215 = vmatpush1.bf16.msra.mxu0 %v6850_v49  ;;  %3685 = vmatpush3.bf16.msra.mxu1 %v6851_v19  ;;  %v2389_v49 = vsel %vm2388_vm6, 1, %v6717_v51 }
 0x696   :  { %2216 = vmatprep.subr.bf16.mxu0 %v6852_v13  ;;  %3686 = vmatprep.subr.bf16.mxu1 %v6716_v56 }
 0x697   :  { %2391 = vperm.xlu1 %3885, %v2389_v49  }
 0x699   :  { %2217 = vmatpush1.bf16.msra.mxu0 %v6853_v38  ;;  %3687 = vmatpush3.bf16.msra.mxu1 %v6854_v48  ;;  %v3118_v38 = vld [vmem:[%s6554_s0 + $0x3c] sm:$0xff]  ;;  %v6859_v48 = vld [vmem:[#allocation40_spill] sm:$0xff] }
 0x69a   :  { %2284 = vmatprep.subr.bf16.mxu0 %v6855_v63  ;;  %3692 = vmatprep.subr.bf16.mxu1 %v6716_v56 }
 0x70f   :  { %v1970_v53 = vpop.f32.mrb[52].mxu1 }
 0x710   :  { %v3630_v55 = vpop.f32.mrb[53].mxu1 }
 0x711   :  { %v1973_v25 = vpop.f32.mrb[54].mxu1 }
 0x712   :  { %v3631_v2 = vpop.f32.mrb[55].mxu1  ;;  %v2182_v25 = vrot.slane %v3118_v38, 4 }
 0x713   :  { %v1971_v2 = vadd.f32 %v1970_v53, %v4929_v39 }
 0x72f   :  { %v2011_v1 = vpop.f32.mrb[36].mxu0  ;;  %v2052_v57 = vpop.f32.mrb[56].mxu1 }
 0x730   :  { %v3840_v58 = vadd.f32 %v2011_v1, %v6856_v50  ;;  %v2013_v59 = vpop.f32.mrb[37].mxu0  ;;  %v3650_v60 = vpop.f32.mrb[57].mxu1  ;;  %v2072_v63 = vadd.f32 %v6859_v48, %v2052_v57 }
 0x731   :  { %v2015_v5 = vpop.f32.mrb[38].mxu0  ;;  %v2055_v18 = vpop.f32.mrb[58].mxu1  ;;  %v3841_v41 = vadd.f32 %v2013_v59, %v6857_v30 }
 0x732   :  { %v3116_v40 = vmul.f32 -1.442695, %v3840_v58  ;;  %v2016_v37 = vpop.f32.mrb[39].mxu0  ;;  %v3651_v9 = vpop.f32.mrb[59].mxu1  ;;  %v2173_v58 = vunpack.c.l.bf16 %v3118_v38  ;;  %v2184_v18 = vunpack.c.l.bf16 %v2182_v25 }
 0x733   :  { %v3117_v61 = vmul.f32 -1.442695, %v3841_v41 }
 0x734   :  { %4072 = vpow2.f32 %v3116_v40 }
 0x735   :  { %4074 = vpow2.f32 %v3117_v61 }
 0x73e   :  { %v4073_v47 = vpop.eup %4072 }
 0x73f   :  { %v2062_v33 = vadd.f32 1.0, %v4073_v47  ;;  %v4075_v19 = vpop.eup %4074 }
 0x740   :  { %v2069_v13 = vadd.f32 1.0, %v4075_v19 }
 0x741   :  { %4076 = vrcp.f32 %v2062_v33 }
 0x742   :  { %4078 = vrcp.f32 %v2069_v13 }
 0x74b   :  { %v4077_v55 = vpop.eup %4076 }
 0x74c   :  { %v2073_v1 = vmul.f32 %v4077_v55, %v2072_v63  ;;  %v4079_v49 = vpop.eup %4078 }
 0x74d   :  { %v2076_v19 = vsub.f32 1.0, %v4079_v49  ;;  %v2078_v63 = vmul.f32 %v4079_v49, %v5714_v46  ;;  %v6113_v49 = vld [vmem:[%s6551_s4 + $0x38] ss:$12 sps:$4 sm:$0xff]  }
 0x74e   :  { %v2074_v59 = vadd.f32 %v2073_v1, %v1971_v2 }
 0x74f   :  { %v2126_v60 = vpop.f32.mrb[40].mxu0  ;;  %v2167_v5 = vpop.f32.mrb[60].mxu1 }
 0x750   :  { %4080 = vtanh.f32 %v2074_v59  ;;  %v2174_v40 = vadd.f32 %v2173_v58, %v2126_v60  ;;  %v2128_v37 = vpop.f32.mrb[41].mxu0  ;;  %v3670_v9 = vpop.f32.mrb[61].mxu1  ;;  %v2192_v59 = vadd.f32 %v5462_v22, %v2167_v5  ;;  %v2194_v60 = vunpack.c.h.bf16 %v5719_v44  ;;  %v6078_v44 = vld [vmem:[%s6551_s4 + $0x1c] ss:$12 sps:$4 sm:$0xff]  }
 0x751   :  { %v2130_v41 = vpop.f32.mrb[42].mxu0  ;;  %v2170_v61 = vpop.f32.mrb[62].mxu1  ;;  %v2185_v42 = vadd.f32 %v2184_v18, %v2128_v37  ;;  %v6107_v5 = vld [vmem:[%s6551_s4 + $0x30] ss:$12 sps:$4 sm:$0xff]  }
 0x752   :  { %v3120_v47 = vmul.f32 -1.442695, %v2174_v40  ;;  %v2131_v33 = vpop.f32.mrb[43].mxu0  ;;  %v3671_v57 = vpop.f32.mrb[63].mxu1 }
 0x753   :  { %v3121_v53 = vmul.f32 -1.442695, %v2185_v42 }
 0x754   :  { %4082 = vpow2.f32 %v3120_v47 }
 0x755   :  { %4084 = vpow2.f32 %v3121_v53  ;;  %v6119_v53 = vld [vmem:[%s6551_s4 + $0x4c] ss:$12 sps:$4 sm:$0xff]  }
 0x75a   :  { %v4081_v13 = vpop.eup %4080 }
 0x75b   :  { %v2077_v38 = vmul.f32 %v4081_v13, %v2076_v19  ;;  %v6126_v19 = vld [vmem:[%s6551_s4 + $0x48] ss:$12 sps:$4 sm:$0xff]   ;;  %v6132_v13 = vld [vmem:[%s6551_s4 + $0x50] ss:$12 sps:$4 sm:$0xff]  }
 0x75d   :  { %v5881_v55 = vadd.f32 %v2078_v63, %v2077_v38  ;;  %v6138_v38 = vld [vmem:[%s6551_s4 + $0x64] ss:$12 sps:$4 sm:$0xff]   ;;  %v6145_v63 = vld [vmem:[%s6551_s4 + $0x60] ss:$12 sps:$4 sm:$0xff]  }
 0x75e   :  { %v4083_v25 = vpop.eup %4082  ;;  %6861 = vst [vmem:[#allocation39_spill] sm:$0xff] %v6138_v38  ;;  %6862 = vst [vmem:[#allocation25_spill] sm:$0xff] %v6145_v63 }
 0x75f   :  { %6860 = vst [vmem:[#allocation38_spill] sm:$0xff] %v5881_v55  ;;  %v2178_v2 = vadd.f32 1.0, %v4083_v25  ;;  %v4085_v1 = vpop.eup %4084  ;;  %v2283_v22 = vpack.c.bf16 %v5881_v55, %v5881_v55  ;;  %v6151_v25 = vld [vmem:[%s6551_s4 + $0x68] ss:$12 sps:$4 sm:$0xff]  }
 0x760   :  { %v2189_v58 = vadd.f32 1.0, %v4085_v1  ;;  %6863 = vst [vmem:[#allocation26_spill] sm:$0xff] %v6151_v25  ;;  %v6164_v1 = vld [vmem:[%s6551_s4 + $0x78] ss:$12 sps:$4 sm:$0xff]  }
 0x761   :  { %4086 = vrcp.f32 %v2178_v2  ;;  %v6157_v2 = vld [vmem:[%s6551_s4 + $0x7c] ss:$12 sps:$4 sm:$0xff]   ;;  %6865 = vst [vmem:[#allocation28_spill] sm:$0xff] %v6164_v1 }
 0x762   :  { %4088 = vrcp.f32 %v2189_v58  ;;  %6864 = vst [vmem:[#allocation27_spill] sm:$0xff] %v6157_v2  ;;  %v6170_v58 = vld [vmem:[%s6551_s4 + $0x80] ss:$12 sps:$4 sm:$0xff]  }
 0x763   :  { %6866 = vst [vmem:[#allocation29_spill] sm:$0xff] %v6170_v58 }
 0x76b   :  { %v4087_v18 = vpop.eup %4086 }
 0x76c   :  { %v2193_v40 = vmul.f32 %v4087_v18, %v2192_v59  ;;  %v4089_v9 = vpop.eup %4088  ;;  %v6176_v59 = vld [vmem:[%s6551_s4 + $0x94] ss:$12 sps:$4 sm:$0xff]   ;;  %v6189_v18 = vld [vmem:[%s6551_s4 + $0x98] ss:$12 sps:$4 sm:$0xff]  }
 0x76d   :  { %v2197_v41 = vsub.f32 1.0, %v4089_v9  ;;  %v2199_v33 = vmul.f32 %v4089_v9, %v5724_v4  ;;  %v6088_v4 = vld [vmem:[%s6551_s4 + $0x18] ss:$12 sps:$4 sm:$0xff]   ;;  %6867 = vst [vmem:[#allocation30_spill] sm:$0xff] %v6176_v59  ;;  %6869 = vst [vmem:[#allocation32_spill] sm:$0xff] %v6189_v18 }
 0x76e   :  { %v2195_v37 = vadd.f32 %v2194_v60, %v2193_v40  ;;  %v6183_v60 = vld [vmem:[%s6551_s4 + $0x90] ss:$12 sps:$4 sm:$0xff]   ;;  %v6195_v40 = vld [vmem:[%s6551_s4 + $0xac] ss:$12 sps:$4 sm:$0xff]  }
 0x76f   :  { %6868 = vst [vmem:[#allocation31_spill] sm:$0xff] %v6183_v60  ;;  %6870 = vst [vmem:[#allocation33_spill] sm:$0xff] %v6195_v40  ;;  %v6208_v9 = vld [vmem:[%s6551_s4 + $0xb0] ss:$12 sps:$4 sm:$0xff]  }
 0x770   :  { %4090 = vtanh.f32 %v2195_v37  ;;  %v6202_v37 = vld [vmem:[%s6551_s4 + $0xa8] ss:$12 sps:$4 sm:$0xff]   ;;  %6872 = vst [vmem:[#allocation4_spill] sm:$0xff] %v6208_v9 }
 0x771   :  { %6871 = vst [vmem:[#allocation3_spill] sm:$0xff] %v6202_v37 }
 0x77a   :  { %v4091_v61 = vpop.eup %4090 }
 0x77b   :  { %v2198_v47 = vmul.f32 %v4091_v61, %v2197_v41  ;;  %v6214_v41 = vld [vmem:[%s6552_s6 + $0x4] ss:$12 sps:$4 sm:$0xff]  }
 0x77c   :  { %6873 = vst [vmem:[#allocation5_spill] sm:$0xff] %v6214_v41 }
 0x77d   :  { %v5886_v57 = vadd.f32 %v2199_v33, %v2198_v47 }
 0x77f   :  { %v5890_v42 = vpack.c.bf16 %v5886_v57, %v5886_v57 }
 0x781   :  { %2235 = vmatmul.mubr.bf16.vlgmr.msra.gmra.mrb[44].mxu0 %v5890_v42  ;;  %3689 = vmatmul.mubr.bf16.vlgmr.msra.gmra.mrb[64].mxu1 %v5890_v42 }
 0x782   :  { %2285 = vmatpush1.bf16.msra.mxu0 %v5478_v31  ;;  %3693 = vmatpush3.bf16.msra.mxu1 %v5484_v17  ;;  %v5935_v31 = vld [vmem:[%s6550_s2 + $0x8] ss:$12 sps:$4 sm:$0xff]   ;;  %v5956_v17 = vld [vmem:[%s6550_s2 + $0x38] ss:$12 sps:$4 sm:$0xff]  }
 0x783   :  { %2286 = vmatprep.subr.bf16.mxu0 %v5490_v54  ;;  %3694 = vmatprep.subr.bf16.mxu1 %v6716_v56  ;;  %v5962_v54 = vld [vmem:[%s6550_s2 + $0x4c] ss:$12 sps:$4 sm:$0xff]  }
 0x784   :  { %2316 = vmatprep.mubr.bf16.mxu0 %v6717_v51  ;;  %3708 = vmatprep.mubr.msk.bf16.mxu1 %vm4294_vm0, %v6716_v56 }
 0x786   :  { %2287 = vmatpush1.bf16.msra.mxu0 %v5500_v45  ;;  %3695 = vmatpush3.bf16.msra.mxu1 %v5506_v29  ;;  %v5969_v45 = vld [vmem:[%s6550_s2 + $0x48] ss:$12 sps:$4 sm:$0xff]   ;;  %v5975_v29 = vld [vmem:[%s6550_s2 + $0x50] ss:$12 sps:$4 sm:$0xff]  }
 0x787   :  { %2288 = vmatprep.subr.bf16.mxu0 %v5512_v28  ;;  %3696 = vmatprep.subr.bf16.mxu1 %v6716_v56  ;;  %v5981_v28 = vld [vmem:[%s6550_s2 + $0x64] ss:$12 sps:$4 sm:$0xff]  }
 0x78a   :  { %2289 = vmatpush1.bf16.msra.mxu0 %v5519_v27  ;;  %3697 = vmatpush3.bf16.msra.mxu1 %v5525_v8  ;;  %v5988_v27 = vld [vmem:[%s6550_s2 + $0x60] ss:$12 sps:$4 sm:$0xff]   ;;  %v5994_v8 = vld [vmem:[%s6550_s2 + $0x68] ss:$12 sps:$4 sm:$0xff]  }
 0x78b   :  { %2290 = vmatprep.subr.bf16.mxu0 %v5531_v10  ;;  %3698 = vmatprep.subr.bf16.mxu1 %v6716_v56  ;;  %v6000_v10 = vld [vmem:[%s6550_s2 + $0x7c] ss:$12 sps:$4 sm:$0xff]  }
 0x78e   :  { %2291 = vmatpush1.bf16.msra.mxu0 %v5538_v15  ;;  %3699 = vmatpush3.bf16.msra.mxu1 %v5544_v7  ;;  %v6007_v15 = vld [vmem:[%s6550_s2 + $0x78] ss:$12 sps:$4 sm:$0xff]   ;;  %v6013_v7 = vld [vmem:[%s6550_s2 + $0x80] ss:$12 sps:$4 sm:$0xff]  }
 0x78f   :  { %2292 = vmatprep.subr.bf16.mxu0 %v5550_v23  ;;  %3700 = vmatprep.subr.bf16.mxu1 %v6716_v56  ;;  %v6019_v23 = vld [vmem:[%s6550_s2 + $0x94] ss:$12 sps:$4 sm:$0xff]  }
 0x792   :  { %2293 = vmatpush1.bf16.msra.mxu0 %v5557_v16  ;;  %3701 = vmatpush3.bf16.msra.mxu1 %v5563_v11  ;;  %v6026_v16 = vld [vmem:[%s6550_s2 + $0x90] ss:$12 sps:$4 sm:$0xff]   ;;  %v6032_v11 = vld [vmem:[%s6550_s2 + $0x98] ss:$12 sps:$4 sm:$0xff]  }
 0x793   :  { %2294 = vmatprep.subr.bf16.mxu0 %v5569_v12  ;;  %3702 = vmatprep.subr.bf16.mxu1 %v6716_v56  ;;  %v6038_v12 = vld [vmem:[%s6550_s2 + $0xac] ss:$12 sps:$4 sm:$0xff]  }
 0x796   :  { %2295 = vmatpush1.bf16.msra.mxu0 %v5576_v21  ;;  %3703 = vmatpush3.bf16.msra.mxu1 %v5582_v3  ;;  %v6045_v21 = vld [vmem:[%s6550_s2 + $0xa8] ss:$12 sps:$4 sm:$0xff]   ;;  %v6051_v3 = vld [vmem:[%s6550_s2 + $0xb0] ss:$12 sps:$4 sm:$0xff]  }
 0x797   :  { %2296 = vmatprep.subr.bf16.mxu0 %v5588_v14  ;;  %3704 = vmatprep.subr.bf16.mxu1 %v6716_v56  ;;  %v6057_v14 = vld [vmem:[%s6551_s4 + $0x4] ss:$12 sps:$4 sm:$0xff]  }
 0x79a   :  { %2297 = vmatpush1.bf16.msra.mxu0 %v6825_v26  ;;  %3705 = vmatpush3.bf16.msra.mxu1 %v6826_v0  ;;  %v6094_v26 = vld [vmem:[%s6551_s4 + $0x20] ss:$12 sps:$4 sm:$0xff]  }
 0x79b   :  { %2298 = vmatprep.subr.bf16.mxu0 %v5607_v35  ;;  %3706 = vmatprep.subr.bf16.mxu1 %v6716_v56  ;;  %v6072_v35 = vld [vmem:[%s6551_s4 + $0x8] ss:$12 sps:$4 sm:$0xff]  }
 0x79c   :  { %v6100_v0 = vld [vmem:[%s6551_s4 + $0x34] ss:$12 sps:$4 sm:$0xff]  }
 0x79e   :  { %2299 = vmatpush1.bf16.msra.mxu0 %v5614_v24  ;;  %3707 = vmatpush3.bf16.msra.mxu1 %v5620_v32  ;;  %v5947_v24 = vld [vmem:[%s6550_s2 + $0x20] ss:$12 sps:$4 sm:$0xff]  }
 0x79f   :  { %2399 = vmatprep.subr.bf16.mxu0 %v5770_v20  ;;  %3712 = vmatprep.subr.bf16.mxu1 %v6716_v56  ;;  %v6066_v32 = vld [vmem:[%s6551_s4] ss:$12 sps:$4 sm:$0xff]  }
 0x7a1   :  { %2317 = vmatmul.mubr.bf16.vlgmr.msra.gmra.mrb[44].mxu0 %v2283_v22  ;;  %3709 = vmatmul.mubr.bf16.vlgmr.msra.gmra.mrb[68].mxu1 %v2283_v22 }
 0x7a2   :  { %2400 = vmatpush1.bf16.msra.mxu0 %v5777_v52  ;;  %3713 = vmatpush3.bf16.msra.mxu1 %v5935_v31 }
 0x7a3   :  { %2401 = vmatprep.subr.bf16.mxu0 %v5784_v36  ;;  %3714 = vmatprep.subr.bf16.mxu1 %v6716_v56 }
 0x7a4   :  { %2431 = vmatprep.mubr.bf16.mxu0 %v6717_v51  ;;  %3728 = vmatprep.mubr.msk.bf16.mxu1 %vm4294_vm0, %v6716_v56 }
 0x7a6   :  { %2402 = vmatpush1.bf16.msra.mxu0 %v5794_v43  ;;  %3715 = vmatpush3.bf16.msra.mxu1 %v5947_v24 }
 0x7a7   :  { %2403 = vmatprep.subr.bf16.mxu0 %v5801_v62  ;;  %3716 = vmatprep.subr.bf16.mxu1 %v6716_v56 }
 0x7aa   :  { %2404 = vmatpush1.bf16.msra.mxu0 %v5808_v34  ;;  %3717 = vmatpush3.bf16.msra.mxu1 %v5956_v17 }
 0x7ab   :  { %2405 = vmatprep.subr.bf16.mxu0 %v5962_v54  ;;  %3718 = vmatprep.subr.bf16.mxu1 %v6716_v56 }
 0x7ae   :  { %2406 = vmatpush1.bf16.msra.mxu0 %v5969_v45  ;;  %3719 = vmatpush3.bf16.msra.mxu1 %v5975_v29 }
 0x7af   :  { %2407 = vmatprep.subr.bf16.mxu0 %v5981_v28  ;;  %3720 = vmatprep.subr.bf16.mxu1 %v6716_v56 }
 0x7b2   :  { %2408 = vmatpush1.bf16.msra.mxu0 %v5988_v27  ;;  %3721 = vmatpush3.bf16.msra.mxu1 %v5994_v8 }
 0x7b3   :  { %2409 = vmatprep.subr.bf16.mxu0 %v6000_v10  ;;  %3722 = vmatprep.subr.bf16.mxu1 %v6716_v56 }
 0x7b6   :  { %2410 = vmatpush1.bf16.msra.mxu0 %v6007_v15  ;;  %3723 = vmatpush3.bf16.msra.mxu1 %v6013_v7 }
 0x7b7   :  { %2411 = vmatprep.subr.bf16.mxu0 %v6019_v23  ;;  %3724 = vmatprep.subr.bf16.mxu1 %v6716_v56 }
 0x7ba   :  { %2412 = vmatpush1.bf16.msra.mxu0 %v6026_v16  ;;  %3725 = vmatpush3.bf16.msra.mxu1 %v6032_v11 }
 0x7bb   :  { %2413 = vmatprep.subr.bf16.mxu0 %v6038_v12  ;;  %3726 = vmatprep.subr.bf16.mxu1 %v6716_v56 }
 0x7be   :  { %2414 = vmatpush1.bf16.msra.mxu0 %v6045_v21  ;;  %3727 = vmatpush3.bf16.msra.mxu1 %v6051_v3 }
 0x7bf   :  { %2509 = vmatprep.subr.bf16.mxu0 %v6057_v14  ;;  %3732 = vmatprep.subr.bf16.mxu1 %v6716_v56 }
 0x7c1   :  { %2432 = vmatmul.mubr.bf16.vlgmr.msra.gmra.mrb[48].mxu0 %v5890_v42  ;;  %3729 = vmatmul.mubr.bf16.vlgmr.msra.gmra.mrb[72].mxu1 %v5890_v42 }
 0x7c2   :  { %2510 = vmatpush1.bf16.msra.mxu0 %v6066_v32  ;;  %3733 = vmatpush3.bf16.msra.mxu1 %v6072_v35 }
 0x7c3   :  { %2511 = vmatprep.subr.bf16.mxu0 %v6078_v44  ;;  %3734 = vmatprep.subr.bf16.mxu1 %v6716_v56 }
 0x7c4   :  { %2541 = vmatprep.mubr.bf16.mxu0 %v6717_v51  ;;  %3748 = vmatprep.mubr.msk.bf16.mxu1 %vm4294_vm0, %v6716_v56 }
 0x7c6   :  { %2512 = vmatpush1.bf16.msra.mxu0 %v6088_v4  ;;  %3735 = vmatpush3.bf16.msra.mxu1 %v6094_v26 }
 0x7c7   :  { %2513 = vmatprep.subr.bf16.mxu0 %v6100_v0  ;;  %3736 = vmatprep.subr.bf16.mxu1 %v6716_v56 }
 0x7ca   :  { %2514 = vmatpush1.bf16.msra.mxu0 %v6107_v5  ;;  %3737 = vmatpush3.bf16.msra.mxu1 %v6113_v49 }
 0x7cb   :  { %2515 = vmatprep.subr.bf16.mxu0 %v6119_v53  ;;  %3738 = vmatprep.subr.bf16.mxu1 %v6716_v56 }
 0x7ce   :  { %2516 = vmatpush1.bf16.msra.mxu0 %v6126_v19  ;;  %3739 = vmatpush3.bf16.msra.mxu1 %v6132_v13 }
 0x7cf   :  { %2517 = vmatprep.subr.bf16.mxu0 %v6138_v38  ;;  %3740 = vmatprep.subr.bf16.mxu1 %v6716_v56 }
 0x7d2   :  { %2518 = vmatpush1.bf16.msra.mxu0 %v6145_v63  ;;  %3741 = vmatpush3.bf16.msra.mxu1 %v6151_v25 }
 0x7d3   :  { %2519 = vmatprep.subr.bf16.mxu0 %v6157_v2  ;;  %3742 = vmatprep.subr.bf16.mxu1 %v6716_v56 }
 0x7d6   :  { %2520 = vmatpush1.bf16.msra.mxu0 %v6164_v1  ;;  %3743 = vmatpush3.bf16.msra.mxu1 %v6170_v58 }
 0x7d7   :  { %2521 = vmatprep.subr.bf16.mxu0 %v6176_v59  ;;  %3744 = vmatprep.subr.bf16.mxu1 %v6716_v56 }
 0x7da   :  { %2522 = vmatpush1.bf16.msra.mxu0 %v6183_v60  ;;  %3745 = vmatpush3.bf16.msra.mxu1 %v6189_v18 }
 0x7db   :  { %2523 = vmatprep.subr.bf16.mxu0 %v6195_v40  ;;  %3746 = vmatprep.subr.bf16.mxu1 %v6716_v56 }
 0x7de   :  { %2524 = vmatpush1.bf16.msra.mxu0 %v6202_v37  ;;  %3747 = vmatpush3.bf16.msra.mxu1 %v6208_v9 }
 0x7df   :  { %2591 = vmatprep.subr.bf16.mxu0 %v6214_v41  ;;  %3752 = vmatprep.subr.bf16.mxu1 %v6716_v56 }
 0x854   :  { %v2277_v61 = vpop.f32.mrb[64].mxu1 }
 0x855   :  { %v3690_v47 = vpop.f32.mrb[65].mxu1 }
 0x856   :  { %v2280_v33 = vpop.f32.mrb[66].mxu1 }
 0x857   :  { %v3691_v42 = vpop.f32.mrb[67].mxu1  ;;  %v6223_v33 = vld [vmem:[%s6553_s1] sm:$0xff] }
 0x858   :  { %6874 = vst [vmem:[#allocation6_spill] sm:$0xff] %v6223_v33  ;;  %vm2695_vm7 = vcmp.eq.s32.totalorder %v6223_v33, 6 }
 0x874   :  { %v2318_v22 = vpop.f32.mrb[44].mxu0  ;;  %v2359_v46 = vpop.f32.mrb[68].mxu1 }
 0x875   :  { %v3842_v6 = vadd.f32 %v2318_v22, %v6856_v50  ;;  %v2320_v37 = vpop.f32.mrb[45].mxu0  ;;  %v3710_v40 = vpop.f32.mrb[69].mxu1 }
 0x876   :  { %v2322_v9 = vpop.f32.mrb[46].mxu0  ;;  %v2362_v18 = vpop.f32.mrb[70].mxu1  ;;  %v3843_v1 = vadd.f32 %v2320_v37, %v6857_v30  ;;  %v2278_v40 = vadd.f32 %v2277_v61, %v4929_v39 }
 0x877   :  { %v3122_v60 = vmul.f32 -1.442695, %v3842_v6  ;;  %v2323_v59 = vpop.f32.mrb[47].mxu0  ;;  %v3711_v58 = vpop.f32.mrb[71].mxu1  ;;  %v2696_v18 = vsel %vm2695_vm7, 1, %v6717_v51 }
 0x878   :  { %v3123_v41 = vmul.f32 -1.442695, %v3843_v1  ;;  %2698 = vperm.xlu0 %3884, %v2696_v18   ;;  %v3124_v1 = vld [vmem:[%s6554_s0 + $0x48] sm:$0xff]  ;;  %v2379_v59 = vadd.f32 %v6859_v48, %v2359_v46 }
 0x879   :  { %4092 = vpow2.f32 %v3122_v60  ;;  %v2489_v60 = vrot.slane %v3124_v1, 4  ;;  %v2480_v9 = vunpack.c.l.bf16 %v3124_v1 }
 0x87a   :  { %4094 = vpow2.f32 %v3123_v41 }
 0x883   :  { %v4093_v2 = vpop.eup %4092 }
 0x884   :  { %v2369_v47 = vadd.f32 1.0, %v4093_v2  ;;  %v4095_v6 = vpop.eup %4094 }
 0x885   :  { %v2376_v58 = vadd.f32 1.0, %v4095_v6 }
 0x886   :  { %4096 = vrcp.f32 %v2369_v47  ;;  %v2491_v47 = vunpack.c.l.bf16 %v2489_v60 }
 0x887   :  { %4098 = vrcp.f32 %v2376_v58 }
 0x890   :  { %v4097_v2 = vpop.eup %4096 }
 0x891   :  { %v2380_v37 = vmul.f32 %v4097_v2, %v2379_v59  ;;  %v4099_v38 = vpop.eup %4098 }
 0x892   :  { %v2383_v59 = vsub.f32 1.0, %v4099_v38  ;;  %v2385_v2 = vmul.f32 %v4099_v38, %v5881_v55  ;;  %v6382_v55 = vld [vmem:[%s6552_s6 + $0x98] ss:$12 sps:$4 sm:$0xff]  }
 0x893   :  { %v2381_v41 = vadd.f32 %v2380_v37, %v2278_v40  ;;  %6878 = vst [vmem:[#allocation10_spill] sm:$0xff] %v6382_v55 }
 0x894   :  { %v2433_v42 = vpop.f32.mrb[48].mxu0  ;;  %v2474_v22 = vpop.f32.mrb[72].mxu1 }
 0x895   :  { %4100 = vtanh.f32 %v2381_v41  ;;  %v2481_v18 = vadd.f32 %v2480_v9, %v2433_v42  ;;  %v2435_v6 = vpop.f32.mrb[49].mxu0  ;;  %v3730_v30 = vpop.f32.mrb[73].mxu1 }
 0x896   :  { %v2437_v50 = vpop.f32.mrb[50].mxu0  ;;  %v2477_v33 = vpop.f32.mrb[74].mxu1  ;;  %v2492_v48 = vadd.f32 %v2491_v47, %v2435_v6  ;;  %v6238_v30 = vld [vmem:[%s6554_s0 + $0x50] ss:$12 sps:$4 sm:$0xff]  }
 0x897   :  { %v3126_v25 = vmul.f32 -1.442695, %v2481_v18  ;;  %v2438_v63 = vpop.f32.mrb[51].mxu0  ;;  %v3731_v46 = vpop.f32.mrb[75].mxu1  ;;  %v2501_v38 = vunpack.c.l.bf16 %v6238_v30 }
 0x898   :  { %v3127_v61 = vmul.f32 -1.442695, %v2492_v48 }
 0x899   :  { %4102 = vpow2.f32 %v3126_v25  ;;  %v6243_v25 = vld [vmem:[%s6555_s3] ss:$0 sm:$0xff] }
 0x89a   :  { %4104 = vpow2.f32 %v3127_v61  ;;  %v2499_v33 = vadd.f32 %v6243_v25, %v2474_v22  ;;  %v6259_v22 = vld [vmem:[%s6552_s6] ss:$12 sps:$4 sm:$0xff]  }
 0x89f   :  { %v4101_v58 = vpop.eup %4100 }
 0x8a0   :  { %v2384_v1 = vmul.f32 %v4101_v58, %v2383_v59  ;;  %v6271_v58 = vld [vmem:[%s6552_s6 + $0x1c] ss:$12 sps:$4 sm:$0xff]  }
 0x8a2   :  { %v6233_v60 = vadd.f32 %v2385_v2, %v2384_v1  ;;  %v6281_v1 = vld [vmem:[%s6552_s6 + $0x18] ss:$12 sps:$4 sm:$0xff]   ;;  %v6287_v2 = vld [vmem:[%s6552_s6 + $0x20] ss:$12 sps:$4 sm:$0xff]  }
 0x8a3   :  { %v4103_v40 = vpop.eup %4102 }
 0x8a4   :  { %v2485_v37 = vadd.f32 1.0, %v4103_v40  ;;  %v4105_v50 = vpop.eup %4104  ;;  %v6293_v40 = vld [vmem:[%s6552_s6 + $0x34] ss:$12 sps:$4 sm:$0xff]  }
 0x8a5   :  { %v2496_v63 = vadd.f32 1.0, %v4105_v50  ;;  %v6306_v50 = vld [vmem:[%s6552_s6 + $0x38] ss:$12 sps:$4 sm:$0xff]  }
 0x8a6   :  { %4106 = vrcp.f32 %v2485_v37  ;;  %v6300_v37 = vld [vmem:[%s6552_s6 + $0x30] ss:$12 sps:$4 sm:$0xff]  }
 0x8a7   :  { %4108 = vrcp.f32 %v2496_v63  ;;  %v6312_v63 = vld [vmem:[%s6552_s6 + $0x4c] ss:$12 sps:$4 sm:$0xff]  }
 0x8b0   :  { %v4107_v9 = vpop.eup %4106 }
 0x8b1   :  { %v2500_v41 = vmul.f32 %v4107_v9, %v2499_v33  ;;  %v4109_v47 = vpop.eup %4108  ;;  %v6319_v33 = vld [vmem:[%s6552_s6 + $0x48] ss:$12 sps:$4 sm:$0xff]   ;;  %v6331_v9 = vld [vmem:[%s6552_s6 + $0x64] ss:$12 sps:$4 sm:$0xff]  }
 0x8b2   :  { %v2504_v18 = vsub.f32 1.0, %v4109_v47  ;;  %v2506_v48 = vmul.f32 %v4109_v47, %v5886_v57  ;;  %v6265_v57 = vld [vmem:[%s6552_s6 + $0x8] ss:$12 sps:$4 sm:$0xff]  }
 0x8b3   :  { %v2502_v42 = vadd.f32 %v2501_v38, %v2500_v41  ;;  %v6325_v38 = vld [vmem:[%s6552_s6 + $0x50] ss:$12 sps:$4 sm:$0xff]   ;;  %v6338_v41 = vld [vmem:[%s6552_s6 + $0x60] ss:$12 sps:$4 sm:$0xff]  }
 0x8b4   :  { %v6350_v47 = vld [vmem:[%s6552_s6 + $0x7c] ss:$12 sps:$4 sm:$0xff]  }
 0x8b5   :  { %4110 = vtanh.f32 %v2502_v42  ;;  %v6344_v42 = vld [vmem:[%s6552_s6 + $0x68] ss:$12 sps:$4 sm:$0xff]  }
 0x8bf   :  { %v4111_v6 = vpop.eup %4110 }
 0x8c0   :  { %v2505_v46 = vmul.f32 %v4111_v6, %v2504_v18  ;;  %v6357_v18 = vld [vmem:[%s6552_s6 + $0x78] ss:$12 sps:$4 sm:$0xff]   ;;  %v6363_v6 = vld [vmem:[%s6552_s6 + $0x80] ss:$12 sps:$4 sm:$0xff]  }
 0x8c1   :  { %6875 = vst [vmem:[#allocation7_spill] sm:$0xff] %v6363_v6 }
 0x8c2   :  { %v6248_v61 = vadd.f32 %v2506_v48, %v2505_v46  ;;  %v6369_v46 = vld [vmem:[%s6552_s6 + $0x94] ss:$12 sps:$4 sm:$0xff]   ;;  %v6376_v48 = vld [vmem:[%s6552_s6 + $0x90] ss:$12 sps:$4 sm:$0xff]  }
 0x8c3   :  { %6876 = vst [vmem:[#allocation8_spill] sm:$0xff] %v6369_v46  ;;  %6877 = vst [vmem:[#allocation9_spill] sm:$0xff] %v6376_v48 }
 0x8c4   :  { %v6252_v59 = vpack.c.bf16 %v6248_v61, %v6248_v61 }
 0x8c6   :  { %2542 = vmatmul.mubr.bf16.vlgmr.msra.gmra.mrb[52].mxu0 %v6252_v59  ;;  %3749 = vmatmul.mubr.bf16.vlgmr.msra.gmra.mrb[76].mxu1 %v6252_v59 }
 0x8c7   :  { %2592 = vmatpush1.bf16.msra.mxu0 %v6259_v22  ;;  %3753 = vmatpush3.bf16.msra.mxu1 %v6265_v57 }
 0x8c8   :  { %2593 = vmatprep.subr.bf16.mxu0 %v6271_v58  ;;  %3754 = vmatprep.subr.bf16.mxu1 %v6716_v56 }
 0x8c9   :  { %2623 = vmatprep.mubr.bf16.mxu0 %v6717_v51  ;;  %3768 = vmatprep.mubr.msk.bf16.mxu1 %vm4294_vm0, %v6716_v56 }
 0x8cb   :  { %2594 = vmatpush1.bf16.msra.mxu0 %v6281_v1  ;;  %3755 = vmatpush3.bf16.msra.mxu1 %v6287_v2 }
 0x8cc   :  { %2595 = vmatprep.subr.bf16.mxu0 %v6293_v40  ;;  %3756 = vmatprep.subr.bf16.mxu1 %v6716_v56 }
 0x8cf   :  { %2596 = vmatpush1.bf16.msra.mxu0 %v6300_v37  ;;  %3757 = vmatpush3.bf16.msra.mxu1 %v6306_v50 }
 0x8d0   :  { %2597 = vmatprep.subr.bf16.mxu0 %v6312_v63  ;;  %3758 = vmatprep.subr.bf16.mxu1 %v6716_v56 }
 0x8d3   :  { %2598 = vmatpush1.bf16.msra.mxu0 %v6319_v33  ;;  %3759 = vmatpush3.bf16.msra.mxu1 %v6325_v38 }
 0x8d4   :  { %2599 = vmatprep.subr.bf16.mxu0 %v6331_v9  ;;  %3760 = vmatprep.subr.bf16.mxu1 %v6716_v56 }
 0x8d7   :  { %2600 = vmatpush1.bf16.msra.mxu0 %v6338_v41  ;;  %3761 = vmatpush3.bf16.msra.mxu1 %v6344_v42 }
 0x8d8   :  { %2601 = vmatprep.subr.bf16.mxu0 %v6350_v47  ;;  %3762 = vmatprep.subr.bf16.mxu1 %v6716_v56 }
 0x8db   :  { %2602 = vmatpush1.bf16.msra.mxu0 %v6357_v18  ;;  %3763 = vmatpush3.bf16.msra.mxu1 %v6363_v6  ;;  %v2590_v6 = vpack.c.bf16 %v6233_v60, %v6233_v60 }
 0x8dc   :  { %2603 = vmatprep.subr.bf16.mxu0 %v6369_v46  ;;  %3764 = vmatprep.subr.bf16.mxu1 %v6716_v56  ;;  %v6388_v46 = vld [vmem:[%s6552_s6 + $0xac] ss:$12 sps:$4 sm:$0xff]  }
 0x8df   :  { %2604 = vmatpush1.bf16.msra.mxu0 %v6376_v48  ;;  %3765 = vmatpush3.bf16.msra.mxu1 %v6382_v55  ;;  %v6395_v48 = vld [vmem:[%s6552_s6 + $0xa8] ss:$12 sps:$4 sm:$0xff]   ;;  %v6401_v55 = vld [vmem:[%s6552_s6 + $0xb0] ss:$12 sps:$4 sm:$0xff]  }
 0x8e0   :  { %2605 = vmatprep.subr.bf16.mxu0 %v6388_v46  ;;  %3766 = vmatprep.subr.bf16.mxu1 %v6716_v56 }
 0x8e3   :  { %2606 = vmatpush1.bf16.msra.mxu0 %v6395_v48  ;;  %3767 = vmatpush3.bf16.msra.mxu1 %v6401_v55 }
 0x8e4   :  { %2706 = vmatprep.subr.bf16.mxu0 %v5770_v20  ;;  %3772 = vmatprep.subr.bf16.mxu1 %v6716_v56  ;;  %v6879_v20 = vld [vmem:[#allocation39_spill] sm:$0xff] }
 0x8e6   :  { %2624 = vmatmul.mubr.bf16.vlgmr.msra.gmra.mrb[52].mxu0 %v2590_v6  ;;  %3769 = vmatmul.mubr.bf16.vlgmr.msra.gmra.mrb[80].mxu1 %v2590_v6  ;;  %v3130_v6 = vld [vmem:[%s6554_s0 + $0x54] sm:$0xff] }
 0x8e7   :  { %2707 = vmatpush1.bf16.msra.mxu0 %v5777_v52  ;;  %3773 = vmatpush3.bf16.msra.mxu1 %v5935_v31  ;;  %v6880_v52 = vld [vmem:[#allocation25_spill] sm:$0xff]  ;;  %v6885_v31 = vld [vmem:[#allocation30_spill] sm:$0xff] }
 0x8e8   :  { %2708 = vmatprep.subr.bf16.mxu0 %v5784_v36  ;;  %3774 = vmatprep.subr.bf16.mxu1 %v6716_v56  ;;  %v6881_v36 = vld [vmem:[#allocation26_spill] sm:$0xff] }
 0x8e9   :  { %2738 = vmatprep.mubr.bf16.mxu0 %v6717_v51  ;;  %3788 = vmatprep.mubr.msk.bf16.mxu1 %vm4294_vm0, %v6716_v56 }
 0x8eb   :  { %2709 = vmatpush1.bf16.msra.mxu0 %v5794_v43  ;;  %3775 = vmatpush3.bf16.msra.mxu1 %v5947_v24  ;;  %v6882_v43 = vld [vmem:[#allocation27_spill] sm:$0xff] }
 0x8ec   :  { %2710 = vmatprep.subr.bf16.mxu0 %v5801_v62  ;;  %3776 = vmatprep.subr.bf16.mxu1 %v6716_v56  ;;  %v6883_v62 = vld [vmem:[#allocation28_spill] sm:$0xff]  ;;  %v6886_v24 = vld [vmem:[#allocation31_spill] sm:$0xff] }
 0x8ef   :  { %2711 = vmatpush1.bf16.msra.mxu0 %v5808_v34  ;;  %3777 = vmatpush3.bf16.msra.mxu1 %v5956_v17  ;;  %v6884_v34 = vld [vmem:[#allocation29_spill] sm:$0xff]  ;;  %v6887_v17 = vld [vmem:[#allocation32_spill] sm:$0xff] }
 0x8f0   :  { %2712 = vmatprep.subr.bf16.mxu0 %v5962_v54  ;;  %3778 = vmatprep.subr.bf16.mxu1 %v6716_v56  ;;  %v6888_v54 = vld [vmem:[#allocation33_spill] sm:$0xff] }
 0x8f3   :  { %2713 = vmatpush1.bf16.msra.mxu0 %v5969_v45  ;;  %3779 = vmatpush3.bf16.msra.mxu1 %v5975_v29  ;;  %v6889_v45 = vld [vmem:[#allocation3_spill] sm:$0xff]  ;;  %v6890_v29 = vld [vmem:[#allocation4_spill] sm:$0xff] }
 0x8f4   :  { %2714 = vmatprep.subr.bf16.mxu0 %v5981_v28  ;;  %3780 = vmatprep.subr.bf16.mxu1 %v6716_v56  ;;  %v6891_v28 = vld [vmem:[#allocation5_spill] sm:$0xff] }
 0x8f7   :  { %2715 = vmatpush1.bf16.msra.mxu0 %v5988_v27  ;;  %3781 = vmatpush3.bf16.msra.mxu1 %v5994_v8 }
 0x8f8   :  { %2716 = vmatprep.subr.bf16.mxu0 %v6000_v10  ;;  %3782 = vmatprep.subr.bf16.mxu1 %v6716_v56 }
 0x8fb   :  { %2717 = vmatpush1.bf16.msra.mxu0 %v6007_v15  ;;  %3783 = vmatpush3.bf16.msra.mxu1 %v6013_v7  ;;  %v6892_v7 = vld [vmem:[#allocation6_spill] sm:$0xff] }
 0x8fc   :  { %2718 = vmatprep.subr.bf16.mxu0 %v6019_v23  ;;  %3784 = vmatprep.subr.bf16.mxu1 %v6716_v56  ;;  %vm3002_vm8 = vcmp.eq.s32.totalorder %v6892_v7, 7 }
 0x8fd   :  { %v3003_v23 = vsel %vm3002_vm8, 1, %v6717_v51 }
 0x8fe   :  { %3005 = vperm.xlu1 %3885, %v3003_v23  }
 0x8ff   :  { %2719 = vmatpush1.bf16.msra.mxu0 %v6026_v16  ;;  %3785 = vmatpush3.bf16.msra.mxu1 %v6032_v11 }
 0x900   :  { %2720 = vmatprep.subr.bf16.mxu0 %v6038_v12  ;;  %3786 = vmatprep.subr.bf16.mxu1 %v6716_v56  ;;  %v6893_v12 = vld [vmem:[#allocation34_spill] sm:$0xff] }
 0x903   :  { %2721 = vmatpush1.bf16.msra.mxu0 %v6045_v21  ;;  %3787 = vmatpush3.bf16.msra.mxu1 %v6051_v3 }
 0x904   :  { %2816 = vmatprep.subr.bf16.mxu0 %v6057_v14  ;;  %3792 = vmatprep.subr.bf16.mxu1 %v6716_v56 }
 0x906   :  { %2739 = vmatmul.mubr.bf16.vlgmr.msra.gmra.mrb[56].mxu0 %v6252_v59  ;;  %3789 = vmatmul.mubr.bf16.vlgmr.msra.gmra.mrb[84].mxu1 %v6252_v59 }
 0x907   :  { %2817 = vmatpush1.bf16.msra.mxu0 %v6066_v32  ;;  %3793 = vmatpush3.bf16.msra.mxu1 %v6072_v35 }
 0x908   :  { %2818 = vmatprep.subr.bf16.mxu0 %v6078_v44  ;;  %3794 = vmatprep.subr.bf16.mxu1 %v6716_v56 }
 0x909   :  { %2848 = vmatprep.mubr.bf16.mxu0 %v6717_v51  ;;  %3808 = vmatprep.mubr.msk.bf16.mxu1 %vm4294_vm0, %v6716_v56 }
 0x90b   :  { %2819 = vmatpush1.bf16.msra.mxu0 %v6088_v4  ;;  %3795 = vmatpush3.bf16.msra.mxu1 %v6094_v26 }
 0x90c   :  { %2820 = vmatprep.subr.bf16.mxu0 %v6100_v0  ;;  %3796 = vmatprep.subr.bf16.mxu1 %v6716_v56  ;;  %v6894_v0 = vld [vmem:[#allocation35_spill] sm:$0xff] }
 0x90f   :  { %2821 = vmatpush1.bf16.msra.mxu0 %v6107_v5  ;;  %3797 = vmatpush3.bf16.msra.mxu1 %v6113_v49 }
 0x910   :  { %2822 = vmatprep.subr.bf16.mxu0 %v6119_v53  ;;  %3798 = vmatprep.subr.bf16.mxu1 %v6716_v56 }
 0x913   :  { %2823 = vmatpush1.bf16.msra.mxu0 %v6126_v19  ;;  %3799 = vmatpush3.bf16.msra.mxu1 %v6132_v13 }
 0x914   :  { %2824 = vmatprep.subr.bf16.mxu0 %v6879_v20  ;;  %3800 = vmatprep.subr.bf16.mxu1 %v6716_v56  ;;  %v6490_v20 = vld [vmem:[%s6557_s7] ss:$0 sm:$0xff] }
 0x917   :  { %2825 = vmatpush1.bf16.msra.mxu0 %v6880_v52  ;;  %3801 = vmatpush3.bf16.msra.mxu1 %v6881_v36 }
 0x918   :  { %2826 = vmatprep.subr.bf16.mxu0 %v6882_v43  ;;  %3802 = vmatprep.subr.bf16.mxu1 %v6716_v56  ;;  %v2796_v43 = vrot.slane %v3130_v6, 4 }
 0x91b   :  { %2827 = vmatpush1.bf16.msra.mxu0 %v6883_v62  ;;  %3803 = vmatpush3.bf16.msra.mxu1 %v6884_v34 }
 0x91c   :  { %2828 = vmatprep.subr.bf16.mxu0 %v6885_v31  ;;  %3804 = vmatprep.subr.bf16.mxu1 %v6716_v56  ;;  %v2787_v31 = vunpack.c.l.bf16 %v3130_v6 }
 0x91f   :  { %2829 = vmatpush1.bf16.msra.mxu0 %v6886_v24  ;;  %3805 = vmatpush3.bf16.msra.mxu1 %v6887_v17 }
 0x920   :  { %2830 = vmatprep.subr.bf16.mxu0 %v6888_v54  ;;  %3806 = vmatprep.subr.bf16.mxu1 %v6716_v56 }
 0x923   :  { %2831 = vmatpush1.bf16.msra.mxu0 %v6889_v45  ;;  %3807 = vmatpush3.bf16.msra.mxu1 %v6890_v29  ;;  %v2798_v45 = vunpack.c.l.bf16 %v2796_v43 }
 0x924   :  { %2898 = vmatprep.subr.bf16.mxu0 %v6891_v28  ;;  %3812 = vmatprep.subr.bf16.mxu1 %v6716_v56 }
 0x999   :  { %v2584_v27 = vpop.f32.mrb[76].mxu1 }
 0x99a   :  { %v3750_v8 = vpop.f32.mrb[77].mxu1  ;;  %v2585_v62 = vadd.f32 %v2584_v27, %v4929_v39 }
 0x99b   :  { %v2587_v10 = vpop.f32.mrb[78].mxu1 }
 0x99c   :  { %v3751_v15 = vpop.f32.mrb[79].mxu1 }
 0x9b9   :  { %v2625_v16 = vpop.f32.mrb[52].mxu0  ;;  %v2666_v11 = vpop.f32.mrb[80].mxu1 }
 0x9ba   :  { %v3844_v21 = vadd.f32 %v2625_v16, %v6893_v12  ;;  %v2627_v3 = vpop.f32.mrb[53].mxu0  ;;  %v3770_v14 = vpop.f32.mrb[81].mxu1  ;;  %v2686_v52 = vadd.f32 %v6490_v20, %v2666_v11 }
 0x9bb   :  { %v2629_v32 = vpop.f32.mrb[54].mxu0  ;;  %v2669_v35 = vpop.f32.mrb[82].mxu1  ;;  %v3845_v5 = vadd.f32 %v2627_v3, %v6894_v0 }
 0x9bc   :  { %v3128_v44 = vmul.f32 -1.442695, %v3844_v21  ;;  %v2630_v4 = vpop.f32.mrb[55].mxu0  ;;  %v3771_v26 = vpop.f32.mrb[83].mxu1 }
 0x9bd   :  { %v3129_v49 = vmul.f32 -1.442695, %v3845_v5 }
 0x9be   :  { %4112 = vpow2.f32 %v3128_v44 }
 0x9bf   :  { %4114 = vpow2.f32 %v3129_v49 }
 0x9c8   :  { %v4113_v53 = vpop.eup %4112 }
 0x9c9   :  { %v2676_v19 = vadd.f32 1.0, %v4113_v53  ;;  %v4115_v13 = vpop.eup %4114 }
 0x9ca   :  { %v2683_v59 = vadd.f32 1.0, %v4115_v13 }
 0x9cb   :  { %4116 = vrcp.f32 %v2676_v19  ;;  %v2808_v19 = vunpack.c.h.bf16 %v6238_v30  ;;  %v6896_v30 = vld [vmem:[#allocation8_spill] sm:$0xff] }
 0x9cc   :  { %4118 = vrcp.f32 %v2683_v59 }
 0x9d5   :  { %v4117_v36 = vpop.eup %4116 }
 0x9d6   :  { %v2687_v34 = vmul.f32 %v4117_v36, %v2686_v52  ;;  %v4119_v21 = vpop.eup %4118 }
 0x9d7   :  { %v2690_v3 = vsub.f32 1.0, %v4119_v21  ;;  %v2692_v35 = vmul.f32 %v4119_v21, %v6233_v60 }
 0x9d8   :  { %v2688_v24 = vadd.f32 %v2687_v34, %v2585_v62 }
 0x9d9   :  { %v2740_v17 = vpop.f32.mrb[56].mxu0  ;;  %v2781_v54 = vpop.f32.mrb[84].mxu1 }
 0x9da   :  { %4120 = vtanh.f32 %v2688_v24  ;;  %v2788_v29 = vadd.f32 %v2787_v31, %v2740_v17  ;;  %v2742_v28 = vpop.f32.mrb[57].mxu0  ;;  %v3790_v8 = vpop.f32.mrb[85].mxu1  ;;  %v2806_v53 = vadd.f32 %v6243_v25, %v2781_v54  ;;  %v6897_v25 = vld [vmem:[#allocation9_spill] sm:$0xff] }
 0x9db   :  { %v2744_v10 = vpop.f32.mrb[58].mxu0  ;;  %v2784_v15 = vpop.f32.mrb[86].mxu1  ;;  %v2799_v11 = vadd.f32 %v2798_v45, %v2742_v28 }
 0x9dc   :  { %v3132_v7 = vmul.f32 -1.442695, %v2788_v29  ;;  %v2745_v23 = vpop.f32.mrb[59].mxu0  ;;  %v3791_v16 = vpop.f32.mrb[87].mxu1 }
 0x9dd   :  { %v3133_v27 = vmul.f32 -1.442695, %v2799_v11  ;;  %v857_v45 = vpop.permute.xlu0 %856  ;;  %v1471_v10 = vpop.permute.xlu1 %1470  ;;  %v6899_v11 = vld [vmem:[#allocation37_spill] sm:$0xff] }
 0x9de   :  { %4122 = vpow2.f32 %v3132_v7  ;;  %vm858_vm9 = vcmp.eq.s32.totalorder %v857_v45, 1  ;;  %vm1472_vm11 = vcmp.eq.s32.totalorder %v1471_v10, 1 }
 0x9df   :  { %4124 = vpow2.f32 %v3133_v27  ;;  %v859_v21 = vsel %vm858_vm9, %v6899_v11, 0.0  ;;  %v6900_v27 = vld [vmem:[#allocation24_spill] sm:$0xff] }
 0x9e1   :  { %v1164_v15 = vpop.permute.xlu0 %1163 }
 0x9e2   :  { %vm1165_vm10 = vcmp.eq.s32.totalorder %v1164_v15, 1 }
 0x9e4   :  { %v4121_v14 = vpop.eup %4120 }
 0x9e5   :  { %v2691_v32 = vmul.f32 %v4121_v14, %v2690_v3  ;;  %v2085_v7 = vpop.permute.xlu0 %2084  ;;  %v1166_v3 = vsel %vm1165_vm10, %v6900_v27, %v859_v21 }
 0x9e6   :  { %vm2086_vm13 = vcmp.eq.s32.totalorder %v2085_v7, 1 }
 0x9e7   :  { %v6495_v44 = vadd.f32 %v2692_v35, %v2691_v32  ;;  %v6901_v32 = vld [vmem:[#allocation36_spill] sm:$0xff] }
 0x9e8   :  { %v4123_v4 = vpop.eup %4122  ;;  %v1473_v35 = vsel %vm1472_vm11, %v6901_v32, %v1166_v3 }
 0x9e9   :  { %v2792_v26 = vadd.f32 1.0, %v4123_v4  ;;  %v4125_v5 = vpop.eup %4124  ;;  %v6902_v4 = vld [vmem:[#allocation41_spill] sm:$0xff] }
 0x9ea   :  { %v2803_v49 = vadd.f32 1.0, %v4125_v5 }
 0x9eb   :  { %4126 = vrcp.f32 %v2792_v26 }
 0x9ec   :  { %4128 = vrcp.f32 %v2803_v49 }
 0x9f5   :  { %v4127_v13 = vpop.eup %4126 }
 0x9f6   :  { %v2807_v59 = vmul.f32 %v4127_v13, %v2806_v53  ;;  %v4129_v52 = vpop.eup %4128 }
 0x9f7   :  { %v2811_v36 = vsub.f32 1.0, %v4129_v52  ;;  %v2813_v34 = vmul.f32 %v4129_v52, %v6248_v61  ;;  %v6898_v61 = vld [vmem:[#allocation10_spill] sm:$0xff] }
 0x9f8   :  { %v2809_v6 = vadd.f32 %v2808_v19, %v2807_v59  ;;  %v6903_v19 = vld [vmem:[#allocation38_spill] sm:$0xff] }
 0x9fa   :  { %4130 = vtanh.f32 %v2809_v6 }
 0xa04   :  { %v4131_v43 = vpop.eup %4130 }
 0xa05   :  { %v2812_v62 = vmul.f32 %v4131_v43, %v2811_v36 }
 0xa07   :  { %v2814_v31 = vadd.f32 %v2813_v34, %v2812_v62 }
 0xa09   :  { %v2815_v24 = vpack.c.bf16 %v2814_v31, %v2814_v31 }
 0xa0b   :  { %2849 = vmatmul.mubr.bf16.vlgmr.msra.gmra.mrb[60].mxu0 %v2815_v24  ;;  %3809 = vmatmul.mubr.bf16.vlgmr.msra.gmra.mrb[88].mxu1 %v2815_v24 }
 0xa0c   :  { %2899 = vmatpush1.bf16.msra.mxu0 %v6259_v22  ;;  %3813 = vmatpush3.bf16.msra.mxu1 %v6265_v57  ;;  %v2897_v22 = vpack.c.bf16 %v6495_v44, %v6495_v44 }
 0xa0d   :  { %2900 = vmatprep.subr.bf16.mxu0 %v6271_v58  ;;  %3814 = vmatprep.subr.bf16.mxu1 %v6716_v56 }
 0xa0e   :  { %2930 = vmatprep.mubr.bf16.mxu0 %v6717_v51  ;;  %3828 = vmatprep.mubr.msk.bf16.mxu1 %vm4294_vm0, %v6716_v56  ;;  %v6895_v51 = vld [vmem:[#allocation7_spill] sm:$0xff] }
 0xa10   :  { %2901 = vmatpush1.bf16.msra.mxu0 %v6281_v1  ;;  %3815 = vmatpush3.bf16.msra.mxu1 %v6287_v2 }
 0xa11   :  { %2902 = vmatprep.subr.bf16.mxu0 %v6293_v40  ;;  %3816 = vmatprep.subr.bf16.mxu1 %v6716_v56 }
 0xa14   :  { %2903 = vmatpush1.bf16.msra.mxu0 %v6300_v37  ;;  %3817 = vmatpush3.bf16.msra.mxu1 %v6306_v50 }
 0xa15   :  { %2904 = vmatprep.subr.bf16.mxu0 %v6312_v63  ;;  %3818 = vmatprep.subr.bf16.mxu1 %v6716_v56 }
 0xa18   :  { %2905 = vmatpush1.bf16.msra.mxu0 %v6319_v33  ;;  %3819 = vmatpush3.bf16.msra.mxu1 %v6325_v38 }
 0xa19   :  { %2906 = vmatprep.subr.bf16.mxu0 %v6331_v9  ;;  %3820 = vmatprep.subr.bf16.mxu1 %v6716_v56 }
 0xa1c   :  { %2907 = vmatpush1.bf16.msra.mxu0 %v6338_v41  ;;  %3821 = vmatpush3.bf16.msra.mxu1 %v6344_v42 }
 0xa1d   :  { %2908 = vmatprep.subr.bf16.mxu0 %v6350_v47  ;;  %3822 = vmatprep.subr.bf16.mxu1 %v6716_v56 }
 0xa20   :  { %2909 = vmatpush1.bf16.msra.mxu0 %v6357_v18  ;;  %3823 = vmatpush3.bf16.msra.mxu1 %v6895_v51 }
 0xa21   :  { %2910 = vmatprep.subr.bf16.mxu0 %v6896_v30  ;;  %3824 = vmatprep.subr.bf16.mxu1 %v6716_v56 }
 0xa24   :  { %2911 = vmatpush1.bf16.msra.mxu0 %v6897_v25  ;;  %3825 = vmatpush3.bf16.msra.mxu1 %v6898_v61 }
 0xa25   :  { %2912 = vmatprep.subr.bf16.mxu0 %v6388_v46  ;;  %3826 = vmatprep.subr.bf16.mxu1 %v6716_v56 }
 0xa28   :  { %2913 = vmatpush1.bf16.msra.mxu0 %v6395_v48  ;;  %3827 = vmatpush3.bf16.msra.mxu1 %v6401_v55 }
 0xa2b   :  { %2931 = vmatmul.mubr.bf16.vlgmr.msra.gmra.mrb[60].mxu0 %v2897_v22  ;;  %3829 = vmatmul.mubr.bf16.vlgmr.msra.gmra.mrb[92].mxu1 %v2897_v22 }
 0xade   :  { %v2891_v57 = vpop.f32.mrb[88].mxu1 }
 0xadf   :  { %v3810_v58 = vpop.f32.mrb[89].mxu1  ;;  %v2892_v29 = vadd.f32 %v2891_v57, %v4929_v39 }
 0xae0   :  { %v2894_v1 = vpop.f32.mrb[90].mxu1 }
 0xae1   :  { %v3811_v2 = vpop.f32.mrb[91].mxu1 }
 0xafe   :  { %v2932_v40 = vpop.f32.mrb[60].mxu0  ;;  %v2973_v37 = vpop.f32.mrb[92].mxu1 }
 0xaff   :  { %v3846_v50 = vadd.f32 %v2932_v40, %v6893_v12  ;;  %v2934_v63 = vpop.f32.mrb[61].mxu0  ;;  %v3830_v33 = vpop.f32.mrb[93].mxu1  ;;  %v2993_v54 = vadd.f32 %v6490_v20, %v2973_v37 }
 0xb00   :  { %v2936_v56 = vpop.f32.mrb[62].mxu0  ;;  %v2976_v38 = vpop.f32.mrb[94].mxu1  ;;  %v3847_v42 = vadd.f32 %v2934_v63, %v6894_v0 }
 0xb01   :  { %v3134_v9 = vmul.f32 -1.442695, %v3846_v50  ;;  %v2937_v41 = vpop.f32.mrb[63].mxu0  ;;  %v3831_v55 = vpop.f32.mrb[95].mxu1 }
 0xb02   :  { %v3135_v47 = vmul.f32 -1.442695, %v3847_v42  ;;  %v1778_v0 = vpop.permute.xlu1 %1777  ;;  %v2699_v20 = vpop.permute.xlu0 %2698 }
 0xb03   :  { %4132 = vpow2.f32 %v3134_v9  ;;  %vm1779_vm12 = vcmp.eq.s32.totalorder %v1778_v0, 1  ;;  %vm2700_vm15 = vcmp.eq.s32.totalorder %v2699_v20, 1 }
 0xb04   :  { %4134 = vpow2.f32 %v3135_v47  ;;  %v1780_v26 = vsel %vm1779_vm12, %v6902_v4, %v1473_v35 }
 0xb05   :  { %v2087_v13 = vsel %vm2086_vm13, %v6903_v19, %v1780_v26 }
 0xb06   :  { %v2392_v16 = vpop.permute.xlu1 %2391 }
 0xb07   :  { %vm2393_vm14 = vcmp.eq.s32.totalorder %v2392_v16, 1 }
 0xb08   :  { %v2394_v59 = vsel %vm2393_vm14, %v6233_v60, %v2087_v13 }
 0xb09   :  { %v2701_v52 = vsel %vm2700_vm15, %v6495_v44, %v2394_v59 }
 0xb0a   :  { %v3006_v5 = vpop.permute.xlu1 %3005 }
 0xb0b   :  { %vm3007_vm0 = vcmp.eq.s32.totalorder %v3006_v5, 1 }
 0xb0d   :  { %v4133_v18 = vpop.eup %4132 }
 0xb0e   :  { %v2983_v46 = vadd.f32 1.0, %v4133_v18  ;;  %v4135_v48 = vpop.eup %4134 }
 0xb0f   :  { %v2990_v17 = vadd.f32 1.0, %v4135_v48 }
 0xb10   :  { %4136 = vrcp.f32 %v2983_v46 }
 0xb11   :  { %4138 = vrcp.f32 %v2990_v17 }
 0xb1a   :  { %v4137_v12 = vpop.eup %4136 }
 0xb1b   :  { %v2994_v28 = vmul.f32 %v4137_v12, %v2993_v54  ;;  %v4139_v23 = vpop.eup %4138 }
 0xb1c   :  { %v2997_v39 = vsub.f32 1.0, %v4139_v23  ;;  %v2999_v53 = vmul.f32 %v4139_v23, %v6495_v44 }
 0xb1d   :  { %v2995_v8 = vadd.f32 %v2994_v28, %v2892_v29 }
 0xb1f   :  { %4140 = vtanh.f32 %v2995_v8 }
 0xb29   :  { %v4141_v14 = vpop.eup %4140 }
 0xb2a   :  { %v2998_v49 = vmul.f32 %v4141_v14, %v2997_v39 }
 0xb2c   :  { %v3000_v6 = vadd.f32 %v2999_v53, %v2998_v49 }
 0xb2e   :  { %v3008_v36 = vsel %vm3007_vm0, %v3000_v6, %v2701_v52 }
 0xb2f   :  { %3011 = vst [vmem:[%s6558_s8] sm:$0xff] %v3008_v36 }

</bundles_post_ra>
